<compile_context>
chip_gen: v7x
topology: tpu7x:2x2x1
jax: 0.10.0
libtpu: 0.0.40
codegen_flags: <defaults>
</compile_context>

<pallas_src>
import jax
import jax.numpy as jnp
from jax import lax
from jax.experimental import pallas as pl
from jax.experimental.pallas import tpu as pltpu


def make_transformer_ffn_kernel(eps: float, seq_len: int):
    inv_s = 1.0 / float(seq_len)

    def kernel(x_ref, xold_ref, w1_ref, b1_ref, w2_ref, p_ref, o_ref):
        # x_ref / xold_ref / o_ref: (Bt, S, E) blocks (Bt batch elements).
        # w1_ref: (E, F) bf16; w2_ref: (F, E) bf16; b1_ref: (1, F) f32.
        # p_ref: (5, E) f32, rows = [b2, gamma1, beta1, gamma2, beta2].
        bt, s, e = x_ref.shape
        h0 = x_ref[...].astype(jnp.float32) + xold_ref[...].astype(jnp.float32)

        # ---- instance norm 1: stats over the sequence axis, per (batch, channel)
        mean1 = jnp.sum(h0, axis=1, keepdims=True) * inv_s                # (Bt, 1, E)
        c1 = h0 - mean1
        var1 = jnp.sum(c1 * c1, axis=1, keepdims=True) * inv_s
        h1 = c1 * lax.rsqrt(var1 + eps) * p_ref[1:2, :] + p_ref[2:3, :]   # (Bt, S, E)

        # ---- FeedForward: relu(h1 @ W1 + b1) @ W2 + b2 (bf16 MXU, f32 acc) ----
        # Flatten batch*seq so the MXU sees M = Bt*S rows instead of S.
        h1_2d = h1.reshape(bt * s, e)
        a = jnp.dot(h1_2d.astype(jnp.bfloat16), w1_ref[...],
                    preferred_element_type=jnp.float32) + b1_ref[...]     # (Bt*S, F)
        a = jnp.maximum(a, 0.0)
        f2d = jnp.dot(a.astype(jnp.bfloat16), w2_ref[...],
                      preferred_element_type=jnp.float32) + p_ref[0:1, :]  # (Bt*S, E)
        f = f2d.reshape(bt, s, e)

        # ---- residual + instance norm 2 ----
        h2 = h1 + f
        mean2 = jnp.sum(h2, axis=1, keepdims=True) * inv_s
        c2 = h2 - mean2
        var2 = jnp.sum(c2 * c2, axis=1, keepdims=True) * inv_s
        out = c2 * lax.rsqrt(var2 + eps) * p_ref[3:4, :] + p_ref[4:5, :]

        o_ref[...] = out.astype(o_ref.dtype)

    return kernel


def _choose_block_batch(B, S, E, *, target_rows=256, vmem_act_budget=8 << 20):
    """Pick Bt dividing B so Bt*S hits the MXU row target (256 for v6e/v7x,
    >=128 suffices for v5e) while keeping >= 2 grid steps (both v7x
    TensorCores busy) and a modest activation VMEM footprint
    (~ 2 double-buffers x 3 tensors x Bt*S*E*4 bytes)."""
    divisors = [d for d in range(1, B + 1) if B % d == 0]

    def fits(d):
        return 2 * 3 * d * S * E * 4 <= vmem_act_budget

    # Smallest divisor meeting the row target while leaving >= 2 grid steps.
    for d in divisors:
        if d * S >= target_rows and B // d >= 2 and fits(d):
            return d
    # Otherwise: largest divisor that keeps >= 2 grid steps and fits VMEM.
    two_step = [d for d in divisors if B // d >= 2 and fits(d)]
    if two_step:
        return two_step[-1]
    fitting = [d for d in divisors if fits(d)]
    return fitting[-1] if fitting else 1


def transformer_ffn(x, x_old, w1, b1, w2, b2, g1, be1, g2, be2, *, eps=1e-5,
                    block_batch=None):
    """x, x_old: (B, S, E) float32.
    w1: (E, F)  -- torch W1.weight.T      b1: (F,)
    w2: (F, E)  -- torch W2.weight.T      b2: (E,)
    g1/be1, g2/be2: (E,) InstanceNorm1d affine weight/bias for norm1 / norm2.
    """
    B, S, E = x.shape
    F = w1.shape[1]

    bt = block_batch if block_batch is not None else _choose_block_batch(B, S, E)
    assert B % bt == 0, "block_batch must divide the batch"
    grid_b = B // bt

    # bf16 weights: halves weight DMA/VMEM bytes and feeds the MXU at bf16 peak.
    w1_bf = w1.astype(jnp.bfloat16)
    w2_bf = w2.astype(jnp.bfloat16)
    b1_2 = b1.reshape(1, F).astype(jnp.float32)
    # Pack the five length-E parameters into a single (5, E) input (one VMEM tile).
    params = jnp.stack([b2, g1, be1, g2, be2], axis=0).astype(jnp.float32)

    kernel = make_transformer_ffn_kernel(eps, S)

    flops = 4 * B * S * E * F + 12 * B * S * E            # two matmuls + elementwise
    transcendentals = 2 * B * E                            # rsqrt per channel per norm
    bytes_accessed = (3 * B * S * E * 4                    # x, x_old, out (f32)
                      + 2 * E * F * 2                      # W1, W2 (bf16, resident)
                      + (F + 5 * E) * 4)                   # b1 + packed params

    return pl.pallas_call(
        kernel,
        out_shape=jax.ShapeDtypeStruct((B, S, E), x.dtype),
        grid_spec=pltpu.PrefetchScalarGridSpec(
            num_scalar_prefetch=0,
            grid=(grid_b,),
            in_specs=[
                pl.BlockSpec((bt, S, E), lambda b: (b, 0, 0)),   # x
                pl.BlockSpec((bt, S, E), lambda b: (b, 0, 0)),   # x_old
                pl.BlockSpec((E, F), lambda b: (0, 0)),          # W1 (resident)
                pl.BlockSpec((1, F), lambda b: (0, 0)),          # b1
                pl.BlockSpec((F, E), lambda b: (0, 0)),          # W2 (resident)
                pl.BlockSpec((5, E), lambda b: (0, 0)),          # packed b2/g1/be1/g2/be2
            ],
            out_specs=pl.BlockSpec((bt, S, E), lambda b: (b, 0, 0)),
        ),
        compiler_params=pltpu.CompilerParams(
            dimension_semantics=("parallel",),
            vmem_limit_bytes=32 * 1024 * 1024,
        ),
        cost_estimate=pl.CostEstimate(
            flops=flops,
            transcendentals=transcendentals,
            bytes_accessed=bytes_accessed,
        ),
    )(x, x_old, w1_bf, b1_2, w2_bf, params)


def reference_transformer_ffn(x, x_old, w1, b1, w2, b2, g1, be1, g2, be2, *, eps=1e-5):
    """Pure-JAX f32 reference matching the PyTorch module semantics
    (Normalization='instance': InstanceNorm1d(E, affine=True) over the seq axis)."""
    def inorm(h, g, b):
        mean = h.mean(axis=1, keepdims=True)
        var = ((h - mean) ** 2).mean(axis=1, keepdims=True)   # biased variance
        return (h - mean) / jnp.sqrt(var + eps) * g + b

    h1 = inorm(x_old + x, g1, be1)
    f = jnp.maximum(h1 @ w1 + b1, 0.0) @ w2 + b2
    return inorm(h1 + f, g2, be2)


if __name__ == "__main__":
    # Lane-aligned shapes consistent with the module: embedding_dim=128,
    # ff_hidden_dim=512.  B=32, S=16 -> Bt=16 per step (256 MXU rows), 2 grid
    # steps so both v7x TensorCores get work.
    B, S, E, F = 32, 16, 128, 512

    key = jax.random.PRNGKey(0)
    kx, kxo, k1, kb1, k2, kb2, kg1, kbe1, kg2, kbe2 = jax.random.split(key, 10)

    x = jax.random.normal(kx, (B, S, E), dtype=jnp.float32)
    x_old = jax.random.normal(kxo, (B, S, E), dtype=jnp.float32)

    # Torch shapes: W1.weight (F, E), W2.weight (E, F); stored pre-transposed
    # so the kernel computes h @ W.
    w1 = (jax.random.normal(k1, (F, E), dtype=jnp.float32) * 0.05).T   # (E, F)
    b1 = jax.random.normal(kb1, (F,), dtype=jnp.float32) * 0.05
    w2 = (jax.random.normal(k2, (E, F), dtype=jnp.float32) * 0.05).T   # (F, E)
    b2 = jax.random.normal(kb2, (E,), dtype=jnp.float32) * 0.05

    # InstanceNorm affine params (non-trivial to exercise the affine path).
    g1 = 1.0 + 0.1 * jax.random.normal(kg1, (E,), dtype=jnp.float32)
    be1 = 0.1 * jax.random.normal(kbe1, (E,), dtype=jnp.float32)
    g2 = 1.0 + 0.1 * jax.random.normal(kg2, (E,), dtype=jnp.float32)
    be2 = 0.1 * jax.random.normal(kbe2, (E,), dtype=jnp.float32)

    y = transformer_ffn(x, x_old, w1, b1, w2, b2, g1, be1, g2, be2)
    y = jax.block_until_ready(y)

    y_ref = reference_transformer_ffn(x, x_old, w1, b1, w2, b2, g1, be1, g2, be2)

    # bf16 MXU operands vs f32 reference -> loosened (but still tight) tolerance.
    assert y.shape == y_ref.shape
    assert jnp.allclose(y, y_ref, atol=2e-2, rtol=2e-2), "mismatch vs reference"

    print("KERNEL_OK")
</pallas_src>

<mosaic_0001>
module attributes {stable_mosaic.version = 11 : i64} {
  func.func @kernel(%arg0: i32, %arg1: memref<16x16x128xf32, #tpu.memory_space<vmem>>, %arg2: memref<16x16x128xf32, #tpu.memory_space<vmem>>, %arg3: memref<128x512xbf16, #tpu.memory_space<vmem>>, %arg4: memref<1x512xf32, #tpu.memory_space<vmem>>, %arg5: memref<512x128xbf16, #tpu.memory_space<vmem>>, %arg6: memref<5x128xf32, #tpu.memory_space<vmem>>, %arg7: memref<16x16x128xf32, #tpu.memory_space<vmem>>) attributes {dimension_semantics = [#tpu.dimension_semantics<parallel>], iteration_bounds = array<i64: 2>, scalar_prefetch = 0 : i64, scratch_operands = 0 : i64, tpu.core_type = #tpu.core_type<tc>, window_params = [{transform_indices = @transform_0, window_bounds = array<i64: 16, 16, 128>}, {transform_indices = @transform_1, window_bounds = array<i64: 16, 16, 128>}, {pipeline_mode = #tpu.pipeline_mode<synchronous>, transform_indices = @transform_2, window_bounds = array<i64: 128, 512>}, {pipeline_mode = #tpu.pipeline_mode<synchronous>, transform_indices = @transform_3, window_bounds = array<i64: 1, 512>}, {pipeline_mode = #tpu.pipeline_mode<synchronous>, transform_indices = @transform_4, window_bounds = array<i64: 512, 128>}, {pipeline_mode = #tpu.pipeline_mode<synchronous>, transform_indices = @transform_5, window_bounds = array<i64: 5, 128>}, {transform_indices = @transform_6, window_bounds = array<i64: 16, 16, 128>}]} {
    %c0 = arith.constant 0 : index
    %c0_0 = arith.constant 0 : index
    %c0_1 = arith.constant 0 : index
    %0 = vector.load %arg1[%c0, %c0_0, %c0_1] : memref<16x16x128xf32, #tpu.memory_space<vmem>>, vector<16x16x128xf32>
    %c0_2 = arith.constant 0 : index
    %c0_3 = arith.constant 0 : index
    %c0_4 = arith.constant 0 : index
    %1 = vector.load %arg2[%c0_2, %c0_3, %c0_4] : memref<16x16x128xf32, #tpu.memory_space<vmem>>, vector<16x16x128xf32>
    %2 = arith.addf %0, %1 : vector<16x16x128xf32>
    %cst = arith.constant dense<0.000000e+00> : vector<16x128xf32>
    %3 = vector.multi_reduction <add>, %2, %cst [1] : vector<16x16x128xf32> to vector<16x128xf32>
    %4 = vector.shape_cast %3 : vector<16x128xf32> to vector<16x1x128xf32>
    %cst_5 = arith.constant 6.250000e-02 : f32
    %5 = vector.broadcast %cst_5 : f32 to vector<16x1x128xf32>
    %6 = arith.mulf %4, %5 : vector<16x1x128xf32>
    %7 = vector.broadcast %6 : vector<16x1x128xf32> to vector<16x16x128xf32>
    %8 = arith.subf %2, %7 : vector<16x16x128xf32>
    %9 = arith.mulf %8, %8 : vector<16x16x128xf32>
    %cst_6 = arith.constant dense<0.000000e+00> : vector<16x128xf32>
    %10 = vector.multi_reduction <add>, %9, %cst_6 [1] : vector<16x16x128xf32> to vector<16x128xf32>
    %11 = vector.shape_cast %10 : vector<16x128xf32> to vector<16x1x128xf32>
    %cst_7 = arith.constant 6.250000e-02 : f32
    %12 = vector.broadcast %cst_7 : f32 to vector<16x1x128xf32>
    %13 = arith.mulf %11, %12 : vector<16x1x128xf32>
    %cst_8 = arith.constant 9.99999974E-6 : f32
    %14 = vector.broadcast %cst_8 : f32 to vector<16x1x128xf32>
    %15 = arith.addf %13, %14 : vector<16x1x128xf32>
    %16 = math.rsqrt %15 : vector<16x1x128xf32>
    %17 = vector.broadcast %16 : vector<16x1x128xf32> to vector<16x16x128xf32>
    %18 = arith.mulf %8, %17 : vector<16x16x128xf32>
    %c1 = arith.constant 1 : index
    %c0_9 = arith.constant 0 : index
    %19 = vector.load %arg6[%c1, %c0_9] : memref<5x128xf32, #tpu.memory_space<vmem>>, vector<1x128xf32>
    %20 = vector.shape_cast %19 : vector<1x128xf32> to vector<1x1x128xf32>
    %21 = vector.broadcast %20 : vector<1x1x128xf32> to vector<16x16x128xf32>
    %22 = arith.mulf %18, %21 : vector<16x16x128xf32>
    %c2 = arith.constant 2 : index
    %c0_10 = arith.constant 0 : index
    %23 = vector.load %arg6[%c2, %c0_10] : memref<5x128xf32, #tpu.memory_space<vmem>>, vector<1x128xf32>
    %24 = vector.shape_cast %23 : vector<1x128xf32> to vector<1x1x128xf32>
    %25 = vector.broadcast %24 : vector<1x1x128xf32> to vector<16x16x128xf32>
    %26 = arith.addf %22, %25 : vector<16x16x128xf32>
    %27 = vector.shape_cast %26 : vector<16x16x128xf32> to vector<256x128xf32>
    %28 = arith.truncf %27 : vector<256x128xf32> to vector<256x128xbf16>
    %c0_11 = arith.constant 0 : index
    %c0_12 = arith.constant 0 : index
    %29 = vector.load %arg3[%c0_11, %c0_12] : memref<128x512xbf16, #tpu.memory_space<vmem>>, vector<128x512xbf16>
    %cst_13 = arith.constant dense<0.000000e+00> : vector<256x512xf32>
    %30 = tpu.matmul %28, %29, %cst_13 {dimension_numbers = #tpu.dot_dimension_numbers<[1], [0], [0], [1], [0, 0, 1, 1], [], []>} : vector<256x128xbf16>, vector<128x512xbf16>, vector<256x512xf32> -> vector<256x512xf32>
    %c0_14 = arith.constant 0 : index
    %c0_15 = arith.constant 0 : index
    %31 = vector.load %arg4[%c0_14, %c0_15] : memref<1x512xf32, #tpu.memory_space<vmem>>, vector<1x512xf32>
    %32 = vector.broadcast %31 : vector<1x512xf32> to vector<256x512xf32>
    %33 = arith.addf %30, %32 : vector<256x512xf32>
    %cst_16 = arith.constant 0.000000e+00 : f32
    %34 = vector.broadcast %cst_16 : f32 to vector<256x512xf32>
    %35 = arith.maximumf %33, %34 : vector<256x512xf32>
    %36 = arith.truncf %35 : vector<256x512xf32> to vector<256x512xbf16>
    %c0_17 = arith.constant 0 : index
    %c0_18 = arith.constant 0 : index
    %37 = vector.load %arg5[%c0_17, %c0_18] : memref<512x128xbf16, #tpu.memory_space<vmem>>, vector<512x128xbf16>
    %cst_19 = arith.constant dense<0.000000e+00> : vector<256x128xf32>
    %38 = tpu.matmul %36, %37, %cst_19 {dimension_numbers = #tpu.dot_dimension_numbers<[1], [0], [0], [1], [0, 0, 1, 1], [], []>} : vector<256x512xbf16>, vector<512x128xbf16>, vector<256x128xf32> -> vector<256x128xf32>
    %c0_20 = arith.constant 0 : index
    %c0_21 = arith.constant 0 : index
    %39 = vector.load %arg6[%c0_20, %c0_21] : memref<5x128xf32, #tpu.memory_space<vmem>>, vector<1x128xf32>
    %40 = vector.broadcast %39 : vector<1x128xf32> to vector<256x128xf32>
    %41 = arith.addf %38, %40 : vector<256x128xf32>
    %42 = vector.shape_cast %41 : vector<256x128xf32> to vector<16x16x128xf32>
    %43 = arith.addf %26, %42 : vector<16x16x128xf32>
    %cst_22 = arith.constant dense<0.000000e+00> : vector<16x128xf32>
    %44 = vector.multi_reduction <add>, %43, %cst_22 [1] : vector<16x16x128xf32> to vector<16x128xf32>
    %45 = vector.shape_cast %44 : vector<16x128xf32> to vector<16x1x128xf32>
    %cst_23 = arith.constant 6.250000e-02 : f32
    %46 = vector.broadcast %cst_23 : f32 to vector<16x1x128xf32>
    %47 = arith.mulf %45, %46 : vector<16x1x128xf32>
    %48 = vector.broadcast %47 : vector<16x1x128xf32> to vector<16x16x128xf32>
    %49 = arith.subf %43, %48 : vector<16x16x128xf32>
    %50 = arith.mulf %49, %49 : vector<16x16x128xf32>
    %cst_24 = arith.constant dense<0.000000e+00> : vector<16x128xf32>
    %51 = vector.multi_reduction <add>, %50, %cst_24 [1] : vector<16x16x128xf32> to vector<16x128xf32>
    %52 = vector.shape_cast %51 : vector<16x128xf32> to vector<16x1x128xf32>
    %cst_25 = arith.constant 6.250000e-02 : f32
    %53 = vector.broadcast %cst_25 : f32 to vector<16x1x128xf32>
    %54 = arith.mulf %52, %53 : vector<16x1x128xf32>
    %cst_26 = arith.constant 9.99999974E-6 : f32
    %55 = vector.broadcast %cst_26 : f32 to vector<16x1x128xf32>
    %56 = arith.addf %54, %55 : vector<16x1x128xf32>
    %57 = math.rsqrt %56 : vector<16x1x128xf32>
    %58 = vector.broadcast %57 : vector<16x1x128xf32> to vector<16x16x128xf32>
    %59 = arith.mulf %49, %58 : vector<16x16x128xf32>
    %c3 = arith.constant 3 : index
    %c0_27 = arith.constant 0 : index
    %60 = vector.load %arg6[%c3, %c0_27] : memref<5x128xf32, #tpu.memory_space<vmem>>, vector<1x128xf32>
    %61 = vector.shape_cast %60 : vector<1x128xf32> to vector<1x1x128xf32>
    %62 = vector.broadcast %61 : vector<1x1x128xf32> to vector<16x16x128xf32>
    %63 = arith.mulf %59, %62 : vector<16x16x128xf32>
    %c4 = arith.constant 4 : index
    %c0_28 = arith.constant 0 : index
    %64 = vector.load %arg6[%c4, %c0_28] : memref<5x128xf32, #tpu.memory_space<vmem>>, vector<1x128xf32>
    %65 = vector.shape_cast %64 : vector<1x128xf32> to vector<1x1x128xf32>
    %66 = vector.broadcast %65 : vector<1x1x128xf32> to vector<16x16x128xf32>
    %67 = arith.addf %63, %66 : vector<16x16x128xf32>
    %c0_29 = arith.constant 0 : index
    %c0_30 = arith.constant 0 : index
    %c0_31 = arith.constant 0 : index
    %68 = vector.load %arg7[%c0_29, %c0_30, %c0_31] : memref<16x16x128xf32, #tpu.memory_space<vmem>>, vector<16x16x128xf32>
    tpu.vector_store %arg7[%c0_29, %c0_30, %c0_31], %67 {strides = array<i32>} : memref<16x16x128xf32, #tpu.memory_space<vmem>>, vector<16x16x128xf32>,
    return
  }
  func.func @transform_0(%arg0: i32) -> (i32, i32, i32) {
    %c0_i32 = arith.constant 0 : i32
    %c0_i32_0 = arith.constant 0 : i32
    %c0_i32_1 = arith.constant 0 : i32
    return %arg0, %c0_i32, %c0_i32_0 : i32, i32, i32
  }
  func.func @transform_1(%arg0: i32) -> (i32, i32, i32) {
    %c0_i32 = arith.constant 0 : i32
    %c0_i32_0 = arith.constant 0 : i32
    %c0_i32_1 = arith.constant 0 : i32
    return %arg0, %c0_i32, %c0_i32_0 : i32, i32, i32
  }
  func.func @transform_2(%arg0: i32) -> (i32, i32) {
    %c0_i32 = arith.constant 0 : i32
    %c0_i32_0 = arith.constant 0 : i32
    %c0_i32_1 = arith.constant 0 : i32
    return %c0_i32, %c0_i32_0 : i32, i32
  }
  func.func @transform_3(%arg0: i32) -> (i32, i32) {
    %c0_i32 = arith.constant 0 : i32
    %c0_i32_0 = arith.constant 0 : i32
    %c0_i32_1 = arith.constant 0 : i32
    return %c0_i32, %c0_i32_0 : i32, i32
  }
  func.func @transform_4(%arg0: i32) -> (i32, i32) {
    %c0_i32 = arith.constant 0 : i32
    %c0_i32_0 = arith.constant 0 : i32
    %c0_i32_1 = arith.constant 0 : i32
    return %c0_i32, %c0_i32_0 : i32, i32
  }
  func.func @transform_5(%arg0: i32) -> (i32, i32) {
    %c0_i32 = arith.constant 0 : i32
    %c0_i32_0 = arith.constant 0 : i32
    %c0_i32_1 = arith.constant 0 : i32
    return %c0_i32, %c0_i32_0 : i32, i32
  }
  func.func @transform_6(%arg0: i32) -> (i32, i32, i32) {
    %c0_i32 = arith.constant 0 : i32
    %c0_i32_0 = arith.constant 0 : i32
    %c0_i32_1 = arith.constant 0 : i32
    return %arg0, %c0_i32, %c0_i32_0 : i32, i32, i32
  }
}

</mosaic_0001>

<bundles_post_ra>
// kernel: tpu_custom_call.1
= control target key start
LH: loop header
LB: loop body
LE: loop exit
PB: predicated region body
PF: predicated region fallthrough
CT: control target
= control target key end

     0   :  { %s5284_s0 = inlined_call_operand.hbm [shape: f32[32,16,128], index: 0, kind: input, shape index: {}]   ;;  %s5285_s1 = inlined_call_operand.hbm [shape: f32[32,16,128], index: 1, kind: input, shape index: {}]   ;;  %s5286_s2 = inlined_call_operand.hbm [shape: bf16[128,512], index: 2, kind: input, shape index: {}]   ;;  %s5287_s3 = inlined_call_operand.vmem [shape: f32[1,512], index: 3, kind: input, shape index: {}]   ;;  %s5288_s4 = inlined_call_operand.hbm [shape: bf16[512,128], index: 4, kind: input, shape index: {}]   ;;  %s5289_s5 = inlined_call_operand.vmem [shape: f32[5,128], index: 5, kind: input, shape index: {}]   ;;  %s5290_s6 = inlined_call_operand.hbm [shape: f32[32,16,128], index: 6, kind: output, shape index: {}]  }
   0x1   :  { %5296 = sst [smem:[#allocation18_spill]] %s5284_s0 }
   0x2   :  { %5297 = sst [smem:[#allocation19_spill]] %s5286_s2 }
   0x3   :  { %5298 = sst [smem:[#allocation20_spill]] %s5288_s4 }
   0x4   :  { %11 = vsyncpa [#allocation3], 0 }
   0x5   :  { %13 = vsyncpa [#allocation3 + $0x1], 0 }
   0x6   :  { %14 = vsyncpa [#allocation6], 0 }
   0x7   :  { %16 = vsyncpa [#allocation6 + $0x1], 0 }
   0x8   :  { %17 = vsyncpa [#allocation9], 0 }
   0x9   :  { %18 = vsyncpa [#allocation4], 0 }
   0xa   :  { %20 = vsyncpa [#allocation4 + $0x1], 0  ;;  %s3739_s21 = smov 0   ;;  %s3741_s22 = smov 0  }
   0xb   :  { %s3743_s23 = smov 0   ;;  %s3745_s24 = smov 0  }
   0xc LB: > { %s3760_s25 = sadd.s32 4294967295, %s3688_s24   ;;  %s2942_s26 = sadd.s32 4294967294, %s3688_s24   ;;  %s3688_s24 = sphi %s3745_s24, %s5324_s24   ;;  %s3684_s23 = sphi %s3743_s23, %s5323_s23   ;;  %s3680_s22 = sphi %s3741_s22, %s5322_s22   ;;  %s3676_s21 = sphi %s3739_s21, %s5321_s21  }
   0xd   : > { %p46_p0 = scmp.ne.s32.totalorder %s3680_s22, %s3676_s21  ;;  %p5291_p1 = scmp.eq.s32.totalorder %s3760_s25, 0 }
   0xe   : > { %p186_p3 = scmp.eq.s32.totalorder %s2942_s26, 1  ;;  %p2943_p5 = scmp.ge.s32.totalorder %s3688_s24, 1 }
   0xf   : > { %p3769_p4 = por %p5291_p1, %p46_p0  ;;  %p193_p7 = scmp.lt.s32.totalorder %s3688_s24, 3 }
  0x10   : > { %p3774_p6 = por %p186_p3, %p46_p0  ;;  %s3690_s30 = smov [#allocation7]  }
  0x11   : > { %s5299_s27 = scalar_select %p3769_p4, 1, 0 }
  0x12   : > { %s5300_s28 = scalar_select %p3774_p6, 1, 0 }
  0x13   : > { %p3779_p8 = pnand %p2943_p5, %p193_p7  ;;  %s205_s7 = sshll.u32 %s3690_s30, 4  ;;  %s3783_s7 = int_to_ptr.vmem [resolvable:$true] %s205_s7 }
  0x14   : > { %s3691_s9 = smov [#allocation8]   ;;  %s5303_s2 = sld [smem:[#allocation19_spill]] }
  0x15   : > { %p3280_p9 = pneg %p3779_p8  ;;  %s221_s10 = sshll.u32 %s3691_s9, 4  ;;  %s3794_s10 = int_to_ptr.vmem [resolvable:$true] %s221_s10 }
  0x17   : > { %p3790_p11 = pnand %p3280_p9, %p5291_p1 }
  0x19   : > { %p3496_p13 = pneg %p3790_p11 }
  0x1a   : > { %s3494_s13 = scalar_lea.hbm %s5303_s2, 4096 }
  0x1b   : > { %p3495_p12 = scmp.ne.s32.totalorder %s5303_s2, %s3494_s13  ;;  %p3501_p5 = scmp.lt.u32.totalorder %s3494_s13, %s5303_s2 }
  0x1d   : > { %p3497_p0 = pnand %p3496_p13, %p3495_p12 }
  0x1f   : > { %p3498_p3 = pneg %p3497_p0 }
  0x21   : > { %p3503_p7 = pnand %p3501_p5, %p3498_p3 }
  0x23   : > { %3506 = shalt.err (!%p3503_p7)
}
  0x24   : > { %s3507_s18 = scalar_lea.vmem %s3783_s7, 4096  ;;  %p3515_p2 = scmp.lt.s32.totalorder %s3783_s7, %s3783_s7 }
  0x25   : > { %p3508_p9 = scmp.ne.s32.totalorder %s3783_s7, %s3507_s18  ;;  %p3516_p12 = scmp.lt.s32.totalorder %s3507_s18, %s3507_s18 }
  0x27   : > { %p3510_p10 = pnand %p3508_p9, %p3496_p13  ;;  %p3517_p0 = por %p3516_p12, %p3515_p2 }
  0x29   : > { %p3511_p1 = pneg %p3510_p10 }
  0x2b   : > { %p3518_p6 = pnand %p3517_p0, %p3511_p1 }
  0x2d   : > { %3521 = shalt.err (!%p3518_p6)
}
  0x2e   : > { %s3692_s19 = smov 256   ;;  %s3693_s20 = smov 16  }
  0x2f   : > { %3283 = dma.hbm_to_vmem [thread:$0]  (!%p3790_p11), %s5303_s2, 4096, %s3783_s7, [#allocation6], %s3692_s19, %s3692_s19, %s3693_s20  }
  0x30   : > { %s5304_s4 = sld [smem:[#allocation20_spill]] }
  0x36   : > { %s3522_s12 = scalar_lea.hbm %s5304_s4, 4096 }
  0x37   : > { %p3523_p2 = scmp.ne.s32.totalorder %s5304_s4, %s3522_s12  ;;  %p3529_p10 = scmp.lt.u32.totalorder %s3522_s12, %s5304_s4 }
  0x39   : > { %p3525_p1 = pnand %p3523_p2, %p3496_p13 }
  0x3b   : > { %p3526_p6 = pneg %p3525_p1 }
  0x3d   : > { %p3531_p3 = pnand %p3529_p10, %p3526_p6 }
  0x3f   : > { %3534 = shalt.err (!%p3531_p3)
}
  0x40   : > { %s3535_s7 = scalar_lea.vmem %s3794_s10, 4096  ;;  %p3543_p12 = scmp.lt.s32.totalorder %s3794_s10, %s3794_s10 }
  0x41   : > { %p3536_p5 = scmp.ne.s32.totalorder %s3794_s10, %s3535_s7  ;;  %p3544_p0 = scmp.lt.s32.totalorder %s3535_s7, %s3535_s7 }
  0x43   : > { %p3538_p7 = pnand %p3536_p5, %p3496_p13  ;;  %p3545_p2 = por %p3544_p0, %p3543_p12 }
  0x45   : > { %p3539_p9 = pneg %p3538_p7 }
  0x47   : > { %p3546_p1 = pnand %p3545_p2, %p3539_p9 }
  0x49   : > { %3549 = shalt.err (!%p3546_p1)
}
  0x4a   : > { %s3694_s17 = smov 64   ;;  %s3695_s18 = smov 4  }
  0x4b   : > { %3286 = dma.hbm_to_vmem [thread:$0]  (!%p3790_p11), %s5304_s4, 4096, %s3794_s10, [#allocation9], %s3694_s17, %s3694_s17, %s3695_s18  }
  0x4c   : > { %s3849_s26 = sadd.s32 1, %s3688_s24   ;;  %s33_s9 = sadd.s32 1, %s3684_s23 }
  0x4d   : > { %s30_s30 = ssub.s32 %s3688_s24, %s3849_s26  ;;  %p40_p6 = scmp.ne.s32.totalorder %s3684_s23, %s3680_s22 }
  0x4e   : > { %p31_p13 = scmp.eq.s32.totalorder %s30_s30, 0  ;;  %p41_p10 = scmp.eq.s32.totalorder %s3688_s24, 0 }
  0x4f   : > { %p5305_p5 = scmp.eq.s32.totalorder %s3760_s25, 1  ;;  %p3300_p9 = scmp.lt.s32.totalorder %s3688_s24, 2 }
  0x50   : > { %s3858_s11 = scalar_select %p31_p13, %s3684_s23, %s33_s9  }
  0x51   : > { %p42_p3 = por %p41_p10, %p40_p6  ;;  %p3862_p7 = por %p5305_p5, %p40_p6 }
  0x52   : > { %s238_s8 = sand.u32 1, %s3684_s23   ;;  %s3037_s10 = sshll.u32 %s3688_s24, 12 }
  0x53   : > { %s5306_s12 = scalar_select %p3862_p7, 1, 0 }
  0x54   : > { %s3868_s13 = sshll.u32 %s238_s8, 8  ;;  %s5307_s0 = sld [smem:[#allocation18_spill]] }
  0x55   : > { %s242_s7 = scalar_lea.vmem [#allocation2], %s3868_s13  ;;  %p3881_p11 = pnand %p3300_p9, %p42_p3 }
  0x56   : > { %s250_s17 = sshll.u32 %s242_s7, 4  ;;  %s3885_s19 = scalar_lea.sflag [#allocation3], %s238_s8  ;;  %s3879_s17 = int_to_ptr.vmem [resolvable:$true] %s250_s17 }
  0x57   : > { %p3552_p0 = pneg %p3881_p11 }
  0x5a   : > { %s3876_s16 = scalar_lea.hbm %s5307_s0, %s3037_s10  ;;  %s3555_s14 = scalar_lea.hbm %s5307_s0, 8192 }
  0x5b   : > { %s3550_s20 = scalar_lea.hbm %s3876_s16, 4096  ;;  %p3556_p13 = scmp.lt.u32.totalorder %s3876_s16, %s5307_s0 }
  0x5c   : > { %p3551_p12 = scmp.ne.s32.totalorder %s3876_s16, %s3550_s20  ;;  %p3557_p6 = scmp.lt.u32.totalorder %s3555_s14, %s3550_s20 }
  0x5d   : > { %p3559_p3 = scmp.lt.u32.totalorder %s3550_s20, %s3876_s16 }
  0x5e   : > { %p3553_p2 = pnand %p3552_p0, %p3551_p12  ;;  %p3558_p10 = por %p3557_p6, %p3556_p13 }
  0x60   : > { %p3554_p1 = pneg %p3553_p2  ;;  %p3560_p5 = por %p3559_p3, %p3558_p10 }
  0x62   : > { %p3561_p9 = pnand %p3560_p5, %p3554_p1 }
  0x64   : > { %3564 = shalt.err (!%p3561_p9)
}
  0x65   : > { %s3565_s8 = scalar_lea.vmem %s3879_s17, 4096  ;;  %s3696_s30 = smov [#allocation2]  }
  0x66   : > { %p3566_p12 = scmp.ne.s32.totalorder %s3879_s17, %s3565_s8  ;;  %s3570_s9 = sshll.u32 %s3696_s30, 4  ;;  %s3571_s9 = int_to_ptr.vmem [resolvable:$false] %s3570_s9 }
  0x67   : > { %s3572_s15 = scalar_lea.vmem %s3571_s9, 8192  ;;  %p3573_p4 = scmp.lt.s32.totalorder %s3879_s17, %s3571_s9 }
  0x68   : > { %p3568_p2 = pnand %p3566_p12, %p3552_p0  ;;  %p3574_p13 = scmp.lt.s32.totalorder %s3572_s15, %s3565_s8 }
  0x6a   : > { %p3569_p7 = pneg %p3568_p2  ;;  %p3575_p6 = por %p3574_p13, %p3573_p4 }
  0x6c   : > { %p3576_p10 = pnand %p3575_p6, %p3569_p7 }
  0x6e   : > { %3579 = shalt.err (!%p3576_p10)
}
  0x6f   : > { %s3697_s20 = smov 128   ;;  %s3698_s14 = smov 8  }
  0x70   : > { %3290 = dma.hbm_to_vmem [thread:$0]  (!%p3881_p11), %s3876_s16, 4096, %s3879_s17, %s3885_s19, %s3697_s20, %s3697_s20, %s3698_s14  }
  0x71   : > { %s3921_s30 = scalar_lea.hbm %s5285_s1, %s3037_s10  ;;  %s264_s9 = scalar_lea.vmem [#allocation5], %s3868_s13 }
  0x72   : > { %s272_s15 = sshll.u32 %s264_s9, 4  ;;  %s260_s0 = sand.u32 1, %s3688_s24   ;;  %s3924_s15 = int_to_ptr.vmem [resolvable:$true] %s272_s15 }
  0x73   : > { %s3927_s2 = scalar_lea.sflag [#allocation6], %s260_s0  ;;  %s3580_s4 = scalar_lea.hbm %s3921_s30, 4096 }
  0x74   : > { %p3581_p4 = scmp.ne.s32.totalorder %s3921_s30, %s3580_s4  ;;  %s3585_s17 = scalar_lea.hbm %s5285_s1, 8192 }
  0x75   : > { %p3586_p3 = scmp.lt.u32.totalorder %s3921_s30, %s5285_s1  ;;  %p3587_p5 = scmp.lt.u32.totalorder %s3585_s17, %s3580_s4 }
  0x76   : > { %p3583_p7 = pnand %p3581_p4, %p3552_p0  ;;  %p3589_p12 = scmp.lt.u32.totalorder %s3580_s4, %s3921_s30 }
  0x77   : > { %p3588_p9 = por %p3587_p5, %p3586_p3 }
  0x78   : > { %p3584_p1 = pneg %p3583_p7 }
  0x79   : > { %p3590_p2 = por %p3589_p12, %p3588_p9 }
  0x7b   : > { %p3591_p13 = pnand %p3590_p2, %p3584_p1 }
  0x7d   : > { %3594 = shalt.err (!%p3591_p13)
}
  0x7e   : > { %s3595_s0 = scalar_lea.vmem %s3924_s15, 4096  ;;  %s3699_s13 = smov [#allocation5]  }
  0x7f   : > { %p3596_p6 = scmp.ne.s32.totalorder %s3924_s15, %s3595_s0  ;;  %s3600_s8 = sshll.u32 %s3699_s13, 4  ;;  %s3601_s8 = int_to_ptr.vmem [resolvable:$false] %s3600_s8 }
  0x80   : > { %s3602_s9 = scalar_lea.vmem %s3601_s8, 8192  ;;  %p3603_p7 = scmp.lt.s32.totalorder %s3924_s15, %s3601_s8 }
  0x81   : > { %p3598_p10 = pnand %p3596_p6, %p3552_p0  ;;  %p3604_p3 = scmp.lt.s32.totalorder %s3602_s9, %s3595_s0 }
  0x83   : > { %p3599_p4 = pneg %p3598_p10  ;;  %p3605_p5 = por %p3604_p3, %p3603_p7 }
  0x85   : > { %p3606_p9 = pnand %p3605_p5, %p3599_p4 }
  0x87   : > { %3609 = shalt.err (!%p3606_p9)
}
  0x88   : > { %3293 = dma.hbm_to_vmem [thread:$0]  (!%p3881_p11), %s3921_s30, 4096, %s3924_s15, %s3927_s2, %s3697_s20, %s3697_s20, %s3698_s14  }
  0x89   : > { %284 = sbr.rel (%p3779_p8) target bundleno = 887 (0x377), region = 44 }
  0x90   : > { %s3959_s4 = sand.u32 1, %s3680_s22   ;;  %p5309_p0 = scmp.ne.s32.totalorder %s5299_s27, 0 }
  0x91   : > { %s3962_s16 = sshll.u32 %s3959_s4, 8  ;;  %s287_s18 = scalar_lea.sflag [#allocation3], %s3959_s4 }
  0x92   : > { %s3966_s10 = scalar_lea.vmem [#allocation2], %s3962_s16 }
  0x93   : > { %3655 = dma.done.wait (%p5309_p0), %s287_s18, 4096  }
  0x94   : > { %3657 = vsyncadd (%p5309_p0), %s287_s18, 4294963200  ;;  %s295_s2 = sand.u32 1, %s3760_s25   ;;  %s3974_s20 = scalar_lea.vmem [#allocation5], %s3962_s16 }
  0x95   : > { %s296_s29 = scalar_lea.sflag [#allocation6], %s295_s2 }
  0x96   : > { %3659 = dma.done.wait (%p5309_p0), %s296_s29, 4096  }
  0x97   : > { %3661 = vsyncadd (%p5309_p0), %s296_s29, 4294963200  ;;  %p5310_p8 = scmp.eq.s32.totalorder %s3760_s25, 0 }
  0x99   : > { %3663 = dma.done.wait (%p5310_p8), [#allocation6], 4096   ;;  %p5311_p11 = pmov %p5310_p8 }
  0x9a   : > { %p5312_p1 = pmov %p5310_p8 }
  0x9b   : > { %3665 = vsyncadd (%p5311_p11), [#allocation6], 4294963200 }
  0x9c   : > { %3667 = dma.done.wait (%p5312_p1), [#allocation9], 4096   ;;  %p5313_p12 = pmov %p5312_p1 }
  0x9d   : > { %v3700_v0 = vmov 0   ;;  %v3347_v1 = vld [vmem:[#allocation7 + $0x4] ss:$16 sps:$4 sm:$0xff]   ;;  %v3349_v2 = vld [vmem:[#allocation7 + $0xc] ss:$16 sps:$4 sm:$0xff]   ;;  %s3041_s30 = sshll.u32 %s3760_s25, 12 }
  0x9e   : > { %3669 = vsyncadd (%p5313_p12), [#allocation9], 4294963200  ;;  %1161 = vmatprep.mubr.bf16.mxu0 %v3700_v0  ;;  %1354 = vmatprep.mubr.bf16.mxu1 %v3700_v0  ;;  %v3351_v3 = vld [vmem:[#allocation7] ss:$16 sps:$4 sm:$0xff]   ;;  %v3352_v4 = vld [vmem:[#allocation7 + $0x8] ss:$16 sps:$4 sm:$0xff]   ;;  %s5236_s7 = scalar_lea.hbm %s5290_s6, %s3041_s30 }
  0x9f   : > { %1129 = vmatprep.subr.bf16.mxu0 %v3347_v1  ;;  %1322 = vmatprep.subr.bf16.mxu1 %v3349_v2  ;;  %v3353_v5 = vld [vmem:[#allocation7 + $0x24] ss:$16 sps:$4 sm:$0xff]   ;;  %v3355_v6 = vld [vmem:[#allocation7 + $0x2c] ss:$16 sps:$4 sm:$0xff]   ;;  %v3357_v7 = vld [vmem:[#allocation7 + $0x20] ss:$16 sps:$4 sm:$0xff]  }
  0xa0   : > { %1130 = vmatpush1.bf16.msra.mxu0 %v3351_v3  ;;  %1323 = vmatpush1.bf16.msra.mxu1 %v3352_v4  ;;  %v3358_v8 = vld [vmem:[#allocation7 + $0x28] ss:$16 sps:$4 sm:$0xff]   ;;  %v3359_v9 = vld [vmem:[#allocation7 + $0x44] ss:$16 sps:$4 sm:$0xff]   ;;  %v3361_v10 = vld [vmem:[#allocation7 + $0x4c] ss:$16 sps:$4 sm:$0xff]  }
  0xa1   : > { %1131 = vmatprep.subr.bf16.mxu0 %v3353_v5  ;;  %1324 = vmatprep.subr.bf16.mxu1 %v3355_v6  ;;  %v3363_v11 = vld [vmem:[#allocation7 + $0x40] ss:$16 sps:$4 sm:$0xff]   ;;  %v3364_v12 = vld [vmem:[#allocation7 + $0x48] ss:$16 sps:$4 sm:$0xff]   ;;  %v3365_v13 = vld [vmem:[#allocation7 + $0x64] ss:$16 sps:$4 sm:$0xff]  }
  0xa2   : > { %v3367_v14 = vld [vmem:[#allocation7 + $0x6c] ss:$16 sps:$4 sm:$0xff]   ;;  %v3369_v15 = vld [vmem:[#allocation7 + $0x60] ss:$16 sps:$4 sm:$0xff]   ;;  %v3370_v16 = vld [vmem:[#allocation7 + $0x68] ss:$16 sps:$4 sm:$0xff]  }
  0xa3   : > { %v3371_v17 = vld [vmem:[#allocation7 + $0x84] ss:$16 sps:$4 sm:$0xff]   ;;  %v3373_v18 = vld [vmem:[#allocation7 + $0x8c] ss:$16 sps:$4 sm:$0xff]   ;;  %v3375_v19 = vld [vmem:[#allocation7 + $0x80] ss:$16 sps:$4 sm:$0xff]  }
  0xa4   : > { %1132 = vmatpush1.bf16.msra.mxu0 %v3357_v7  ;;  %1325 = vmatpush1.bf16.msra.mxu1 %v3358_v8  ;;  %v3376_v20 = vld [vmem:[#allocation7 + $0x88] ss:$16 sps:$4 sm:$0xff]   ;;  %v3377_v21 = vld [vmem:[#allocation7 + $0xa4] ss:$16 sps:$4 sm:$0xff]   ;;  %v3379_v22 = vld [vmem:[#allocation7 + $0xac] ss:$16 sps:$4 sm:$0xff]  }
  0xa5   : > { %1133 = vmatprep.subr.bf16.mxu0 %v3359_v9  ;;  %1326 = vmatprep.subr.bf16.mxu1 %v3361_v10  ;;  %v3381_v23 = vld [vmem:[#allocation7 + $0xa0] ss:$16 sps:$4 sm:$0xff]   ;;  %v3382_v24 = vld [vmem:[#allocation7 + $0xa8] ss:$16 sps:$4 sm:$0xff]   ;;  %v3383_v25 = vld [vmem:[#allocation7 + $0xc4] ss:$16 sps:$4 sm:$0xff]  }
  0xa6   : > { %v3385_v26 = vld [vmem:[#allocation7 + $0xcc] ss:$16 sps:$4 sm:$0xff]   ;;  %v345_v27 = vld [vmem:[%s3966_s10] sm:$0xff]  ;;  %v3388_v30 = vld [vmem:[#allocation7 + $0xc8] ss:$16 sps:$4 sm:$0xff]   ;;  %s2813_s0 = scalar_lea.sflag [#allocation4], %s3959_s4 }
  0xa7   : > { %v346_v28 = vld [vmem:[%s3966_s10 + $0x8] sm:$0xff]  ;;  %v3387_v29 = vld [vmem:[#allocation7 + $0xc0] ss:$16 sps:$4 sm:$0xff]   ;;  %v3389_v33 = vld [vmem:[#allocation7 + $0xe4] ss:$16 sps:$4 sm:$0xff]   ;;  %p5318_p13 = scmp.ne.s32.totalorder %s5306_s12, 0 }
  0xa8   : > { %1134 = vmatpush1.bf16.msra.mxu0 %v3363_v11  ;;  %1327 = vmatpush1.bf16.msra.mxu1 %v3364_v12  ;;  %v377_v31 = vld [vmem:[%s3974_s20] sm:$0xff]  ;;  %v378_v32 = vld [vmem:[%s3974_s20 + $0x8] sm:$0xff]  ;;  %v347_v37 = vld [vmem:[%s3966_s10 + $0x10] sm:$0xff]  ;;  %s3701_s25 = smov [#allocation10]  }
  0xa9   : > { %1135 = vmatprep.subr.bf16.mxu0 %v3365_v13  ;;  %1328 = vmatprep.subr.bf16.mxu1 %v3367_v14  ;;  %v3391_v34 = vld [vmem:[#allocation7 + $0xec] ss:$16 sps:$4 sm:$0xff]   ;;  %v3994_v35 = vadd.f32 %v377_v31, %v345_v27  ;;  %v3996_v36 = vadd.f32 %v378_v32, %v346_v28  ;;  %v379_v39 = vld [vmem:[%s3974_s20 + $0x10] sm:$0xff]  ;;  %v349_v41 = vld [vmem:[%s3966_s10 + $0x20] sm:$0xff]  ;;  %s3614_s8 = sshll.u32 %s3701_s25, 4  ;;  %s3615_s8 = int_to_ptr.vmem [resolvable:$false] %s3614_s8 }
  0xaa   : > { %v348_v38 = vld [vmem:[%s3966_s10 + $0x18] sm:$0xff]  ;;  %v4005_v43 = vadd.f32 %v379_v39, %v347_v37  ;;  %v350_v45 = vld [vmem:[%s3966_s10 + $0x28] sm:$0xff]  ;;  %v381_v46 = vld [vmem:[%s3974_s20 + $0x20] sm:$0xff]  ;;  %s3616_s9 = scalar_lea.vmem %s3615_s8, 8192 }
  0xab   : > { %v380_v40 = vld [vmem:[%s3974_s20 + $0x18] sm:$0xff]  ;;  %v441_v42 = vadd.f32 %v3996_v36, %v3994_v35  ;;  %v382_v47 = vld [vmem:[%s3974_s20 + $0x28] sm:$0xff]  ;;  %v3393_v48 = vld [vmem:[#allocation7 + $0xe0] ss:$16 sps:$4 sm:$0xff]   ;;  %v4012_v50 = vadd.f32 %v381_v46, %v349_v41 }
  0xac   : > { %1136 = vmatpush1.bf16.msra.mxu0 %v3369_v15  ;;  %1329 = vmatpush1.bf16.msra.mxu1 %v3370_v16  ;;  %v4007_v44 = vadd.f32 %v380_v40, %v348_v38  ;;  %v3394_v49 = vld [vmem:[#allocation7 + $0xe8] ss:$16 sps:$4 sm:$0xff]   ;;  %v4014_v51 = vadd.f32 %v382_v47, %v350_v45  ;;  %v351_v52 = vld [vmem:[%s3966_s10 + $0x30] sm:$0xff]  ;;  %v353_v59 = vld [vmem:[%s3966_s10 + $0x40] sm:$0xff] }
  0xad   : > { %1137 = vmatprep.subr.bf16.mxu0 %v3371_v17  ;;  %1330 = vmatprep.subr.bf16.mxu1 %v3373_v18  ;;  %v352_v53 = vld [vmem:[%s3966_s10 + $0x38] sm:$0xff]  ;;  %v383_v54 = vld [vmem:[%s3974_s20 + $0x30] sm:$0xff]  ;;  %v442_v55 = vrot.slane %v441_v42, 4  ;;  %v354_v60 = vld [vmem:[%s3966_s10 + $0x48] sm:$0xff] }
  0xae   : > { %v448_v56 = vadd.f32 %v4007_v44, %v4005_v43  ;;  %v384_v57 = vld [vmem:[%s3974_s20 + $0x38] sm:$0xff]  ;;  %v4022_v58 = vadd.f32 %v383_v54, %v351_v52  ;;  %v455_v61 = vadd.f32 %v4014_v51, %v4012_v50  ;;  %v385_v63 = vld [vmem:[%s3974_s20 + $0x40] sm:$0xff]  ;;  %v386_v1 = vld [vmem:[%s3974_s20 + $0x48] sm:$0xff] }
  0xaf   : > { %v4028_v62 = vadd.f32 %v384_v57, %v352_v53  ;;  %v355_v2 = vld [vmem:[%s3966_s10 + $0x50] sm:$0xff]  ;;  %v443_v3 = vadd.f32 %v442_v55, %v441_v42  ;;  %v4033_v5 = vadd.f32 %v385_v63, %v353_v59  ;;  %v4035_v6 = vadd.f32 %v386_v1, %v354_v60  ;;  %v356_v7 = vld [vmem:[%s3966_s10 + $0x58] sm:$0xff]  ;;  %v357_v14 = vld [vmem:[%s3966_s10 + $0x60] sm:$0xff] }
  0xb0   : > { %1138 = vmatpush1.bf16.msra.mxu0 %v3375_v19  ;;  %1331 = vmatpush1.bf16.msra.mxu1 %v3376_v20  ;;  %v449_v4 = vrot.slane %v448_v56, 4  ;;  %v387_v8 = vld [vmem:[%s3974_s20 + $0x50] sm:$0xff]  ;;  %v388_v9 = vld [vmem:[%s3974_s20 + $0x58] sm:$0xff]  ;;  %v456_v10 = vrot.slane %v455_v61, 4  ;;  %v358_v15 = vld [vmem:[%s3966_s10 + $0x68] sm:$0xff] }
  0xb1   : > { %1139 = vmatprep.subr.bf16.mxu0 %v3377_v21  ;;  %1332 = vmatprep.subr.bf16.mxu1 %v3379_v22  ;;  %v462_v11 = vadd.f32 %v4028_v62, %v4022_v58  ;;  %v4042_v12 = vadd.f32 %v387_v8, %v355_v2  ;;  %v4044_v13 = vadd.f32 %v388_v9, %v356_v7  ;;  %v389_v16 = vld [vmem:[%s3974_s20 + $0x60] sm:$0xff]  ;;  %v444_v17 = vrot.slane %v443_v3, 2  ;;  %v390_v20 = vld [vmem:[%s3974_s20 + $0x68] sm:$0xff]  ;;  %v359_v22 = vld [vmem:[%s3966_s10 + $0x70] sm:$0xff] }
  0xb2   : > { %v450_v18 = vadd.f32 %v449_v4, %v448_v56  ;;  %v469_v19 = vadd.f32 %v4035_v6, %v4033_v5  ;;  %v4052_v21 = vadd.f32 %v389_v16, %v357_v14  ;;  %v360_v27 = vld [vmem:[%s3966_s10 + $0x78] sm:$0xff]  ;;  %v391_v28 = vld [vmem:[%s3974_s20 + $0x70] sm:$0xff] }
  0xb4   : > { %1140 = vmatpush1.bf16.msra.mxu0 %v3381_v23  ;;  %1333 = vmatpush1.bf16.msra.mxu1 %v3382_v24  ;;  %v457_v23 = vadd.f32 %v456_v10, %v455_v61  ;;  %v463_v24 = vrot.slane %v462_v11, 4  ;;  %v451_v31 = vrot.slane %v450_v18, 2  ;;  %v470_v32 = vrot.slane %v469_v19, 4 }
  0xb5   : > { %1141 = vmatprep.subr.bf16.mxu0 %v3383_v25  ;;  %1334 = vmatprep.subr.bf16.mxu1 %v3385_v26  ;;  %v476_v25 = vadd.f32 %v4044_v13, %v4042_v12  ;;  %v4057_v26 = vadd.f32 %v390_v20, %v358_v15 }
  0xb6   : > { %v464_v37 = vadd.f32 %v463_v24, %v462_v11  ;;  %v452_v41 = vadd.f32 %v451_v31, %v450_v18  ;;  %v471_v42 = vadd.f32 %v470_v32, %v469_v19  ;;  %v3395_v19 = vld [vmem:[#allocation8 + $0x40] sm:$0xff]  }
  0xb7   : > { %v477_v38 = vrot.slane %v476_v25, 4  ;;  %v483_v39 = vadd.f32 %v4057_v26, %v4052_v21 }
  0xb8   : > { %1142 = vmatpush1.bf16.msra.mxu0 %v3387_v29  ;;  %1335 = vmatpush1.bf16.msra.mxu1 %v3388_v30  ;;  %v392_v29 = vld [vmem:[%s3974_s20 + $0x78] sm:$0xff]  ;;  %v445_v30 = vadd.f32 %v444_v17, %v443_v3  ;;  %v465_v47 = vrot.slane %v464_v37, 2  ;;  %v453_v53 = vrot.slane %v452_v41, 1  ;;  %v472_v54 = vrot.slane %v471_v42, 2 }
  0xb9   : > { %1143 = vmatprep.subr.bf16.mxu0 %v3389_v33  ;;  %1336 = vmatprep.subr.bf16.mxu1 %v3391_v34  ;;  %v4062_v33 = vadd.f32 %v391_v28, %v359_v22  ;;  %v458_v34 = vrot.slane %v457_v23, 2  ;;  %v4066_v45 = vadd.f32 %v392_v29, %v360_v27 }
  0xba   : > { %v446_v40 = vrot.slane %v445_v30, 1  ;;  %v466_v57 = vadd.f32 %v465_v47, %v464_v37  ;;  %v454_v63 = vadd.f32 %v453_v53, %v452_v41  ;;  %v473_v1 = vadd.f32 %v472_v54, %v471_v42 }
  0xbb   : > { %v459_v46 = vadd.f32 %v458_v34, %v457_v23  ;;  %v4070_v55 = vadd.f32 %v4066_v45, %v4062_v33 }
  0xbc   : > { %1144 = vmatpush1.bf16.msra.mxu0 %v3393_v48  ;;  %1337 = vmatpush1.bf16.msra.mxu1 %v3394_v49  ;;  %v478_v48 = vadd.f32 %v477_v38, %v476_v25  ;;  %v484_v49 = vrot.slane %v483_v39, 4  ;;  %v447_v52 = vadd.f32 %v446_v40, %v445_v30  ;;  %v467_v4 = vrot.slane %v466_v57, 1 }
  0xbd   : > { %v460_v56 = vrot.slane %v459_v46, 1  ;;  %v491_v2 = vrot.slane %v4070_v55, 4  ;;  %v554_v11 = vmul.f32 0.0625, %v454_v63  ;;  %v474_v14 = vrot.slane %v473_v1, 1  ;;  %3042 = vmatprep.subr.bf16.mxu0 %v3395_v19 }
  0xbe   : > { %v479_v59 = vrot.slane %v478_v48, 2  ;;  %v485_v60 = vadd.f32 %v484_v49, %v483_v39  ;;  %v553_v61 = vmul.f32 0.0625, %v447_v52  ;;  %v468_v16 = vadd.f32 %v467_v4, %v466_v57 }
  0xbf   : > { %v461_v3 = vadd.f32 %v460_v56, %v459_v46  ;;  %v4084_v23 = vsub.f32 %v4005_v43, %v554_v11  ;;  %v475_v28 = vadd.f32 %v474_v14, %v473_v1 }
  0xc0   : > { %v480_v7 = vadd.f32 %v479_v59, %v478_v48  ;;  %v486_v8 = vrot.slane %v485_v60, 2  ;;  %v4074_v9 = vsub.f32 %v3994_v35, %v553_v61  ;;  %v4077_v10 = vsub.f32 %v3996_v36, %v553_v61  ;;  %v3397_v36 = vld [vmem:[#allocation8 + $0xc0] sm:$0xff]  }
  0xc1   : > { %v555_v15 = vmul.f32 0.0625, %v461_v3  ;;  %v4087_v35 = vsub.f32 %v4007_v44, %v554_v11  ;;  %v556_v27 = vmul.f32 0.0625, %v468_v16  ;;  %v603_v30 = vmul.f32 %v4084_v23, %v4084_v23  ;;  %3154 = vmatprep.subr.bf16.mxu1 %v3397_v36 }
  0xc2   : > { %v481_v17 = vrot.slane %v480_v7, 1  ;;  %v487_v18 = vadd.f32 %v486_v8, %v485_v60  ;;  %v601_v20 = vmul.f32 %v4074_v9, %v4074_v9  ;;  %v602_v22 = vmul.f32 %v4077_v10, %v4077_v10 }
  0xc3   : > { %v4090_v24 = vsub.f32 %v4012_v50, %v555_v15  ;;  %v4093_v25 = vsub.f32 %v4014_v51, %v555_v15  ;;  %v604_v43 = vmul.f32 %v4087_v35, %v4087_v35  ;;  %v4104_v51 = vsub.f32 %v4022_v58, %v556_v27 }
  0xc4   : > { %v633_v29 = vadd.f32 %v602_v22, %v601_v20  ;;  %v482_v31 = vadd.f32 %v481_v17, %v480_v7  ;;  %v4107_v32 = vsub.f32 %v4028_v62, %v556_v27  ;;  %v557_v38 = vmul.f32 0.0625, %v475_v28 }
  0xc5   : > { %v605_v44 = vmul.f32 %v4090_v24, %v4090_v24  ;;  %v606_v50 = vmul.f32 %v4093_v25, %v4093_v25  ;;  %v640_v37 = vadd.f32 %v604_v43, %v603_v30  ;;  %v607_v41 = vmul.f32 %v4104_v51, %v4104_v51 }
  0xc6   : > { %v634_v34 = vrot.slane %v633_v29, 4  ;;  %v558_v39 = vmul.f32 0.0625, %v482_v31  ;;  %v608_v42 = vmul.f32 %v4107_v32, %v4107_v32  ;;  %v488_v46 = vrot.slane %v487_v18, 1 }
  0xc7   : > { %v647_v40 = vadd.f32 %v606_v50, %v605_v44  ;;  %v641_v48 = vrot.slane %v640_v37, 4  ;;  %v4114_v58 = vsub.f32 %v4033_v5, %v557_v38  ;;  %v4117_v62 = vsub.f32 %v4035_v6, %v557_v38 }
  0xc8   : > { %v635_v47 = vadd.f32 %v634_v34, %v633_v29  ;;  %v654_v52 = vadd.f32 %v608_v42, %v607_v41  ;;  %v4120_v53 = vsub.f32 %v4042_v12, %v558_v39  ;;  %v4123_v54 = vsub.f32 %v4044_v13, %v558_v39 }
  0xc9   : > { %v648_v49 = vrot.slane %v647_v40, 4  ;;  %v642_v57 = vadd.f32 %v641_v48, %v640_v37  ;;  %v609_v59 = vmul.f32 %v4114_v58, %v4114_v58  ;;  %v610_v5 = vmul.f32 %v4117_v62, %v4117_v62 }
  0xca   : > { %v636_v56 = vrot.slane %v635_v47, 2  ;;  %v655_v61 = vrot.slane %v654_v52, 4  ;;  %v611_v6 = vmul.f32 %v4120_v53, %v4120_v53  ;;  %v612_v12 = vmul.f32 %v4123_v54, %v4123_v54 }
  0xcb   : > { %v649_v60 = vadd.f32 %v648_v49, %v647_v40  ;;  %v643_v1 = vrot.slane %v642_v57, 2  ;;  %v661_v13 = vadd.f32 %v610_v5, %v609_v59  ;;  %v489_v3 = vadd.f32 %v488_v46, %v487_v18  ;;  %v361_v40 = vld [vmem:[%s3966_s10 + $0x80] sm:$0xff]  ;;  %v394_v59 = vld [vmem:[%s3974_s20 + $0x88] sm:$0xff]  ;;  %v363_v5 = vld [vmem:[%s3966_s10 + $0x90] sm:$0xff] }
  0xcc   : > { %v637_v63 = vadd.f32 %v636_v56, %v635_v47  ;;  %v656_v7 = vadd.f32 %v655_v61, %v654_v52  ;;  %v668_v8 = vadd.f32 %v612_v12, %v611_v6  ;;  %v492_v11 = vadd.f32 %v491_v2, %v4070_v55  ;;  %v393_v47 = vld [vmem:[%s3974_s20 + $0x80] sm:$0xff] }
  0xcd   : > { %v650_v4 = vrot.slane %v649_v60, 2  ;;  %v644_v15 = vadd.f32 %v643_v1, %v642_v57  ;;  %v662_v16 = vrot.slane %v661_v13, 4  ;;  %v559_v17 = vmul.f32 0.0625, %v489_v3  ;;  %v362_v57 = vld [vmem:[%s3966_s10 + $0x88] sm:$0xff] }
  0xce   : > { %v638_v14 = vrot.slane %v637_v63, 1  ;;  %v657_v20 = vrot.slane %v656_v7, 2  ;;  %v669_v22 = vrot.slane %v668_v8, 4  ;;  %v493_v36 = vrot.slane %v492_v11, 2 }
  0xcf   : > { %v651_v19 = vadd.f32 %v650_v4, %v649_v60  ;;  %v645_v28 = vrot.slane %v644_v15, 1  ;;  %v663_v29 = vadd.f32 %v662_v16, %v661_v13  ;;  %v4137_v18 = vsub.f32 %v4052_v21, %v559_v17  ;;  %v395_v60 = vld [vmem:[%s3974_s20 + $0x90] sm:$0xff] }
  0xd0   : > { %v639_v27 = vadd.f32 %v638_v14, %v637_v63  ;;  %v658_v43 = vadd.f32 %v657_v20, %v656_v7  ;;  %v670_v31 = vadd.f32 %v669_v22, %v668_v8  ;;  %v4140_v55 = vsub.f32 %v4057_v26, %v559_v17  ;;  %v364_v63 = vld [vmem:[%s3966_s10 + $0x98] sm:$0xff] }
  0xd1   : > { %v652_v30 = vrot.slane %v651_v19, 1  ;;  %v646_v44 = vadd.f32 %v645_v28, %v644_v15  ;;  %v664_v50 = vrot.slane %v663_v29, 2  ;;  %v613_v34 = vmul.f32 %v4137_v18, %v4137_v18  ;;  %v396_v7 = vld [vmem:[%s3974_s20 + $0x98] sm:$0xff] }
  0xd2   : > { %v745_v2 = vmul.f32 0.0625, %v639_v27  ;;  %v659_v38 = vrot.slane %v658_v43, 1  ;;  %v671_v21 = vrot.slane %v670_v31, 2  ;;  %v614_v39 = vmul.f32 %v4140_v55, %v4140_v55 }
  0xd3   : > { %v653_v37 = vadd.f32 %v652_v30, %v651_v19  ;;  %v746_v26 = vmul.f32 0.0625, %v646_v44  ;;  %v665_v42 = vadd.f32 %v664_v50, %v663_v29  ;;  %v494_v46 = vadd.f32 %v493_v36, %v492_v11  ;;  %v365_v44 = vld [vmem:[%s3966_s10 + $0xa0] sm:$0xff] }
  0xd4   : > { %v761_v41 = vadd.f32 1e-05, %v745_v2  ;;  %v660_v49 = vadd.f32 %v659_v38, %v658_v43  ;;  %v672_v52 = vadd.f32 %v671_v21, %v670_v31  ;;  %v675_v56 = vadd.f32 %v614_v39, %v613_v34  ;;  %v4174_v50 = vld [vmem:[%s5289_s5 + $0x1] ss:$0 sm:$0xff] }
  0xd5   : > { %v747_v48 = vmul.f32 0.0625, %v653_v37  ;;  %v762_v61 = vadd.f32 1e-05, %v746_v26  ;;  %v666_v6 = vrot.slane %v665_v42, 1  ;;  %v495_v12 = vrot.slane %v494_v46, 1  ;;  %v397_v21 = vld [vmem:[%s3974_s20 + $0xa0] sm:$0xff] }
  0xd6   : > { %3427 = vrsqrt.f32 %v761_v41  ;;  %v748_v13 = vmul.f32 0.0625, %v660_v49  ;;  %v673_v3 = vrot.slane %v672_v52, 1  ;;  %v676_v4 = vrot.slane %v675_v56, 4 }
  0xd7   : > { %v763_v1 = vadd.f32 1e-05, %v747_v48  ;;  %3429 = vrsqrt.f32 %v762_v61  ;;  %v667_v8 = vadd.f32 %v666_v6, %v665_v42  ;;  %v496_v11 = vadd.f32 %v495_v12, %v494_v46  ;;  %v4188_v46 = vld [vmem:[%s5289_s5 + $0x2] ss:$0 sm:$0xff]  ;;  %v368_v6 = vld [vmem:[%s3966_s10 + $0xb8] sm:$0xff]  ;;  %v399_v12 = vld [vmem:[%s3974_s20 + $0xb0] sm:$0xff] }
  0xd8   : > { %v4154_v14 = vadd.f32 %v393_v47, %v361_v40  ;;  %v764_v15 = vadd.f32 1e-05, %v748_v13  ;;  %v674_v16 = vadd.f32 %v673_v3, %v672_v52  ;;  %v677_v17 = vadd.f32 %v676_v4, %v675_v56  ;;  %v366_v52 = vld [vmem:[%s3966_s10 + $0xa8] sm:$0xff] }
  0xd9   : > { %3431 = vrsqrt.f32 %v763_v1  ;;  %v749_v19 = vmul.f32 0.0625, %v667_v8  ;;  %v560_v20 = vmul.f32 0.0625, %v496_v11  ;;  %v4156_v22 = vadd.f32 %v394_v59, %v362_v57  ;;  %v398_v56 = vld [vmem:[%s3974_s20 + $0xa8] sm:$0xff]  ;;  %v367_v59 = vld [vmem:[%s3966_s10 + $0xb0] sm:$0xff] }
  0xda   : > { %v4158_v36 = vadd.f32 %v395_v60, %v363_v5  ;;  %3433 = vrsqrt.f32 %v764_v15  ;;  %v750_v27 = vmul.f32 0.0625, %v674_v16  ;;  %v678_v28 = vrot.slane %v677_v17, 2 }
  0xdb   : > { %v4160_v29 = vadd.f32 %v396_v7, %v364_v63  ;;  %v765_v30 = vadd.f32 1e-05, %v749_v19  ;;  %v4163_v43 = vsub.f32 %v4062_v33, %v560_v20  ;;  %v4166_v31 = vsub.f32 %v4066_v45, %v560_v20  ;;  %v400_v63 = vld [vmem:[%s3974_s20 + $0xb8] sm:$0xff] }
  0xdc   : > { %v497_v2 = vadd.f32 %v4156_v22, %v4154_v14  ;;  %v766_v34 = vadd.f32 1e-05, %v750_v27  ;;  %v679_v37 = vadd.f32 %v678_v28, %v677_v17  ;;  %v4192_v57 = vadd.f32 %v397_v21, %v365_v44  ;;  %v3396_v28 = vld [vmem:[#allocation8] sm:$0xff]  }
  0xdd   : > { %v615_v38 = vmul.f32 %v4163_v43, %v4163_v43  ;;  %v616_v33 = vmul.f32 %v4166_v31, %v4166_v31  ;;  %3435 = vrsqrt.f32 %v765_v30  ;;  %v504_v41 = vadd.f32 %v4160_v29, %v4158_v36  ;;  %v3398_v30 = vld [vmem:[#allocation8 + $0x80] sm:$0xff]  }
  0xde   : > { %v498_v45 = vrot.slane %v497_v2, 4  ;;  %3437 = vrsqrt.f32 %v766_v34  ;;  %v680_v48 = vrot.slane %v679_v37, 1  ;;  %v4212_v16 = vadd.f32 %v398_v56, %v366_v52 }
  0xdf   : > { %v682_v40 = vadd.f32 %v616_v33, %v615_v38  ;;  %v505_v4 = vrot.slane %v504_v41, 4  ;;  %v4214_v17 = vadd.f32 %v399_v12, %v367_v59  ;;  %v3399_v38 = vld [vmem:[#allocation8 + $0x48] sm:$0xff]  }
  0xe0   : > { %v3428_v39 = vpop.eup %3427  ;;  %v499_v3 = vadd.f32 %v498_v45, %v497_v2  ;;  %v681_v27 = vadd.f32 %v680_v48, %v679_v37  ;;  %v511_v37 = vadd.f32 %v4212_v16, %v4192_v57 }
  0xe1   : > { %v793_v26 = vmul.f32 %v3428_v39, %v4074_v9  ;;  %v794_v42 = vmul.f32 %v3428_v39, %v4077_v10  ;;  %v3430_v47 = vpop.eup %3429  ;;  %v683_v49 = vrot.slane %v682_v40, 4  ;;  %v506_v34 = vadd.f32 %v505_v4, %v504_v41  ;;  %v3401_v39 = vld [vmem:[#allocation8 + $0xc8] sm:$0xff]  }
  0xe2   : > { %v795_v60 = vmul.f32 %v3430_v47, %v4084_v23  ;;  %v796_v61 = vmul.f32 %v3430_v47, %v4087_v35  ;;  %v500_v44 = vrot.slane %v499_v3, 2  ;;  %v3400_v47 = vld [vmem:[#allocation8 + $0x8] sm:$0xff]  }
  0xe3   : > { %v3432_v9 = vpop.eup %3431  ;;  %v830_v5 = vmul.f32 %v4174_v50, %v793_v26  ;;  %v831_v10 = vmul.f32 %v4174_v50, %v794_v42  ;;  %v684_v15 = vadd.f32 %v683_v49, %v682_v40  ;;  %v751_v42 = vmul.f32 0.0625, %v681_v27  ;;  %v3406_v27 = vld [vmem:[#allocation8 + $0x90] sm:$0xff]  }
  0xe4   : > { %v797_v1 = vmul.f32 %v3432_v9, %v4090_v24  ;;  %v798_v13 = vmul.f32 %v3432_v9, %v4093_v25  ;;  %v3434_v7 = vpop.eup %3433  ;;  %v832_v23 = vmul.f32 %v4174_v50, %v795_v60  ;;  %v833_v35 = vmul.f32 %v4174_v50, %v796_v61  ;;  %v3402_v9 = vld [vmem:[#allocation8 + $0x88] sm:$0xff]  }
  0xe5   : > { %v4205_v8 = vadd.f32 %v4188_v46, %v830_v5  ;;  %v4208_v11 = vadd.f32 %v4188_v46, %v831_v10  ;;  %v4216_v24 = vadd.f32 %v400_v63, %v368_v6  ;;  %v799_v2 = vmul.f32 %v3434_v7, %v4104_v51  ;;  %v3403_v5 = vld [vmem:[#allocation8 + $0x50] sm:$0xff]  }
  0xe6   : > { %v834_v19 = vmul.f32 %v4174_v50, %v797_v1  ;;  %v835_v20 = vmul.f32 %v4174_v50, %v798_v13  ;;  %v4224_v33 = vadd.f32 %v4188_v46, %v832_v23  ;;  %v4227_v45 = vadd.f32 %v4188_v46, %v833_v35  ;;  %v369_v23 = vld [vmem:[%s3966_s10 + $0xc0] sm:$0xff]  ;;  %v3404_v35 = vld [vmem:[#allocation8 + $0x10] sm:$0xff]  }
  0xe7   : > { %v899_v25 = vpack.c.bf16 %v4208_v11, %v4205_v8  ;;  %v800_v21 = vmul.f32 %v3434_v7, %v4107_v32  ;;  %v3436_v40 = vpop.eup %3435  ;;  %v685_v51 = vrot.slane %v684_v15, 2  ;;  %v518_v32 = vadd.f32 %v4216_v24, %v4214_v17 }
  0xe8   : > { %v4235_v41 = vadd.f32 %v4188_v46, %v834_v19  ;;  %v4238_v26 = vadd.f32 %v4188_v46, %v835_v20  ;;  %v3438_v48 = vpop.eup %3437  ;;  %v836_v49 = vmul.f32 %v4174_v50, %v799_v2  ;;  %v501_v56 = vadd.f32 %v500_v44, %v499_v3  ;;  %v370_v20 = vld [vmem:[%s3966_s10 + $0xc8] sm:$0xff] }
  0xe9   : > { %1162 = vmatmul.mubr.bf16.vlgmr.msra.gmra.mrb[0].mxu0 %v899_v25  ;;  %1355 = vmatmul.mubr.bf16.vlgmr.msra.gmra.mrb[0].mxu1 %v899_v25  ;;  %v686_v52 = vadd.f32 %v685_v51, %v684_v15  ;;  %v507_v59 = vrot.slane %v506_v34, 2  ;;  %v900_v10 = vpack.c.bf16 %v4227_v45, %v4224_v33  ;;  %v837_v60 = vmul.f32 %v4174_v50, %v800_v21  ;;  %v3405_v15 = vld [vmem:[#allocation8 + $0xd0] sm:$0xff]   ;;  %v3409_v21 = vld [vmem:[#allocation8 + $0xd8] sm:$0xff]  }
  0xea   : > { %1171 = vmatprep.mubr.bf16.mxu0 %v3700_v0  ;;  %1364 = vmatprep.mubr.bf16.mxu1 %v3700_v0  ;;  %v801_v61 = vmul.f32 %v3436_v40, %v4114_v58  ;;  %v802_v6 = vmul.f32 %v3436_v40, %v4117_v62  ;;  %v502_v12 = vrot.slane %v501_v56, 1  ;;  %v512_v1 = vrot.slane %v511_v37, 4 }
  0xeb   : > { %3043 = vmatpush3.bf16.msra.mxu0 %v3396_v28  ;;  %3155 = vmatpush3.bf16.msra.mxu1 %v3398_v30  ;;  %v508_v63 = vadd.f32 %v507_v59, %v506_v34  ;;  %v4250_v13 = vpack.c.bf16 %v4238_v26, %v4235_v41  ;;  %v767_v3 = vadd.f32 1e-05, %v751_v42  ;;  %v687_v4 = vrot.slane %v686_v52, 1  ;;  %v3407_v28 = vld [vmem:[#allocation8 + $0x58] sm:$0xff]   ;;  %v401_v34 = vld [vmem:[%s3974_s20 + $0xc0] sm:$0xff]  ;;  %v371_v42 = vld [vmem:[%s3966_s10 + $0xd0] sm:$0xff] }
  0xec   : > { %3044 = vmatprep.subr.bf16.mxu0 %v3399_v38  ;;  %3156 = vmatprep.subr.bf16.mxu1 %v3401_v39  ;;  %v519_v7 = vrot.slane %v518_v32, 4  ;;  %v4254_v58 = vadd.f32 %v4188_v46, %v836_v49  ;;  %v503_v62 = vadd.f32 %v502_v12, %v501_v56  ;;  %v513_v19 = vadd.f32 %v512_v1, %v511_v37  ;;  %v402_v38 = vld [vmem:[%s3974_s20 + $0xc8] sm:$0xff]  ;;  %v3411_v12 = vld [vmem:[#allocation8 + $0x60] sm:$0xff]  }
  0xed   : > { %v509_v25 = vrot.slane %v508_v63, 1  ;;  %v4258_v30 = vadd.f32 %v4188_v46, %v837_v60  ;;  %v838_v2 = vmul.f32 %v4174_v50, %v801_v61  ;;  %v839_v39 = vmul.f32 %v4174_v50, %v802_v6 }
  0xee   : > { %v520_v44 = vadd.f32 %v519_v7, %v518_v32  ;;  %v561_v40 = vmul.f32 0.0625, %v503_v62  ;;  %v514_v37 = vrot.slane %v513_v19, 2  ;;  %v803_v49 = vmul.f32 %v3438_v48, %v4120_v53  ;;  %v3410_v53 = vld [vmem:[#allocation8 + $0x98] sm:$0xff]   ;;  %v3413_v62 = vld [vmem:[#allocation8 + $0xe0] sm:$0xff]  }
  0xef   : > { %3045 = vmatpush3.bf16.msra.mxu0 %v3400_v47  ;;  %3157 = vmatpush3.bf16.msra.mxu1 %v3402_v9  ;;  %v510_v51 = vadd.f32 %v509_v25, %v508_v63  ;;  %v372_v47 = vld [vmem:[%s3966_s10 + $0xd8] sm:$0xff]  ;;  %v804_v32 = vmul.f32 %v3438_v48, %v4123_v54  ;;  %v688_v56 = vadd.f32 %v687_v4, %v686_v52  ;;  %v403_v9 = vld [vmem:[%s3974_s20 + $0xd0] sm:$0xff]  ;;  %3439 = vrsqrt.f32 %v767_v3 }
  0xf0   : > { %3046 = vmatprep.subr.bf16.mxu0 %v3403_v5  ;;  %v521_v59 = vrot.slane %v520_v44, 2  ;;  %v404_v5 = vld [vmem:[%s3974_s20 + $0xd8] sm:$0xff]  ;;  %3158 = vmatprep.subr.bf16.mxu1 %v3405_v15  ;;  %v4273_v60 = vsub.f32 %v4154_v14, %v561_v40  ;;  %v4275_v61 = vadd.f32 %v401_v34, %v369_v23  ;;  %v4277_v6 = vadd.f32 %v402_v38, %v370_v20  ;;  %v3412_v15 = vld [vmem:[#allocation8 + $0x20] sm:$0xff]   ;;  %v3417_v38 = vld [vmem:[#allocation8 + $0xe8] sm:$0xff]  }
  0xf1   : > { %1172 = vmatmul.mubr.bf16.gmra.mrb[4].mxu0 %v900_v10  ;;  %1365 = vmatmul.mubr.bf16.gmra.mrb[4].mxu1 %v900_v10  ;;  %v3408_v10 = vld [vmem:[#allocation8 + $0x18] sm:$0xff]   ;;  %v4280_v54 = vsub.f32 %v4156_v22, %v561_v40  ;;  %v562_v48 = vmul.f32 0.0625, %v510_v51  ;;  %v515_v52 = vadd.f32 %v514_v37, %v513_v19  ;;  %v4284_v1 = vpack.c.bf16 %v4258_v30, %v4254_v58 }
  0xf2   : > { %1181 = vmatprep.mubr.bf16.mxu0 %v3700_v0  ;;  %1374 = vmatprep.mubr.bf16.mxu1 %v3700_v0  ;;  %v522_v63 = vadd.f32 %v521_v59, %v520_v44  ;;  %v617_v14 = vmul.f32 %v4273_v60, %v4273_v60  ;;  %v4288_v3 = vadd.f32 %v403_v9, %v371_v42 }
  0xf3   : > { %3047 = vmatpush3.bf16.msra.mxu0 %v3404_v35  ;;  %3159 = vmatpush3.bf16.msra.mxu1 %v3406_v27  ;;  %v4290_v4 = vadd.f32 %v404_v5, %v372_v47  ;;  %v618_v7 = vmul.f32 %v4280_v54, %v4280_v54  ;;  %v4295_v22 = vsub.f32 %v4158_v36, %v562_v48  ;;  %v516_v35 = vrot.slane %v515_v52, 1  ;;  %v3414_v36 = vld [vmem:[#allocation8 + $0xa0] sm:$0xff]  }
  0xf4   : > { %3048 = vmatprep.subr.bf16.mxu0 %v3407_v28  ;;  %3160 = vmatprep.subr.bf16.mxu1 %v3409_v21  ;;  %v4298_v23 = vsub.f32 %v4160_v29, %v562_v48  ;;  %v4301_v25 = vadd.f32 %v4188_v46, %v838_v2  ;;  %v840_v19 = vmul.f32 %v4174_v50, %v803_v49  ;;  %v523_v20 = vrot.slane %v522_v63, 1  ;;  %v3415_v28 = vld [vmem:[#allocation8 + $0x68] sm:$0xff]  }
  0xf5   : > { %v525_v27 = vadd.f32 %v4277_v6, %v4275_v61  ;;  %v752_v29 = vmul.f32 0.0625, %v688_v56  ;;  %v689_v44 = vadd.f32 %v618_v7, %v617_v14  ;;  %v619_v2 = vmul.f32 %v4295_v22, %v4295_v22  ;;  %v3416_v56 = vld [vmem:[#allocation8 + $0x28] sm:$0xff]  }
  0xf6   : > { %v620_v34 = vmul.f32 %v4298_v23, %v4298_v23  ;;  %v4315_v21 = vadd.f32 %v4188_v46, %v839_v39  ;;  %v517_v40 = vadd.f32 %v516_v35, %v515_v52  ;;  %v524_v51 = vadd.f32 %v523_v20, %v522_v63 }
  0xf7   : > { %3049 = vmatpush3.bf16.msra.mxu0 %v3408_v10  ;;  %3161 = vmatpush3.bf16.msra.mxu1 %v3410_v53  ;;  %v526_v37 = vrot.slane %v525_v27, 4  ;;  %v690_v42 = vrot.slane %v689_v44, 4  ;;  %v532_v49 = vadd.f32 %v4290_v4, %v4288_v3  ;;  %v4321_v59 = vadd.f32 %v4188_v46, %v840_v19  ;;  %v3418_v10 = vld [vmem:[#allocation8 + $0xa8] sm:$0xff]  }
  0xf8   : > { %3050 = vmatprep.subr.bf16.mxu0 %v3411_v12  ;;  %v696_v47 = vadd.f32 %v620_v34, %v619_v2  ;;  %3162 = vmatprep.subr.bf16.mxu1 %v3413_v62  ;;  %v563_v9 = vmul.f32 0.0625, %v517_v40  ;;  %v564_v39 = vmul.f32 0.0625, %v524_v51  ;;  %v374_v62 = vld [vmem:[%s3966_s10 + $0xe8] sm:$0xff]  ;;  %v3420_v34 = vld [vmem:[#allocation8 + $0x30] sm:$0xff]  }
  0xf9   : > { %1182 = vmatmul.mubr.bf16.gmra.mrb[8].mxu0 %v4250_v13  ;;  %1375 = vmatmul.mubr.bf16.gmra.mrb[8].mxu1 %v4250_v13  ;;  %v841_v13 = vmul.f32 %v4174_v50, %v804_v32  ;;  %v527_v5 = vadd.f32 %v526_v37, %v525_v27  ;;  %v768_v32 = vadd.f32 1e-05, %v752_v29  ;;  %v691_v53 = vadd.f32 %v690_v42, %v689_v44  ;;  %v4323_v52 = vpop.eup %3439  ;;  %v3421_v29 = vld [vmem:[#allocation8 + $0xf0] sm:$0xff]   ;;  %v406_v2 = vld [vmem:[%s3974_s20 + $0xe8] sm:$0xff]  ;;  %v3423_v42 = vld [vmem:[#allocation8 + $0x78] sm:$0xff]  }
  0xfa   : > { %1191 = vmatprep.mubr.bf16.mxu0 %v3700_v0  ;;  %1384 = vmatprep.mubr.bf16.mxu1 %v3700_v0  ;;  %v697_v12 = vrot.slane %v696_v47, 4  ;;  %v533_v48 = vrot.slane %v532_v49, 4  ;;  %v4326_v63 = vsub.f32 %v4192_v57, %v563_v9  ;;  %v4329_v14 = vsub.f32 %v4212_v16, %v563_v9  ;;  %v3419_v57 = vld [vmem:[#allocation8 + $0x70] sm:$0xff]  }
  0xfb   : > { %3051 = vmatpush3.bf16.msra.mxu0 %v3412_v15  ;;  %3163 = vmatpush3.bf16.msra.mxu1 %v3414_v36  ;;  %v4332_v7 = vsub.f32 %v4214_v17, %v564_v39  ;;  %v4335_v35 = vsub.f32 %v4216_v24, %v564_v39  ;;  %v373_v15 = vld [vmem:[%s3966_s10 + $0xe0] sm:$0xff]  ;;  %v692_v19 = vrot.slane %v691_v53, 2  ;;  %v528_v27 = vrot.slane %v527_v5, 2 }
  0xfc   : > { %3052 = vmatprep.subr.bf16.mxu0 %v3415_v28  ;;  %3164 = vmatprep.subr.bf16.mxu1 %v3417_v38  ;;  %v698_v20 = vadd.f32 %v697_v12, %v696_v47  ;;  %v534_v36 = vadd.f32 %v533_v48, %v532_v49  ;;  %v405_v28 = vld [vmem:[%s3974_s20 + $0xe0] sm:$0xff]  ;;  %v621_v16 = vmul.f32 %v4326_v63, %v4326_v63  ;;  %v3422_v38 = vld [vmem:[#allocation8 + $0xb0] sm:$0xff]   ;;  %3441 = vrsqrt.f32 %v768_v32  ;;  %v3425_v47 = vld [vmem:[#allocation8 + $0xf8] sm:$0xff]  }
  0xfd   : > { %v622_v17 = vmul.f32 %v4329_v14, %v4329_v14  ;;  %v623_v24 = vmul.f32 %v4332_v7, %v4332_v7  ;;  %v624_v44 = vmul.f32 %v4335_v35, %v4335_v35  ;;  %v4352_v40 = vadd.f32 %v4188_v46, %v841_v13 }
  0xfe   : > { %v693_v51 = vadd.f32 %v692_v19, %v691_v53  ;;  %v699_v37 = vrot.slane %v698_v20, 2  ;;  %v529_v9 = vadd.f32 %v528_v27, %v527_v5  ;;  %v535_v39 = vrot.slane %v534_v36, 2 }
  0xff   : > { %3053 = vmatpush3.bf16.msra.mxu0 %v3416_v56  ;;  %3165 = vmatpush3.bf16.msra.mxu1 %v3418_v10  ;;  %v703_v49 = vadd.f32 %v622_v17, %v621_v16  ;;  %v710_v56 = vadd.f32 %v624_v44, %v623_v24  ;;  %v4356_v48 = vadd.f32 %v405_v28, %v373_v15  ;;  %v3424_v16 = vld [vmem:[#allocation8 + $0x38] sm:$0xff]   ;;  %v407_v24 = vld [vmem:[%s3974_s20 + $0xf0] sm:$0xff] }
 0x100   : > { %v694_v10 = vrot.slane %v693_v51, 1  ;;  %v700_v12 = vadd.f32 %v699_v37, %v698_v20  ;;  %3054 = vmatprep.subr.bf16.mxu0 %v3419_v57  ;;  %3166 = vmatprep.subr.bf16.mxu1 %v3421_v29  ;;  %v530_v53 = vrot.slane %v529_v9, 1  ;;  %v536_v19 = vadd.f32 %v535_v39, %v534_v36  ;;  %v3426_v17 = vld [vmem:[#allocation8 + $0xb8] sm:$0xff]   ;;  %v375_v29 = vld [vmem:[%s3966_s10 + $0xf0] sm:$0xff] }
 0x101   : > { %1192 = vmatmul.mubr.bf16.gmra.mrb[12].mxu0 %v4284_v1  ;;  %1385 = vmatmul.mubr.bf16.gmra.mrb[12].mxu1 %v4284_v1  ;;  %v4358_v1 = vadd.f32 %v406_v2, %v374_v62  ;;  %v704_v13 = vrot.slane %v703_v49, 4  ;;  %v711_v32 = vrot.slane %v710_v56, 4  ;;  %v903_v5 = vpack.c.bf16 %v4315_v21, %v4301_v25  ;;  %v376_v37 = vld [vmem:[%s3966_s10 + $0xf8] sm:$0xff]  ;;  %s4834_s10 = scalar_lea.vmem [#allocation10], %s3962_s16 }
 0x102   : > { %1201 = vmatprep.mubr.bf16.mxu0 %v3700_v0  ;;  %1394 = vmatprep.mubr.bf16.mxu1 %v3700_v0  ;;  %v904_v15 = vpack.c.bf16 %v4352_v40, %v4321_v59  ;;  %v695_v62 = vadd.f32 %v694_v10, %v693_v51  ;;  %v701_v20 = vrot.slane %v700_v12, 1  ;;  %v531_v36 = vadd.f32 %v530_v53, %v529_v9  ;;  %v408_v39 = vld [vmem:[%s3974_s20 + $0xf8] sm:$0xff]  ;;  %s2827_s15 = sshll.u32 %s4834_s10, 4  ;;  %s5238_s15 = int_to_ptr.vmem [resolvable:$true] %s2827_s15 }
 0x103   : > { %3055 = vmatpush3.bf16.msra.mxu0 %v3420_v34  ;;  %3167 = vmatpush3.bf16.msra.mxu1 %v3422_v38  ;;  %v705_v27 = vadd.f32 %v704_v13, %v703_v49  ;;  %v712_v28 = vadd.f32 %v711_v32, %v710_v56  ;;  %v537_v57 = vrot.slane %v536_v19, 1  ;;  %v805_v44 = vmul.f32 %v4323_v52, %v4137_v18  ;;  %s3610_s13 = scalar_lea.vmem %s5238_s15, 4096  ;;  %p3617_p4 = scmp.lt.s32.totalorder %s5238_s15, %s3615_s8 }
 0x104   : > { %3056 = vmatprep.subr.bf16.mxu0 %v3423_v42  ;;  %3168 = vmatprep.subr.bf16.mxu1 %v3425_v47  ;;  %v753_v2 = vmul.f32 0.0625, %v695_v62  ;;  %v702_v34 = vadd.f32 %v701_v20, %v700_v12  ;;  %v539_v38 = vadd.f32 %v4358_v1, %v4356_v48  ;;  %v806_v51 = vmul.f32 %v4323_v52, %v4140_v55  ;;  %p3611_p2 = scmp.ne.s32.totalorder %s5238_s15, %s3610_s13  ;;  %p3618_p7 = scmp.lt.s32.totalorder %s3616_s9, %s3610_s13 }
 0x105   : > { %v706_v42 = vrot.slane %v705_v27, 2  ;;  %v565_v47 = vmul.f32 0.0625, %v531_v36  ;;  %v538_v49 = vadd.f32 %v537_v57, %v536_v19  ;;  %v713_v9 = vrot.slane %v712_v28, 2 }
 0x106   : > { %v769_v56 = vadd.f32 1e-05, %v753_v2  ;;  %v540_v18 = vrot.slane %v539_v38, 4  ;;  %v4374_v10 = vadd.f32 %v407_v24, %v375_v29  ;;  %v4381_v52 = vadd.f32 %v408_v39, %v376_v37  ;;  %v3442_v32 = vpop.eup %3441  ;;  %p3612_p6 = pnand %p3611_p2, %p5318_p13  ;;  %p3619_p3 = por %p3618_p7, %p3617_p4 }
 0x107   : > { %3057 = vmatpush3.bf16.msra.mxu0 %v3424_v16  ;;  %3169 = vmatpush3.bf16.msra.mxu1 %v3426_v17  ;;  %v707_v12 = vadd.f32 %v706_v42, %v705_v27  ;;  %v4379_v13 = vsub.f32 %v4275_v61, %v565_v47  ;;  %v566_v55 = vmul.f32 0.0625, %v538_v49  ;;  %v754_v53 = vmul.f32 0.0625, %v702_v34 }
 0x108   : > { %3443 = vrsqrt.f32 %v769_v56  ;;  %v4384_v19 = vsub.f32 %v4277_v6, %v565_v47  ;;  %v541_v16 = vadd.f32 %v540_v18, %v539_v38  ;;  %v842_v17 = vmul.f32 %v4174_v50, %v805_v44  ;;  %p3613_p10 = pneg %p3612_p6 }
 0x109   : > { %1202 = vmatmul.mubr.bf16.gmra.mrb[16].mxu0 %v903_v5  ;;  %1395 = vmatmul.mubr.bf16.gmra.mrb[16].mxu1 %v903_v5  ;;  %v708_v5 = vrot.slane %v707_v12, 1  ;;  %v625_v62 = vmul.f32 %v4379_v13, %v4379_v13  ;;  %v4390_v20 = vsub.f32 %v4288_v3, %v566_v55  ;;  %v843_v61 = vmul.f32 %v4174_v50, %v806_v51 }
 0x10a   : > { %1211 = vmatprep.mubr.bf16.mxu0 %v3700_v0  ;;  %1404 = vmatprep.mubr.bf16.mxu1 %v3700_v0  ;;  %v626_v27 = vmul.f32 %v4384_v19, %v4384_v19  ;;  %v4396_v36 = vsub.f32 %v4290_v4, %v566_v55  ;;  %v542_v6 = vrot.slane %v541_v16, 2  ;;  %v807_v57 = vmul.f32 %v3442_v32, %v4163_v43  ;;  %p3620_p5 = pnand %p3619_p3, %p3613_p10 }
 0x10b   : > { %v714_v29 = vadd.f32 %v713_v9, %v712_v28  ;;  %v627_v24 = vmul.f32 %v4390_v20, %v4390_v20  ;;  %v546_v44 = vadd.f32 %v4381_v52, %v4374_v10  ;;  %v770_v3 = vadd.f32 1e-05, %v754_v53 }
 0x10c   : > { %v717_v2 = vadd.f32 %v626_v27, %v625_v62  ;;  %v628_v34 = vmul.f32 %v4396_v36, %v4396_v36  ;;  %v543_v38 = vadd.f32 %v542_v6, %v541_v16  ;;  %v4406_v37 = vadd.f32 %v4188_v46, %v842_v17 }
 0x10d   : > { %v808_v4 = vmul.f32 %v3442_v32, %v4166_v31  ;;  %v709_v39 = vadd.f32 %v708_v5, %v707_v12  ;;  %v547_v43 = vrot.slane %v546_v44, 4  ;;  %v4410_v28 = vadd.f32 %v4188_v46, %v843_v61 }
 0x10e   : > { %v718_v51 = vrot.slane %v717_v2, 4  ;;  %v724_v42 = vadd.f32 %v628_v34, %v627_v24  ;;  %v544_v47 = vrot.slane %v543_v38, 1  ;;  %v844_v49 = vmul.f32 %v4174_v50, %v807_v57 }
 0x10f   : > { %v715_v56 = vrot.slane %v714_v29, 1  ;;  %v548_v9 = vadd.f32 %v547_v43, %v546_v44  ;;  %3445 = vrsqrt.f32 %v770_v3  ;;  %v755_v55 = vmul.f32 0.0625, %v709_v39 }
 0x110   : > { %v719_v31 = vadd.f32 %v718_v51, %v717_v2  ;;  %v725_v18 = vrot.slane %v724_v42, 4  ;;  %v545_v12 = vadd.f32 %v544_v47, %v543_v38  ;;  %v905_v16 = vpack.c.bf16 %v4410_v28, %v4406_v37 }
 0x111   : > { %1212 = vmatmul.mubr.bf16.gmra.mrb[20].mxu0 %v904_v15  ;;  %1405 = vmatmul.mubr.bf16.gmra.mrb[20].mxu1 %v904_v15  ;;  %v845_v15 = vmul.f32 %v4174_v50, %v808_v4  ;;  %v549_v32 = vrot.slane %v548_v9, 2  ;;  %v716_v62 = vadd.f32 %v715_v56, %v714_v29  ;;  %v4419_v27 = vadd.f32 %v4188_v46, %v844_v49 }
 0x112   : > { %1221 = vmatprep.mubr.bf16.mxu0 %v3700_v0  ;;  %1414 = vmatprep.mubr.bf16.mxu1 %v3700_v0  ;;  %v3444_v53 = vpop.eup %3443  ;;  %v720_v17 = vrot.slane %v719_v31, 2  ;;  %v567_v5 = vmul.f32 0.0625, %v545_v12  ;;  %v726_v6 = vadd.f32 %v725_v18, %v724_v42  ;;  %v771_v2 = vadd.f32 1e-05, %v755_v55 }
 0x113   : > { %v550_v61 = vadd.f32 %v549_v32, %v548_v9  ;;  %v4428_v44 = vadd.f32 %v4188_v46, %v845_v15  ;;  %v809_v3 = vmul.f32 %v3444_v53, %v4273_v60  ;;  %v810_v29 = vmul.f32 %v3444_v53, %v4280_v54 }
 0x114   : > { %v4422_v57 = vsub.f32 %v4356_v48, %v567_v5  ;;  %v4425_v24 = vsub.f32 %v4358_v1, %v567_v5  ;;  %v721_v34 = vadd.f32 %v720_v17, %v719_v31  ;;  %v756_v1 = vmul.f32 0.0625, %v716_v62 }
 0x115   : > { %v551_v4 = vrot.slane %v550_v61, 1  ;;  %v727_v39 = vrot.slane %v726_v6, 2  ;;  %3447 = vrsqrt.f32 %v771_v2  ;;  %v906_v54 = vpack.c.bf16 %v4428_v44, %v4419_v27 }
 0x116   : > { %v629_v38 = vmul.f32 %v4422_v57, %v4422_v57  ;;  %v630_v48 = vmul.f32 %v4425_v24, %v4425_v24  ;;  %v722_v43 = vrot.slane %v721_v34, 1  ;;  %v846_v47 = vmul.f32 %v4174_v50, %v809_v3 }
 0x117   : > { %v552_v51 = vadd.f32 %v551_v4, %v550_v61  ;;  %v847_v49 = vmul.f32 %v4174_v50, %v810_v29  ;;  %v772_v9 = vadd.f32 1e-05, %v756_v1  ;;  %v728_v18 = vadd.f32 %v727_v39, %v726_v6 }
 0x118   : > { %v731_v60 = vadd.f32 %v630_v48, %v629_v38  ;;  %v723_v55 = vadd.f32 %v722_v43, %v721_v34  ;;  %v4445_v53 = vadd.f32 %v4188_v46, %v846_v47 }
 0x119   : > { %1222 = vmatmul.mubr.bf16.gmra.mrb[24].mxu0 %v905_v16  ;;  %1415 = vmatmul.mubr.bf16.gmra.mrb[24].mxu1 %v905_v16  ;;  %v3446_v42 = vpop.eup %3445  ;;  %v568_v31 = vmul.f32 0.0625, %v552_v51  ;;  %v4448_v16 = vadd.f32 %v4188_v46, %v847_v49  ;;  %3449 = vrsqrt.f32 %v772_v9 }
 0x11a   : > { %1231 = vmatprep.mubr.bf16.mxu0 %v3700_v0  ;;  %1424 = vmatprep.mubr.bf16.mxu1 %v3700_v0  ;;  %v732_v56 = vrot.slane %v731_v60, 4  ;;  %v811_v12 = vmul.f32 %v3446_v42, %v4295_v22  ;;  %v812_v15 = vmul.f32 %v3446_v42, %v4298_v23  ;;  %v729_v22 = vrot.slane %v728_v18, 1 }
 0x11b   : > { %v4451_v17 = vsub.f32 %v4374_v10, %v568_v31  ;;  %v4456_v5 = vsub.f32 %v4381_v52, %v568_v31  ;;  %v757_v6 = vmul.f32 0.0625, %v723_v55  ;;  %v907_v10 = vpack.c.bf16 %v4448_v16, %v4445_v53 }
 0x11c   : > { %v733_v32 = vadd.f32 %v732_v56, %v731_v60  ;;  %v848_v61 = vmul.f32 %v4174_v50, %v811_v12  ;;  %v849_v3 = vmul.f32 %v4174_v50, %v812_v15  ;;  %v730_v29 = vadd.f32 %v729_v22, %v728_v18 }
 0x11d   : > { %v631_v62 = vmul.f32 %v4451_v17, %v4451_v17  ;;  %v632_v2 = vmul.f32 %v4456_v5, %v4456_v5  ;;  %v773_v1 = vadd.f32 1e-05, %v757_v6 }
 0x11e   : > { %v734_v23 = vrot.slane %v733_v32, 2  ;;  %v4467_v52 = vadd.f32 %v4188_v46, %v848_v61  ;;  %v4470_v4 = vadd.f32 %v4188_v46, %v849_v3  ;;  %v758_v51 = vmul.f32 0.0625, %v730_v29 }
 0x11f   : > { %v3448_v34 = vpop.eup %3447  ;;  %v738_v48 = vadd.f32 %v632_v2, %v631_v62  ;;  %3451 = vrsqrt.f32 %v773_v1 }
 0x120   : > { %v735_v38 = vadd.f32 %v734_v23, %v733_v32  ;;  %v813_v39 = vmul.f32 %v3448_v34, %v4326_v63  ;;  %v814_v60 = vmul.f32 %v3448_v34, %v4329_v14  ;;  %v908_v49 = vpack.c.bf16 %v4470_v4, %v4467_v52 }
 0x121   : > { %1232 = vmatmul.mubr.bf16.gmra.mrb[28].mxu0 %v906_v54  ;;  %1425 = vmatmul.mubr.bf16.gmra.mrb[28].mxu1 %v906_v54  ;;  %v739_v43 = vrot.slane %v738_v48, 4  ;;  %v774_v31 = vadd.f32 1e-05, %v758_v51 }
 0x122   : > { %1241 = vmatprep.mubr.bf16.mxu0 %v3700_v0  ;;  %1434 = vmatprep.mubr.bf16.mxu1 %v3700_v0  ;;  %v736_v42 = vrot.slane %v735_v38, 1  ;;  %v850_v56 = vmul.f32 %v4174_v50, %v813_v39  ;;  %v851_v9 = vmul.f32 %v4174_v50, %v814_v60 }
 0x123   : > { %v740_v54 = vadd.f32 %v739_v43, %v738_v48  ;;  %v3450_v47 = vpop.eup %3449  ;;  %3453 = vrsqrt.f32 %v774_v31 }
 0x124   : > { %v737_v14 = vadd.f32 %v736_v42, %v735_v38  ;;  %v815_v18 = vmul.f32 %v3450_v47, %v4332_v7  ;;  %v4482_v15 = vadd.f32 %v4188_v46, %v850_v56  ;;  %v4485_v55 = vadd.f32 %v4188_v46, %v851_v9 }
 0x125   : > { %v741_v63 = vrot.slane %v740_v54, 2  ;;  %v816_v32 = vmul.f32 %v3450_v47, %v4335_v35 }
 0x126   : > { %v759_v22 = vmul.f32 0.0625, %v737_v14  ;;  %v852_v23 = vmul.f32 %v4174_v50, %v815_v18  ;;  %v909_v62 = vpack.c.bf16 %v4485_v55, %v4482_v15 }
 0x127   : > { %v742_v12 = vadd.f32 %v741_v63, %v740_v54  ;;  %v853_v61 = vmul.f32 %v4174_v50, %v816_v32 }
 0x128   : > { %v4495_v3 = vadd.f32 %v4188_v46, %v852_v23 }
 0x129   : > { %1242 = vmatmul.mubr.bf16.gmra.mrb[32].mxu0 %v907_v10  ;;  %1435 = vmatmul.mubr.bf16.gmra.mrb[32].mxu1 %v907_v10  ;;  %v743_v7 = vrot.slane %v742_v12, 1  ;;  %v3452_v6 = vpop.eup %3451  ;;  %v775_v10 = vadd.f32 1e-05, %v759_v22  ;;  %v4498_v2 = vadd.f32 %v4188_v46, %v853_v61 }
 0x12a   : > { %1251 = vmatprep.mubr.bf16.mxu0 %v3700_v0  ;;  %1444 = vmatprep.mubr.bf16.mxu1 %v3700_v0  ;;  %v817_v34 = vmul.f32 %v3452_v6, %v4379_v13  ;;  %v818_v29 = vmul.f32 %v3452_v6, %v4384_v19  ;;  %v949_v6 = vlaneseq }
 0x12b   : > { %v744_v35 = vadd.f32 %v743_v7, %v742_v12  ;;  %3455 = vrsqrt.f32 %v775_v10  ;;  %v910_v1 = vpack.c.bf16 %v4498_v2, %v4495_v3 }
 0x12c   : > { %v854_v39 = vmul.f32 %v4174_v50, %v817_v34  ;;  %v855_v60 = vmul.f32 %v4174_v50, %v818_v29  ;;  %v950_v10 = vshrl.u32 %v949_v6, 7  ;;  %v947_v34 = vld [vmem:[%s5287_s3] sm:$0xf] }
 0x12d   : > { %v760_v38 = vmul.f32 0.0625, %v744_v35  ;;  %v3454_v48 = vpop.eup %3453 }
 0x12e   : > { %v819_v43 = vmul.f32 %v3454_v48, %v4390_v20  ;;  %v4510_v13 = vadd.f32 %v4188_v46, %v854_v39  ;;  %v4513_v19 = vadd.f32 %v4188_v46, %v855_v60  ;;  %v820_v42 = vmul.f32 %v3454_v48, %v4396_v36 }
 0x12f   : > { %v776_v51 = vadd.f32 1e-05, %v760_v38  ;;  %v959_v35 = vsub.s32 2, %v950_v10  ;;  %v955_v29 = vsub.s32 1, %v950_v10 }
 0x130   : > { %v911_v20 = vpack.c.bf16 %v4513_v19, %v4510_v13  ;;  %v856_v47 = vmul.f32 %v4174_v50, %v819_v43 }
 0x131   : > { %1252 = vmatmul.mubr.bf16.gmra.mrb[36].mxu0 %v908_v49  ;;  %1445 = vmatmul.mubr.bf16.gmra.mrb[36].mxu1 %v908_v49  ;;  %3457 = vrsqrt.f32 %v776_v51  ;;  %v857_v49 = vmul.f32 %v4174_v50, %v820_v42  ;;  %v4565_v48 = vrot.slane %v947_v34, %v959_v35 }
 0x132   : > { %1261 = vmatprep.mubr.bf16.mxu0 %v3700_v0  ;;  %1454 = vmatprep.mubr.bf16.mxu1 %v3700_v0  ;;  %v4524_v9 = vadd.f32 %v4188_v46, %v856_v47 }
 0x133   : > { %v4527_v36 = vadd.f32 %v4188_v46, %v857_v49 }
 0x135   : > { %v3456_v54 = vpop.eup %3455  ;;  %v912_v14 = vpack.c.bf16 %v4527_v36, %v4524_v9 }
 0x136   : > { %v821_v56 = vmul.f32 %v3456_v54, %v4422_v57  ;;  %v822_v63 = vmul.f32 %v3456_v54, %v4425_v24 }
 0x138   : > { %v858_v31 = vmul.f32 %v4174_v50, %v821_v56  ;;  %v859_v57 = vmul.f32 %v4174_v50, %v822_v63 }
 0x139   : > { %1262 = vmatmul.mubr.bf16.gmra.mrb[40].mxu0 %v909_v62  ;;  %1455 = vmatmul.mubr.bf16.gmra.mrb[40].mxu1 %v909_v62 }
 0x13a   : > { %1271 = vmatprep.mubr.bf16.mxu0 %v3700_v0  ;;  %1464 = vmatprep.mubr.bf16.mxu1 %v3700_v0  ;;  %v4537_v12 = vadd.f32 %v4188_v46, %v858_v31  ;;  %v4540_v32 = vadd.f32 %v4188_v46, %v859_v57 }
 0x13b   : > { %v3458_v18 = vpop.eup %3457 }
 0x13c   : > { %v823_v24 = vmul.f32 %v3458_v18, %v4451_v17  ;;  %v824_v22 = vmul.f32 %v3458_v18, %v4456_v5  ;;  %v913_v23 = vpack.c.bf16 %v4540_v32, %v4537_v12 }
 0x13e   : > { %v860_v7 = vmul.f32 %v4174_v50, %v823_v24  ;;  %v861_v62 = vmul.f32 %v4174_v50, %v824_v22  ;;  %v951_v50 = vsub.s32 0, %v950_v10 }
 0x140   : > { %v4551_v61 = vadd.f32 %v4188_v46, %v860_v7  ;;  %v4554_v17 = vadd.f32 %v4188_v46, %v861_v62  ;;  %v963_v46 = vsub.s32 3, %v950_v10  ;;  %v4563_v38 = vrot.slane %v947_v34, %v951_v50 }
 0x141   : > { %1272 = vmatmul.mubr.bf16.gmra.mrb[44].mxu0 %v910_v1  ;;  %1465 = vmatmul.mubr.bf16.gmra.mrb[44].mxu1 %v910_v1 }
 0x142   : > { %1281 = vmatprep.mubr.bf16.mxu0 %v3700_v0  ;;  %1474 = vmatprep.mubr.bf16.mxu1 %v3700_v0  ;;  %5314 = vst [vmem:[#allocation16_spill] sm:$0xff] %v4551_v61  ;;  %5315 = vst [vmem:[#allocation17_spill] sm:$0xff] %v4554_v17  ;;  %v914_v5 = vpack.c.bf16 %v4554_v17, %v4551_v61  ;;  %v4569_v1 = vrot.slane %v947_v34, %v963_v46 }
 0x149   : > { %1282 = vmatmul.mubr.bf16.gmra.mrb[48].mxu0 %v911_v20  ;;  %1475 = vmatmul.mubr.bf16.gmra.mrb[48].mxu1 %v911_v20 }
 0x14a   : > { %1291 = vmatprep.mubr.bf16.mxu0 %v3700_v0  ;;  %1484 = vmatprep.mubr.bf16.mxu1 %v3700_v0 }
 0x151   : > { %1292 = vmatmul.mubr.bf16.gmra.mrb[52].mxu0 %v912_v14  ;;  %1485 = vmatmul.mubr.bf16.gmra.mrb[52].mxu1 %v912_v14 }
 0x152   : > { %1301 = vmatprep.mubr.bf16.mxu0 %v3700_v0  ;;  %1494 = vmatprep.mubr.bf16.mxu1 %v3700_v0 }
 0x159   : > { %1302 = vmatmul.mubr.bf16.gmra.mrb[56].mxu0 %v913_v23  ;;  %1495 = vmatmul.mubr.bf16.gmra.mrb[56].mxu1 %v913_v23 }
 0x15a   : > { %1311 = vmatprep.mubr.bf16.mxu0 %v3700_v0  ;;  %1504 = vmatprep.mubr.bf16.mxu1 %v3700_v0  ;;  %v4567_v0 = vrot.slane %v947_v34, %v955_v29 }
 0x161   : > { %1312 = vmatmul.mubr.bf16.gmra.mrb[60].mxu0 %v914_v5  ;;  %1505 = vmatmul.mubr.bf16.gmra.mrb[60].mxu1 %v914_v5 }
 0x1bc   : > { %v1163_v39 = vpop.f32.mrb[0].mxu0  ;;  %v1356_v60 = vpop.f32.mrb[0].mxu1 }
 0x1bd   : > { %v1164_v43 = vadd.f32 %v1163_v39, %v4563_v38  ;;  %v1357_v51 = vadd.f32 %v1356_v60, %v4565_v48  ;;  %v1165_v42 = vpop.f32.mrb[1].mxu0  ;;  %v1358_v54 = vpop.f32.mrb[1].mxu1 }
 0x1be   : > { %v1166_v20 = vadd.f32 %v1165_v42, %v4567_v0  ;;  %v1359_v47 = vadd.f32 %v1358_v54, %v4569_v1  ;;  %v1167_v49 = vpop.f32.mrb[2].mxu0  ;;  %v1360_v56 = vpop.f32.mrb[2].mxu1 }
 0x1bf   : > { %v1517_v63 = vmax.f32 %v1357_v51, 0.0  ;;  %v1168_v31 = vadd.f32 %v1167_v49, %v4563_v38  ;;  %v1361_v14 = vadd.f32 %v1360_v56, %v4565_v48  ;;  %v1169_v57 = vpop.f32.mrb[3].mxu0  ;;  %v1362_v18 = vpop.f32.mrb[3].mxu1  ;;  %v1515_v7 = vmax.f32 %v1164_v43, 0.0 }
 0x1c0   : > { %v1518_v24 = vmax.f32 %v1359_v47, 0.0  ;;  %v1170_v22 = vadd.f32 %v1169_v57, %v4567_v0  ;;  %v1363_v23 = vadd.f32 %v1362_v18, %v4569_v1  ;;  %v1516_v6 = vmax.f32 %v1166_v20, 0.0 }
 0x1c1   : > { %v1519_v62 = vmax.f32 %v1168_v31, 0.0  ;;  %v1521_v5 = vmax.f32 %v1361_v14, 0.0 }
 0x1c2   : > { %v1520_v10 = vmax.f32 %v1170_v22, 0.0  ;;  %v1522_v50 = vmax.f32 %v1363_v23, 0.0 }
 0x1c3   : > { %v1643_v35 = vpack.c.bf16 %v1519_v62, %v1515_v7  ;;  %v1645_v34 = vpack.c.bf16 %v1521_v5, %v1517_v63 }
 0x1c4   : > { %v1644_v29 = vpack.c.bf16 %v1520_v10, %v1516_v6  ;;  %v1646_v46 = vpack.c.bf16 %v1522_v50, %v1518_v24  ;;  %v1173_v39 = vpop.f32.mrb[4].mxu0  ;;  %v1366_v60 = vpop.f32.mrb[4].mxu1 }
 0x1c5   : > { %v1174_v51 = vadd.f32 %v1173_v39, %v4563_v38  ;;  %v1367_v42 = vadd.f32 %v1366_v60, %v4565_v48  ;;  %v1175_v54 = vpop.f32.mrb[5].mxu0  ;;  %v1368_v47 = vpop.f32.mrb[5].mxu1 }
 0x1c6   : > { %v1176_v49 = vadd.f32 %v1175_v54, %v4567_v0  ;;  %v1369_v43 = vadd.f32 %v1368_v47, %v4569_v1  ;;  %v1177_v56 = vpop.f32.mrb[6].mxu0  ;;  %v1370_v20 = vpop.f32.mrb[6].mxu1  ;;  %2000 = vmatprep.mubr.bf16.mxu0 %v1644_v29  ;;  %2161 = vmatprep.mubr.bf16.mxu1 %v1646_v46 }
 0x1c7   : > { %v1525_v31 = vmax.f32 %v1367_v42, 0.0  ;;  %v1178_v63 = vadd.f32 %v1177_v56, %v4563_v38  ;;  %v1371_v14 = vadd.f32 %v1370_v20, %v4565_v48  ;;  %v1179_v57 = vpop.f32.mrb[7].mxu0  ;;  %v1372_v18 = vpop.f32.mrb[7].mxu1  ;;  %2001 = vmatmul.mubr.bf16.vlgmr.msra.gmra.mrb[64].mxu0 %v1643_v35  ;;  %2162 = vmatmul.mubr.bf16.vlgmr.msra.gmra.mrb[64].mxu1 %v1645_v34  ;;  %v1523_v7 = vmax.f32 %v1174_v51, 0.0 }
 0x1c8   : > { %v1526_v24 = vmax.f32 %v1369_v43, 0.0  ;;  %v1180_v22 = vadd.f32 %v1179_v57, %v4567_v0  ;;  %v1373_v23 = vadd.f32 %v1372_v18, %v4569_v1  ;;  %v1524_v6 = vmax.f32 %v1176_v49, 0.0 }
 0x1c9   : > { %v1527_v62 = vmax.f32 %v1178_v63, 0.0  ;;  %v1529_v5 = vmax.f32 %v1371_v14, 0.0 }
 0x1ca   : > { %v1528_v10 = vmax.f32 %v1180_v22, 0.0  ;;  %v1530_v50 = vmax.f32 %v1373_v23, 0.0 }
 0x1cb   : > { %v1647_v29 = vpack.c.bf16 %v1527_v62, %v1523_v7  ;;  %v1649_v46 = vpack.c.bf16 %v1529_v5, %v1525_v31 }
 0x1cc   : > { %v1648_v39 = vpack.c.bf16 %v1528_v10, %v1524_v6  ;;  %v1650_v60 = vpack.c.bf16 %v1530_v50, %v1526_v24  ;;  %v1183_v42 = vpop.f32.mrb[8].mxu0  ;;  %v1376_v54 = vpop.f32.mrb[8].mxu1 }
 0x1cd   : > { %v1184_v35 = vadd.f32 %v1183_v42, %v4563_v38  ;;  %v1377_v34 = vadd.f32 %v1376_v54, %v4565_v48  ;;  %v1185_v47 = vpop.f32.mrb[9].mxu0  ;;  %v1378_v43 = vpop.f32.mrb[9].mxu1 }
 0x1ce   : > { %v1186_v56 = vadd.f32 %v1185_v47, %v4567_v0  ;;  %v1379_v51 = vadd.f32 %v1378_v43, %v4569_v1  ;;  %v1187_v20 = vpop.f32.mrb[10].mxu0  ;;  %v1380_v49 = vpop.f32.mrb[10].mxu1  ;;  %2008 = vmatprep.mubr.bf16.mxu0 %v1648_v39  ;;  %2169 = vmatprep.mubr.bf16.mxu1 %v1650_v60 }
 0x1cf   : > { %v1533_v63 = vmax.f32 %v1377_v34, 0.0  ;;  %v1188_v31 = vadd.f32 %v1187_v20, %v4563_v38  ;;  %v1381_v14 = vadd.f32 %v1380_v49, %v4565_v48  ;;  %v1189_v57 = vpop.f32.mrb[11].mxu0  ;;  %v1382_v18 = vpop.f32.mrb[11].mxu1  ;;  %2009 = vmatmul.mubr.bf16.gmra.mrb[68].mxu0 %v1647_v29  ;;  %2170 = vmatmul.mubr.bf16.gmra.mrb[68].mxu1 %v1649_v46  ;;  %v1531_v7 = vmax.f32 %v1184_v35, 0.0 }
 0x1d0   : > { %v1534_v24 = vmax.f32 %v1379_v51, 0.0  ;;  %v1190_v22 = vadd.f32 %v1189_v57, %v4567_v0  ;;  %v1383_v23 = vadd.f32 %v1382_v18, %v4569_v1  ;;  %v1532_v6 = vmax.f32 %v1186_v56, 0.0 }
 0x1d1   : > { %v1535_v62 = vmax.f32 %v1188_v31, 0.0  ;;  %v1537_v5 = vmax.f32 %v1381_v14, 0.0 }
 0x1d2   : > { %v1536_v10 = vmax.f32 %v1190_v22, 0.0  ;;  %v1538_v50 = vmax.f32 %v1383_v23, 0.0 }
 0x1d3   : > { %v1651_v39 = vpack.c.bf16 %v1535_v62, %v1531_v7  ;;  %v1653_v60 = vpack.c.bf16 %v1537_v5, %v1533_v63 }
 0x1d4   : > { %v1652_v42 = vpack.c.bf16 %v1536_v10, %v1532_v6  ;;  %v1654_v54 = vpack.c.bf16 %v1538_v50, %v1534_v24  ;;  %v1193_v34 = vpop.f32.mrb[12].mxu0  ;;  %v1386_v47 = vpop.f32.mrb[12].mxu1 }
 0x1d5   : > { %v1194_v29 = vadd.f32 %v1193_v34, %v4563_v38  ;;  %v1387_v46 = vadd.f32 %v1386_v47, %v4565_v48  ;;  %v1195_v43 = vpop.f32.mrb[13].mxu0  ;;  %v1388_v51 = vpop.f32.mrb[13].mxu1 }
 0x1d6   : > { %v1196_v20 = vadd.f32 %v1195_v43, %v4567_v0  ;;  %v1389_v35 = vadd.f32 %v1388_v51, %v4569_v1  ;;  %v1197_v49 = vpop.f32.mrb[14].mxu0  ;;  %v1390_v56 = vpop.f32.mrb[14].mxu1  ;;  %2016 = vmatprep.mubr.bf16.mxu0 %v1652_v42  ;;  %2177 = vmatprep.mubr.bf16.mxu1 %v1654_v54 }
 0x1d7   : > { %v1541_v31 = vmax.f32 %v1387_v46, 0.0  ;;  %v1198_v63 = vadd.f32 %v1197_v49, %v4563_v38  ;;  %v1391_v14 = vadd.f32 %v1390_v56, %v4565_v48  ;;  %v1199_v57 = vpop.f32.mrb[15].mxu0  ;;  %v1392_v18 = vpop.f32.mrb[15].mxu1  ;;  %2017 = vmatmul.mubr.bf16.gmra.mrb[72].mxu0 %v1651_v39  ;;  %2178 = vmatmul.mubr.bf16.gmra.mrb[72].mxu1 %v1653_v60  ;;  %v1539_v7 = vmax.f32 %v1194_v29, 0.0 }
 0x1d8   : > { %v1542_v24 = vmax.f32 %v1389_v35, 0.0  ;;  %v1200_v22 = vadd.f32 %v1199_v57, %v4567_v0  ;;  %v1393_v23 = vadd.f32 %v1392_v18, %v4569_v1  ;;  %v1540_v6 = vmax.f32 %v1196_v20, 0.0 }
 0x1d9   : > { %v1543_v62 = vmax.f32 %v1198_v63, 0.0  ;;  %v1545_v5 = vmax.f32 %v1391_v14, 0.0 }
 0x1da   : > { %v1544_v10 = vmax.f32 %v1200_v22, 0.0  ;;  %v1546_v50 = vmax.f32 %v1393_v23, 0.0 }
 0x1db   : > { %v1655_v42 = vpack.c.bf16 %v1543_v62, %v1539_v7  ;;  %v1657_v54 = vpack.c.bf16 %v1545_v5, %v1541_v31 }
 0x1dc   : > { %v1656_v34 = vpack.c.bf16 %v1544_v10, %v1540_v6  ;;  %v1658_v47 = vpack.c.bf16 %v1546_v50, %v1542_v24  ;;  %v1203_v46 = vpop.f32.mrb[16].mxu0  ;;  %v1396_v43 = vpop.f32.mrb[16].mxu1 }
 0x1dd   : > { %v1204_v39 = vadd.f32 %v1203_v46, %v4563_v38  ;;  %v1397_v60 = vadd.f32 %v1396_v43, %v4565_v48  ;;  %v1205_v51 = vpop.f32.mrb[17].mxu0  ;;  %v1398_v35 = vpop.f32.mrb[17].mxu1 }
 0x1de   : > { %v1206_v49 = vadd.f32 %v1205_v51, %v4567_v0  ;;  %v1399_v29 = vadd.f32 %v1398_v35, %v4569_v1  ;;  %v1207_v56 = vpop.f32.mrb[18].mxu0  ;;  %v1400_v20 = vpop.f32.mrb[18].mxu1  ;;  %2024 = vmatprep.mubr.bf16.mxu0 %v1656_v34  ;;  %2185 = vmatprep.mubr.bf16.mxu1 %v1658_v47 }
 0x1df   : > { %v1549_v63 = vmax.f32 %v1397_v60, 0.0  ;;  %v1208_v31 = vadd.f32 %v1207_v56, %v4563_v38  ;;  %v1401_v14 = vadd.f32 %v1400_v20, %v4565_v48  ;;  %v1209_v57 = vpop.f32.mrb[19].mxu0  ;;  %v1402_v18 = vpop.f32.mrb[19].mxu1  ;;  %2025 = vmatmul.mubr.bf16.gmra.mrb[76].mxu0 %v1655_v42  ;;  %2186 = vmatmul.mubr.bf16.gmra.mrb[76].mxu1 %v1657_v54  ;;  %v1547_v7 = vmax.f32 %v1204_v39, 0.0 }
 0x1e0   : > { %v1550_v24 = vmax.f32 %v1399_v29, 0.0  ;;  %v1210_v22 = vadd.f32 %v1209_v57, %v4567_v0  ;;  %v1403_v23 = vadd.f32 %v1402_v18, %v4569_v1  ;;  %v1548_v6 = vmax.f32 %v1206_v49, 0.0 }
 0x1e1   : > { %v1551_v62 = vmax.f32 %v1208_v31, 0.0  ;;  %v1553_v5 = vmax.f32 %v1401_v14, 0.0 }
 0x1e2   : > { %v1552_v10 = vmax.f32 %v1210_v22, 0.0  ;;  %v1554_v50 = vmax.f32 %v1403_v23, 0.0 }
 0x1e3   : > { %v1659_v34 = vpack.c.bf16 %v1551_v62, %v1547_v7  ;;  %v1661_v47 = vpack.c.bf16 %v1553_v5, %v1549_v63 }
 0x1e4   : > { %v1660_v46 = vpack.c.bf16 %v1552_v10, %v1548_v6  ;;  %v1662_v43 = vpack.c.bf16 %v1554_v50, %v1550_v24  ;;  %v1213_v60 = vpop.f32.mrb[20].mxu0  ;;  %v1406_v51 = vpop.f32.mrb[20].mxu1 }
 0x1e5   : > { %v1214_v42 = vadd.f32 %v1213_v60, %v4563_v38  ;;  %v1407_v54 = vadd.f32 %v1406_v51, %v4565_v48  ;;  %v1215_v35 = vpop.f32.mrb[21].mxu0  ;;  %v1408_v29 = vpop.f32.mrb[21].mxu1 }
 0x1e6   : > { %v1216_v56 = vadd.f32 %v1215_v35, %v4567_v0  ;;  %v1409_v39 = vadd.f32 %v1408_v29, %v4569_v1  ;;  %v1217_v20 = vpop.f32.mrb[22].mxu0  ;;  %v1410_v49 = vpop.f32.mrb[22].mxu1  ;;  %2032 = vmatprep.mubr.bf16.mxu0 %v1660_v46  ;;  %2193 = vmatprep.mubr.bf16.mxu1 %v1662_v43 }
 0x1e7   : > { %v1557_v31 = vmax.f32 %v1407_v54, 0.0  ;;  %v1218_v63 = vadd.f32 %v1217_v20, %v4563_v38  ;;  %v1411_v14 = vadd.f32 %v1410_v49, %v4565_v48  ;;  %v1219_v57 = vpop.f32.mrb[23].mxu0  ;;  %v1412_v18 = vpop.f32.mrb[23].mxu1  ;;  %2033 = vmatmul.mubr.bf16.gmra.mrb[80].mxu0 %v1659_v34  ;;  %2194 = vmatmul.mubr.bf16.gmra.mrb[80].mxu1 %v1661_v47  ;;  %v1555_v7 = vmax.f32 %v1214_v42, 0.0 }
 0x1e8   : > { %v1558_v24 = vmax.f32 %v1409_v39, 0.0  ;;  %v1220_v22 = vadd.f32 %v1219_v57, %v4567_v0  ;;  %v1413_v23 = vadd.f32 %v1412_v18, %v4569_v1  ;;  %v1556_v6 = vmax.f32 %v1216_v56, 0.0 }
 0x1e9   : > { %v1559_v62 = vmax.f32 %v1218_v63, 0.0  ;;  %v1561_v5 = vmax.f32 %v1411_v14, 0.0 }
 0x1ea   : > { %v1560_v10 = vmax.f32 %v1220_v22, 0.0  ;;  %v1562_v50 = vmax.f32 %v1413_v23, 0.0 }
 0x1eb   : > { %v1663_v46 = vpack.c.bf16 %v1559_v62, %v1555_v7  ;;  %v1665_v43 = vpack.c.bf16 %v1561_v5, %v1557_v31 }
 0x1ec   : > { %v1664_v60 = vpack.c.bf16 %v1560_v10, %v1556_v6  ;;  %v1666_v51 = vpack.c.bf16 %v1562_v50, %v1558_v24  ;;  %v1223_v54 = vpop.f32.mrb[24].mxu0  ;;  %v1416_v35 = vpop.f32.mrb[24].mxu1 }
 0x1ed   : > { %v1224_v34 = vadd.f32 %v1223_v54, %v4563_v38  ;;  %v1417_v47 = vadd.f32 %v1416_v35, %v4565_v48  ;;  %v1225_v29 = vpop.f32.mrb[25].mxu0  ;;  %v1418_v39 = vpop.f32.mrb[25].mxu1 }
 0x1ee   : > { %v1226_v20 = vadd.f32 %v1225_v29, %v4567_v0  ;;  %v1419_v42 = vadd.f32 %v1418_v39, %v4569_v1  ;;  %v1227_v49 = vpop.f32.mrb[26].mxu0  ;;  %v1420_v56 = vpop.f32.mrb[26].mxu1  ;;  %2040 = vmatprep.mubr.bf16.mxu0 %v1664_v60  ;;  %2201 = vmatprep.mubr.bf16.mxu1 %v1666_v51 }
 0x1ef   : > { %v1565_v63 = vmax.f32 %v1417_v47, 0.0  ;;  %v1228_v31 = vadd.f32 %v1227_v49, %v4563_v38  ;;  %v1421_v14 = vadd.f32 %v1420_v56, %v4565_v48  ;;  %v1229_v57 = vpop.f32.mrb[27].mxu0  ;;  %v1422_v18 = vpop.f32.mrb[27].mxu1  ;;  %2041 = vmatmul.mubr.bf16.gmra.mrb[84].mxu0 %v1663_v46  ;;  %2202 = vmatmul.mubr.bf16.gmra.mrb[84].mxu1 %v1665_v43  ;;  %v1563_v7 = vmax.f32 %v1224_v34, 0.0 }
 0x1f0   : > { %v1566_v24 = vmax.f32 %v1419_v42, 0.0  ;;  %v1230_v22 = vadd.f32 %v1229_v57, %v4567_v0  ;;  %v1423_v23 = vadd.f32 %v1422_v18, %v4569_v1  ;;  %v1564_v6 = vmax.f32 %v1226_v20, 0.0 }
 0x1f1   : > { %v1567_v62 = vmax.f32 %v1228_v31, 0.0  ;;  %v1569_v5 = vmax.f32 %v1421_v14, 0.0 }
 0x1f2   : > { %v1568_v10 = vmax.f32 %v1230_v22, 0.0  ;;  %v1570_v50 = vmax.f32 %v1423_v23, 0.0 }
 0x1f3   : > { %v1667_v60 = vpack.c.bf16 %v1567_v62, %v1563_v7  ;;  %v1669_v51 = vpack.c.bf16 %v1569_v5, %v1565_v63 }
 0x1f4   : > { %v1668_v54 = vpack.c.bf16 %v1568_v10, %v1564_v6  ;;  %v1670_v35 = vpack.c.bf16 %v1570_v50, %v1566_v24  ;;  %v1233_v47 = vpop.f32.mrb[28].mxu0  ;;  %v1426_v29 = vpop.f32.mrb[28].mxu1 }
 0x1f5   : > { %v1234_v46 = vadd.f32 %v1233_v47, %v4563_v38  ;;  %v1427_v43 = vadd.f32 %v1426_v29, %v4565_v48  ;;  %v1235_v39 = vpop.f32.mrb[29].mxu0  ;;  %v1428_v42 = vpop.f32.mrb[29].mxu1 }
 0x1f6   : > { %v1236_v49 = vadd.f32 %v1235_v39, %v4567_v0  ;;  %v1429_v34 = vadd.f32 %v1428_v42, %v4569_v1  ;;  %v1237_v56 = vpop.f32.mrb[30].mxu0  ;;  %v1430_v20 = vpop.f32.mrb[30].mxu1  ;;  %2048 = vmatprep.mubr.bf16.mxu0 %v1668_v54  ;;  %2209 = vmatprep.mubr.bf16.mxu1 %v1670_v35 }
 0x1f7   : > { %v1573_v31 = vmax.f32 %v1427_v43, 0.0  ;;  %v1238_v63 = vadd.f32 %v1237_v56, %v4563_v38  ;;  %v1431_v14 = vadd.f32 %v1430_v20, %v4565_v48  ;;  %v1239_v57 = vpop.f32.mrb[31].mxu0  ;;  %v1432_v18 = vpop.f32.mrb[31].mxu1  ;;  %2049 = vmatmul.mubr.bf16.gmra.mrb[88].mxu0 %v1667_v60  ;;  %2210 = vmatmul.mubr.bf16.gmra.mrb[88].mxu1 %v1669_v51  ;;  %v1571_v7 = vmax.f32 %v1234_v46, 0.0 }
 0x1f8   : > { %v1574_v24 = vmax.f32 %v1429_v34, 0.0  ;;  %v1240_v22 = vadd.f32 %v1239_v57, %v4567_v0  ;;  %v1433_v23 = vadd.f32 %v1432_v18, %v4569_v1  ;;  %v1572_v6 = vmax.f32 %v1236_v49, 0.0 }
 0x1f9   : > { %v1575_v62 = vmax.f32 %v1238_v63, 0.0  ;;  %v1577_v5 = vmax.f32 %v1431_v14, 0.0 }
 0x1fa   : > { %v1576_v10 = vmax.f32 %v1240_v22, 0.0  ;;  %v1578_v50 = vmax.f32 %v1433_v23, 0.0 }
 0x1fb   : > { %v1671_v54 = vpack.c.bf16 %v1575_v62, %v1571_v7  ;;  %v1673_v35 = vpack.c.bf16 %v1577_v5, %v1573_v31 }
 0x1fc   : > { %v1672_v47 = vpack.c.bf16 %v1576_v10, %v1572_v6  ;;  %v1674_v29 = vpack.c.bf16 %v1578_v50, %v1574_v24  ;;  %v1243_v43 = vpop.f32.mrb[32].mxu0  ;;  %v1436_v39 = vpop.f32.mrb[32].mxu1 }
 0x1fd   : > { %v1244_v60 = vadd.f32 %v1243_v43, %v4563_v38  ;;  %v1437_v51 = vadd.f32 %v1436_v39, %v4565_v48  ;;  %v1245_v42 = vpop.f32.mrb[33].mxu0  ;;  %v1438_v34 = vpop.f32.mrb[33].mxu1 }
 0x1fe   : > { %v1246_v56 = vadd.f32 %v1245_v42, %v4567_v0  ;;  %v1439_v46 = vadd.f32 %v1438_v34, %v4569_v1  ;;  %v1247_v20 = vpop.f32.mrb[34].mxu0  ;;  %v1440_v49 = vpop.f32.mrb[34].mxu1  ;;  %2056 = vmatprep.mubr.bf16.mxu0 %v1672_v47  ;;  %2217 = vmatprep.mubr.bf16.mxu1 %v1674_v29 }
 0x1ff   : > { %v1581_v63 = vmax.f32 %v1437_v51, 0.0  ;;  %v1248_v31 = vadd.f32 %v1247_v20, %v4563_v38  ;;  %v1441_v14 = vadd.f32 %v1440_v49, %v4565_v48  ;;  %v1249_v57 = vpop.f32.mrb[35].mxu0  ;;  %v1442_v18 = vpop.f32.mrb[35].mxu1  ;;  %2057 = vmatmul.mubr.bf16.gmra.mrb[92].mxu0 %v1671_v54  ;;  %2218 = vmatmul.mubr.bf16.gmra.mrb[92].mxu1 %v1673_v35  ;;  %v1579_v7 = vmax.f32 %v1244_v60, 0.0 }
 0x200   : > { %v1582_v24 = vmax.f32 %v1439_v46, 0.0  ;;  %v1250_v22 = vadd.f32 %v1249_v57, %v4567_v0  ;;  %v1443_v23 = vadd.f32 %v1442_v18, %v4569_v1  ;;  %v1580_v6 = vmax.f32 %v1246_v56, 0.0 }
 0x201   : > { %v1583_v62 = vmax.f32 %v1248_v31, 0.0  ;;  %v1585_v5 = vmax.f32 %v1441_v14, 0.0 }
 0x202   : > { %v1584_v10 = vmax.f32 %v1250_v22, 0.0  ;;  %v1586_v50 = vmax.f32 %v1443_v23, 0.0 }
 0x203   : > { %v1675_v47 = vpack.c.bf16 %v1583_v62, %v1579_v7  ;;  %v1677_v29 = vpack.c.bf16 %v1585_v5, %v1581_v63 }
 0x204   : > { %v1676_v43 = vpack.c.bf16 %v1584_v10, %v1580_v6  ;;  %v1678_v39 = vpack.c.bf16 %v1586_v50, %v1582_v24  ;;  %v1253_v51 = vpop.f32.mrb[36].mxu0  ;;  %v1446_v42 = vpop.f32.mrb[36].mxu1 }
 0x205   : > { %v1254_v54 = vadd.f32 %v1253_v51, %v4563_v38  ;;  %v1447_v35 = vadd.f32 %v1446_v42, %v4565_v48  ;;  %v1255_v34 = vpop.f32.mrb[37].mxu0  ;;  %v1448_v46 = vpop.f32.mrb[37].mxu1 }
 0x206   : > { %v1256_v20 = vadd.f32 %v1255_v34, %v4567_v0  ;;  %v1449_v60 = vadd.f32 %v1448_v46, %v4569_v1  ;;  %v1257_v49 = vpop.f32.mrb[38].mxu0  ;;  %v1450_v56 = vpop.f32.mrb[38].mxu1  ;;  %2064 = vmatprep.mubr.bf16.mxu0 %v1676_v43  ;;  %2225 = vmatprep.mubr.bf16.mxu1 %v1678_v39 }
 0x207   : > { %v1589_v31 = vmax.f32 %v1447_v35, 0.0  ;;  %v1258_v63 = vadd.f32 %v1257_v49, %v4563_v38  ;;  %v1451_v14 = vadd.f32 %v1450_v56, %v4565_v48  ;;  %v1259_v57 = vpop.f32.mrb[39].mxu0  ;;  %v1452_v18 = vpop.f32.mrb[39].mxu1  ;;  %2065 = vmatmul.mubr.bf16.gmra.mrb[96].mxu0 %v1675_v47  ;;  %2226 = vmatmul.mubr.bf16.gmra.mrb[96].mxu1 %v1677_v29  ;;  %v1587_v7 = vmax.f32 %v1254_v54, 0.0 }
 0x208   : > { %v1590_v24 = vmax.f32 %v1449_v60, 0.0  ;;  %v1260_v22 = vadd.f32 %v1259_v57, %v4567_v0  ;;  %v1453_v23 = vadd.f32 %v1452_v18, %v4569_v1  ;;  %v1588_v6 = vmax.f32 %v1256_v20, 0.0 }
 0x209   : > { %v1591_v62 = vmax.f32 %v1258_v63, 0.0  ;;  %v1593_v5 = vmax.f32 %v1451_v14, 0.0 }
 0x20a   : > { %v1592_v10 = vmax.f32 %v1260_v22, 0.0  ;;  %v1594_v50 = vmax.f32 %v1453_v23, 0.0 }
 0x20b   : > { %v1679_v43 = vpack.c.bf16 %v1591_v62, %v1587_v7  ;;  %v1681_v39 = vpack.c.bf16 %v1593_v5, %v1589_v31 }
 0x20c   : > { %v1680_v51 = vpack.c.bf16 %v1592_v10, %v1588_v6  ;;  %v1682_v42 = vpack.c.bf16 %v1594_v50, %v1590_v24  ;;  %v1263_v35 = vpop.f32.mrb[40].mxu0  ;;  %v1456_v34 = vpop.f32.mrb[40].mxu1 }
 0x20d   : > { %v1264_v47 = vadd.f32 %v1263_v35, %v4563_v38  ;;  %v1457_v29 = vadd.f32 %v1456_v34, %v4565_v48  ;;  %v1265_v46 = vpop.f32.mrb[41].mxu0  ;;  %v1458_v60 = vpop.f32.mrb[41].mxu1 }
 0x20e   : > { %v1266_v49 = vadd.f32 %v1265_v46, %v4567_v0  ;;  %v1459_v54 = vadd.f32 %v1458_v60, %v4569_v1  ;;  %v1267_v56 = vpop.f32.mrb[42].mxu0  ;;  %v1460_v20 = vpop.f32.mrb[42].mxu1  ;;  %2072 = vmatprep.mubr.bf16.mxu0 %v1680_v51  ;;  %2233 = vmatprep.mubr.bf16.mxu1 %v1682_v42 }
 0x20f   : > { %v1597_v63 = vmax.f32 %v1457_v29, 0.0  ;;  %v1268_v31 = vadd.f32 %v1267_v56, %v4563_v38  ;;  %v1461_v14 = vadd.f32 %v1460_v20, %v4565_v48  ;;  %v1269_v57 = vpop.f32.mrb[43].mxu0  ;;  %v1462_v18 = vpop.f32.mrb[43].mxu1  ;;  %2073 = vmatmul.mubr.bf16.gmra.mrb[100].mxu0 %v1679_v43  ;;  %2234 = vmatmul.mubr.bf16.gmra.mrb[100].mxu1 %v1681_v39  ;;  %v1595_v7 = vmax.f32 %v1264_v47, 0.0 }
 0x210   : > { %v1598_v24 = vmax.f32 %v1459_v54, 0.0  ;;  %v1270_v22 = vadd.f32 %v1269_v57, %v4567_v0  ;;  %v1463_v23 = vadd.f32 %v1462_v18, %v4569_v1  ;;  %v1596_v6 = vmax.f32 %v1266_v49, 0.0 }
 0x211   : > { %v1599_v62 = vmax.f32 %v1268_v31, 0.0  ;;  %v1601_v5 = vmax.f32 %v1461_v14, 0.0 }
 0x212   : > { %v1600_v10 = vmax.f32 %v1270_v22, 0.0  ;;  %v1602_v50 = vmax.f32 %v1463_v23, 0.0 }
 0x213   : > { %v1683_v51 = vpack.c.bf16 %v1599_v62, %v1595_v7  ;;  %v1685_v42 = vpack.c.bf16 %v1601_v5, %v1597_v63 }
 0x214   : > { %v1684_v35 = vpack.c.bf16 %v1600_v10, %v1596_v6  ;;  %v1686_v34 = vpack.c.bf16 %v1602_v50, %v1598_v24  ;;  %v1273_v29 = vpop.f32.mrb[44].mxu0  ;;  %v1466_v46 = vpop.f32.mrb[44].mxu1 }
 0x215   : > { %v1274_v43 = vadd.f32 %v1273_v29, %v4563_v38  ;;  %v1467_v39 = vadd.f32 %v1466_v46, %v4565_v48  ;;  %v1275_v60 = vpop.f32.mrb[45].mxu0  ;;  %v1468_v54 = vpop.f32.mrb[45].mxu1 }
 0x216   : > { %v1276_v56 = vadd.f32 %v1275_v60, %v4567_v0  ;;  %v1469_v47 = vadd.f32 %v1468_v54, %v4569_v1  ;;  %v1277_v20 = vpop.f32.mrb[46].mxu0  ;;  %v1470_v49 = vpop.f32.mrb[46].mxu1  ;;  %2080 = vmatprep.mubr.bf16.mxu0 %v1684_v35  ;;  %2241 = vmatprep.mubr.bf16.mxu1 %v1686_v34 }
 0x217   : > { %v1605_v31 = vmax.f32 %v1467_v39, 0.0  ;;  %v1278_v63 = vadd.f32 %v1277_v20, %v4563_v38  ;;  %v1471_v14 = vadd.f32 %v1470_v49, %v4565_v48  ;;  %v1279_v57 = vpop.f32.mrb[47].mxu0  ;;  %v1472_v18 = vpop.f32.mrb[47].mxu1  ;;  %2081 = vmatmul.mubr.bf16.gmra.mrb[104].mxu0 %v1683_v51  ;;  %2242 = vmatmul.mubr.bf16.gmra.mrb[104].mxu1 %v1685_v42  ;;  %v1603_v7 = vmax.f32 %v1274_v43, 0.0 }
 0x218   : > { %v1606_v24 = vmax.f32 %v1469_v47, 0.0  ;;  %v1280_v22 = vadd.f32 %v1279_v57, %v4567_v0  ;;  %v1473_v23 = vadd.f32 %v1472_v18, %v4569_v1  ;;  %v1604_v6 = vmax.f32 %v1276_v56, 0.0 }
 0x219   : > { %v1607_v62 = vmax.f32 %v1278_v63, 0.0  ;;  %v1609_v5 = vmax.f32 %v1471_v14, 0.0 }
 0x21a   : > { %v1608_v10 = vmax.f32 %v1280_v22, 0.0  ;;  %v1610_v50 = vmax.f32 %v1473_v23, 0.0 }
 0x21b   : > { %v1687_v35 = vpack.c.bf16 %v1607_v62, %v1603_v7  ;;  %v1689_v34 = vpack.c.bf16 %v1609_v5, %v1605_v31 }
 0x21c   : > { %v1688_v29 = vpack.c.bf16 %v1608_v10, %v1604_v6  ;;  %v1690_v46 = vpack.c.bf16 %v1610_v50, %v1606_v24  ;;  %v1283_v39 = vpop.f32.mrb[48].mxu0  ;;  %v1476_v60 = vpop.f32.mrb[48].mxu1 }
 0x21d   : > { %v1284_v51 = vadd.f32 %v1283_v39, %v4563_v38  ;;  %v1477_v42 = vadd.f32 %v1476_v60, %v4565_v48  ;;  %v1285_v54 = vpop.f32.mrb[49].mxu0  ;;  %v1478_v47 = vpop.f32.mrb[49].mxu1 }
 0x21e   : > { %v1286_v20 = vadd.f32 %v1285_v54, %v4567_v0  ;;  %v1479_v43 = vadd.f32 %v1478_v47, %v4569_v1  ;;  %v1287_v49 = vpop.f32.mrb[50].mxu0  ;;  %v1480_v56 = vpop.f32.mrb[50].mxu1  ;;  %2088 = vmatprep.mubr.bf16.mxu0 %v1688_v29  ;;  %2249 = vmatprep.mubr.bf16.mxu1 %v1690_v46 }
 0x21f   : > { %v1613_v63 = vmax.f32 %v1477_v42, 0.0  ;;  %v1288_v31 = vadd.f32 %v1287_v49, %v4563_v38  ;;  %v1481_v14 = vadd.f32 %v1480_v56, %v4565_v48  ;;  %v1289_v57 = vpop.f32.mrb[51].mxu0  ;;  %v1482_v18 = vpop.f32.mrb[51].mxu1  ;;  %2089 = vmatmul.mubr.bf16.gmra.mrb[108].mxu0 %v1687_v35  ;;  %2250 = vmatmul.mubr.bf16.gmra.mrb[108].mxu1 %v1689_v34  ;;  %v1611_v7 = vmax.f32 %v1284_v51, 0.0 }
 0x220   : > { %v1614_v24 = vmax.f32 %v1479_v43, 0.0  ;;  %v1290_v22 = vadd.f32 %v1289_v57, %v4567_v0  ;;  %v1483_v23 = vadd.f32 %v1482_v18, %v4569_v1  ;;  %v1612_v6 = vmax.f32 %v1286_v20, 0.0 }
 0x221   : > { %v1615_v62 = vmax.f32 %v1288_v31, 0.0  ;;  %v1617_v5 = vmax.f32 %v1481_v14, 0.0 }
 0x222   : > { %v1616_v10 = vmax.f32 %v1290_v22, 0.0  ;;  %v1618_v50 = vmax.f32 %v1483_v23, 0.0 }
 0x223   : > { %v1691_v29 = vpack.c.bf16 %v1615_v62, %v1611_v7  ;;  %v1693_v46 = vpack.c.bf16 %v1617_v5, %v1613_v63 }
 0x224   : > { %v1692_v39 = vpack.c.bf16 %v1616_v10, %v1612_v6  ;;  %v1694_v60 = vpack.c.bf16 %v1618_v50, %v1614_v24  ;;  %v1293_v42 = vpop.f32.mrb[52].mxu0  ;;  %v1486_v54 = vpop.f32.mrb[52].mxu1 }
 0x225   : > { %v1294_v35 = vadd.f32 %v1293_v42, %v4563_v38  ;;  %v1487_v34 = vadd.f32 %v1486_v54, %v4565_v48  ;;  %v1295_v47 = vpop.f32.mrb[53].mxu0  ;;  %v1488_v43 = vpop.f32.mrb[53].mxu1 }
 0x226   : > { %v1296_v49 = vadd.f32 %v1295_v47, %v4567_v0  ;;  %v1489_v51 = vadd.f32 %v1488_v43, %v4569_v1  ;;  %v1297_v56 = vpop.f32.mrb[54].mxu0  ;;  %v1490_v20 = vpop.f32.mrb[54].mxu1  ;;  %2096 = vmatprep.mubr.bf16.mxu0 %v1692_v39  ;;  %2257 = vmatprep.mubr.bf16.mxu1 %v1694_v60 }
 0x227   : > { %v1621_v31 = vmax.f32 %v1487_v34, 0.0  ;;  %v1298_v63 = vadd.f32 %v1297_v56, %v4563_v38  ;;  %v1491_v14 = vadd.f32 %v1490_v20, %v4565_v48  ;;  %v1299_v57 = vpop.f32.mrb[55].mxu0  ;;  %v1492_v18 = vpop.f32.mrb[55].mxu1  ;;  %2097 = vmatmul.mubr.bf16.gmra.mrb[112].mxu0 %v1691_v29  ;;  %2258 = vmatmul.mubr.bf16.gmra.mrb[112].mxu1 %v1693_v46  ;;  %v1619_v7 = vmax.f32 %v1294_v35, 0.0 }
 0x228   : > { %v1622_v24 = vmax.f32 %v1489_v51, 0.0  ;;  %v1300_v22 = vadd.f32 %v1299_v57, %v4567_v0  ;;  %v1493_v23 = vadd.f32 %v1492_v18, %v4569_v1  ;;  %v1620_v6 = vmax.f32 %v1296_v49, 0.0 }
 0x229   : > { %v1623_v62 = vmax.f32 %v1298_v63, 0.0  ;;  %v1625_v5 = vmax.f32 %v1491_v14, 0.0 }
 0x22a   : > { %v1624_v10 = vmax.f32 %v1300_v22, 0.0  ;;  %v1626_v50 = vmax.f32 %v1493_v23, 0.0 }
 0x22b   : > { %v1695_v39 = vpack.c.bf16 %v1623_v62, %v1619_v7  ;;  %v1697_v60 = vpack.c.bf16 %v1625_v5, %v1621_v31 }
 0x22c   : > { %v1696_v42 = vpack.c.bf16 %v1624_v10, %v1620_v6  ;;  %v1698_v54 = vpack.c.bf16 %v1626_v50, %v1622_v24  ;;  %v1303_v34 = vpop.f32.mrb[56].mxu0  ;;  %v1496_v47 = vpop.f32.mrb[56].mxu1 }
 0x22d   : > { %v1304_v29 = vadd.f32 %v1303_v34, %v4563_v38  ;;  %v1497_v46 = vadd.f32 %v1496_v47, %v4565_v48  ;;  %v1305_v43 = vpop.f32.mrb[57].mxu0  ;;  %v1498_v51 = vpop.f32.mrb[57].mxu1 }
 0x22e   : > { %v1306_v56 = vadd.f32 %v1305_v43, %v4567_v0  ;;  %v1499_v35 = vadd.f32 %v1498_v51, %v4569_v1  ;;  %v1307_v20 = vpop.f32.mrb[58].mxu0  ;;  %v1500_v49 = vpop.f32.mrb[58].mxu1  ;;  %2104 = vmatprep.mubr.bf16.mxu0 %v1696_v42  ;;  %2265 = vmatprep.mubr.bf16.mxu1 %v1698_v54 }
 0x22f   : > { %v1629_v63 = vmax.f32 %v1497_v46, 0.0  ;;  %v1308_v31 = vadd.f32 %v1307_v20, %v4563_v38  ;;  %v1501_v14 = vadd.f32 %v1500_v49, %v4565_v48  ;;  %v1309_v57 = vpop.f32.mrb[59].mxu0  ;;  %v1502_v18 = vpop.f32.mrb[59].mxu1  ;;  %2105 = vmatmul.mubr.bf16.gmra.mrb[116].mxu0 %v1695_v39  ;;  %2266 = vmatmul.mubr.bf16.gmra.mrb[116].mxu1 %v1697_v60  ;;  %v1627_v7 = vmax.f32 %v1304_v29, 0.0 }
 0x230   : > { %v1630_v24 = vmax.f32 %v1499_v35, 0.0  ;;  %v1310_v22 = vadd.f32 %v1309_v57, %v4567_v0  ;;  %v1503_v23 = vadd.f32 %v1502_v18, %v4569_v1  ;;  %v1628_v6 = vmax.f32 %v1306_v56, 0.0 }
 0x231   : > { %v1631_v62 = vmax.f32 %v1308_v31, 0.0  ;;  %v1633_v5 = vmax.f32 %v1501_v14, 0.0 }
 0x232   : > { %v1632_v10 = vmax.f32 %v1310_v22, 0.0  ;;  %v1634_v50 = vmax.f32 %v1503_v23, 0.0 }
 0x233   : > { %v1699_v42 = vpack.c.bf16 %v1631_v62, %v1627_v7  ;;  %v1701_v54 = vpack.c.bf16 %v1633_v5, %v1629_v63 }
 0x234   : > { %v1700_v34 = vpack.c.bf16 %v1632_v10, %v1628_v6  ;;  %v1702_v47 = vpack.c.bf16 %v1634_v50, %v1630_v24  ;;  %v1313_v46 = vpop.f32.mrb[60].mxu0  ;;  %v1506_v43 = vpop.f32.mrb[60].mxu1 }
 0x235   : > { %v1314_v39 = vadd.f32 %v1313_v46, %v4563_v38  ;;  %v1507_v60 = vadd.f32 %v1506_v43, %v4565_v48  ;;  %v1315_v51 = vpop.f32.mrb[61].mxu0  ;;  %v1508_v35 = vpop.f32.mrb[61].mxu1 }
 0x236   : > { %v1316_v20 = vadd.f32 %v1315_v51, %v4567_v0  ;;  %v1509_v29 = vadd.f32 %v1508_v35, %v4569_v1  ;;  %v1317_v49 = vpop.f32.mrb[62].mxu0  ;;  %v1510_v56 = vpop.f32.mrb[62].mxu1  ;;  %2112 = vmatprep.mubr.bf16.mxu0 %v1700_v34  ;;  %2273 = vmatprep.mubr.bf16.mxu1 %v1702_v47 }
 0x237   : > { %v1637_v31 = vmax.f32 %v1507_v60, 0.0  ;;  %v1318_v63 = vadd.f32 %v1317_v49, %v4563_v38  ;;  %v1511_v14 = vadd.f32 %v1510_v56, %v4565_v48  ;;  %v1319_v57 = vpop.f32.mrb[63].mxu0  ;;  %v1512_v18 = vpop.f32.mrb[63].mxu1  ;;  %2113 = vmatmul.mubr.bf16.gmra.mrb[120].mxu0 %v1699_v42  ;;  %2274 = vmatmul.mubr.bf16.gmra.mrb[120].mxu1 %v1701_v54  ;;  %v1635_v7 = vmax.f32 %v1314_v39, 0.0 }
 0x238   : > { %v1638_v24 = vmax.f32 %v1509_v29, 0.0  ;;  %v1320_v22 = vadd.f32 %v1319_v57, %v4567_v0  ;;  %v1513_v23 = vadd.f32 %v1512_v18, %v4569_v1  ;;  %v1636_v6 = vmax.f32 %v1316_v20, 0.0  ;;  %v4702_v0 = vld [vmem:[%s5289_s5] ss:$0 sm:$0xff] }
 0x239   : > { %v1639_v62 = vmax.f32 %v1318_v63, 0.0  ;;  %v1641_v5 = vmax.f32 %v1511_v14, 0.0 }
 0x23a   : > { %v1640_v10 = vmax.f32 %v1320_v22, 0.0  ;;  %v1642_v50 = vmax.f32 %v1513_v23, 0.0 }
 0x23b   : > { %v1703_v34 = vpack.c.bf16 %v1639_v62, %v1635_v7  ;;  %v1705_v47 = vpack.c.bf16 %v1641_v5, %v1637_v31 }
 0x23c   : > { %v1704_v38 = vpack.c.bf16 %v1640_v10, %v1636_v6  ;;  %v1706_v46 = vpack.c.bf16 %v1642_v50, %v1638_v24 }
 0x23e   : > { %2120 = vmatprep.mubr.bf16.mxu0 %v1704_v38  ;;  %2281 = vmatprep.mubr.bf16.mxu1 %v1706_v46 }
 0x23f   : > { %2121 = vmatmul.mubr.bf16.gmra.mrb[124].mxu0 %v1703_v34  ;;  %2282 = vmatmul.mubr.bf16.gmra.mrb[124].mxu1 %v1705_v47 }
 0x29a   : > { %v3058_v48 = vpop.f32.mrb[64].mxu0  ;;  %v3170_v42 = vpop.f32.mrb[64].mxu1 }
 0x29b   : > { %v3059_v1 = vpop.f32.mrb[65].mxu0  ;;  %v3171_v54 = vpop.f32.mrb[65].mxu1 }
 0x29c   : > { %v3060_v43 = vadd.f32 %v3059_v1, %v3058_v48  ;;  %v3172_v39 = vadd.f32 %v3171_v54, %v3170_v42  ;;  %v3061_v60 = vpop.f32.mrb[66].mxu0  ;;  %v3173_v51 = vpop.f32.mrb[66].mxu1 }
 0x29d   : > { %v3062_v35 = vpop.f32.mrb[67].mxu0  ;;  %v3174_v20 = vpop.f32.mrb[67].mxu1 }
 0x29e   : > { %v2003_v29 = vadd.f32 %v3060_v43, %v4702_v0  ;;  %v3063_v49 = vadd.f32 %v3062_v35, %v3061_v60  ;;  %v3175_v56 = vadd.f32 %v3174_v20, %v3173_v51 }
 0x2a0   : > { %v2164_v31 = vadd.f32 %v3172_v39, %v2003_v29  ;;  %v2006_v63 = vadd.f32 %v3063_v49, %v4702_v0 }
 0x2a2   : > { %v2167_v14 = vadd.f32 %v3175_v56, %v2006_v63  ;;  %v3064_v57 = vpop.f32.mrb[68].mxu0  ;;  %v3176_v18 = vpop.f32.mrb[68].mxu1  ;;  %v2290_v23 = vadd.f32 %v2164_v31, %v4205_v8 }
 0x2a3   : > { %v3065_v24 = vpop.f32.mrb[69].mxu0  ;;  %v3177_v22 = vpop.f32.mrb[69].mxu1 }
 0x2a4   : > { %v2291_v7 = vadd.f32 %v2167_v14, %v4208_v11  ;;  %v3066_v62 = vadd.f32 %v3065_v24, %v3064_v57  ;;  %v3178_v5 = vadd.f32 %v3177_v22, %v3176_v18  ;;  %v3067_v6 = vpop.f32.mrb[70].mxu0  ;;  %v3179_v10 = vpop.f32.mrb[70].mxu1 }
 0x2a5   : > { %v3068_v50 = vpop.f32.mrb[71].mxu0  ;;  %v3180_v34 = vpop.f32.mrb[71].mxu1 }
 0x2a6   : > { %v2322_v47 = vadd.f32 %v2291_v7, %v2290_v23  ;;  %v2011_v38 = vadd.f32 %v3066_v62, %v4702_v0  ;;  %v3069_v46 = vadd.f32 %v3068_v50, %v3067_v6  ;;  %v3181_v48 = vadd.f32 %v3180_v34, %v3179_v10 }
 0x2a8   : > { %v2323_v42 = vrot.slane %v2322_v47, 4  ;;  %v2172_v1 = vadd.f32 %v3178_v5, %v2011_v38  ;;  %v2014_v54 = vadd.f32 %v3069_v46, %v4702_v0 }
 0x2aa   : > { %v2324_v43 = vadd.f32 %v2323_v42, %v2322_v47  ;;  %v2175_v39 = vadd.f32 %v3181_v48, %v2014_v54  ;;  %v3070_v8 = vpop.f32.mrb[72].mxu0  ;;  %v3182_v60 = vpop.f32.mrb[72].mxu1  ;;  %v4711_v11 = vadd.f32 %v2172_v1, %v4224_v33 }
 0x2ab   : > { %v3071_v51 = vpop.f32.mrb[73].mxu0  ;;  %v3183_v35 = vpop.f32.mrb[73].mxu1 }
 0x2ac   : > { %v2325_v20 = vrot.slane %v2324_v43, 2  ;;  %v4714_v29 = vadd.f32 %v2175_v39, %v4227_v45  ;;  %v3072_v49 = vadd.f32 %v3071_v51, %v3070_v8  ;;  %v3184_v56 = vadd.f32 %v3183_v35, %v3182_v60  ;;  %v3073_v31 = vpop.f32.mrb[74].mxu0  ;;  %v3185_v63 = vpop.f32.mrb[74].mxu1 }
 0x2ad   : > { %v3074_v14 = vpop.f32.mrb[75].mxu0  ;;  %v3186_v57 = vpop.f32.mrb[75].mxu1 }
 0x2ae   : > { %v2326_v18 = vadd.f32 %v2325_v20, %v2324_v43  ;;  %v2329_v24 = vadd.f32 %v4714_v29, %v4711_v11  ;;  %v2019_v22 = vadd.f32 %v3072_v49, %v4702_v0  ;;  %v3075_v33 = vadd.f32 %v3074_v14, %v3073_v31 }
 0x2af   : > { %v3187_v62 = vadd.f32 %v3186_v57, %v3185_v63 }
 0x2b0   : > { %v2327_v5 = vrot.slane %v2326_v18, 1  ;;  %v2330_v6 = vrot.slane %v2329_v24, 4  ;;  %v2180_v10 = vadd.f32 %v3184_v56, %v2019_v22  ;;  %v2022_v45 = vadd.f32 %v3075_v33, %v4702_v0 }
 0x2b2   : > { %v2328_v50 = vadd.f32 %v2327_v5, %v2326_v18  ;;  %v2331_v34 = vadd.f32 %v2330_v6, %v2329_v24  ;;  %v2183_v47 = vadd.f32 %v3187_v62, %v2022_v45  ;;  %v3076_v38 = vpop.f32.mrb[76].mxu0  ;;  %v3188_v46 = vpop.f32.mrb[76].mxu1  ;;  %v4721_v48 = vadd.f32 %v2180_v10, %v4235_v41 }
 0x2b3   : > { %v3077_v42 = vpop.f32.mrb[77].mxu0  ;;  %v3189_v1 = vpop.f32.mrb[77].mxu1 }
 0x2b4   : > { %v2434_v54 = vmul.f32 0.0625, %v2328_v50  ;;  %v2332_v43 = vrot.slane %v2331_v34, 2  ;;  %v4724_v39 = vadd.f32 %v2183_v47, %v4238_v26  ;;  %v3078_v8 = vadd.f32 %v3077_v42, %v3076_v38  ;;  %v3079_v60 = vpop.f32.mrb[78].mxu0  ;;  %v3191_v51 = vpop.f32.mrb[78].mxu1 }
 0x2b5   : > { %v3190_v35 = vadd.f32 %v3189_v1, %v3188_v46  ;;  %v3080_v20 = vpop.f32.mrb[79].mxu0  ;;  %v3192_v49 = vpop.f32.mrb[79].mxu1 }
 0x2b6   : > { %v4726_v56 = vsub.f32 %v2290_v23, %v2434_v54  ;;  %v4728_v31 = vsub.f32 %v2291_v7, %v2434_v54  ;;  %v2333_v63 = vadd.f32 %v2332_v43, %v2331_v34  ;;  %v2336_v41 = vadd.f32 %v4724_v39, %v4721_v48 }
 0x2b7   : > { %v2027_v14 = vadd.f32 %v3078_v8, %v4702_v0  ;;  %v3081_v57 = vadd.f32 %v3080_v20, %v3079_v60  ;;  %v3193_v18 = vadd.f32 %v3192_v49, %v3191_v51 }
 0x2b8   : > { %v2482_v26 = vmul.f32 %v4726_v56, %v4726_v56  ;;  %v2483_v24 = vmul.f32 %v4728_v31, %v4728_v31  ;;  %v2334_v22 = vrot.slane %v2333_v63, 1  ;;  %v2337_v33 = vrot.slane %v2336_v41, 4 }
 0x2b9   : > { %v2188_v23 = vadd.f32 %v3190_v35, %v2027_v14  ;;  %v2030_v7 = vadd.f32 %v3081_v57, %v4702_v0 }
 0x2ba   : > { %v2514_v62 = vadd.f32 %v2483_v24, %v2482_v26  ;;  %v2335_v5 = vadd.f32 %v2334_v22, %v2333_v63  ;;  %v2338_v6 = vadd.f32 %v2337_v33, %v2336_v41  ;;  %v3082_v10 = vpop.f32.mrb[80].mxu0  ;;  %v3194_v45 = vpop.f32.mrb[80].mxu1 }
 0x2bb   : > { %v2191_v50 = vadd.f32 %v3193_v18, %v2030_v7  ;;  %v3083_v34 = vpop.f32.mrb[81].mxu0  ;;  %v3195_v47 = vpop.f32.mrb[81].mxu1  ;;  %v4739_v8 = vadd.f32 %v2188_v23, %v4254_v58 }
 0x2bc   : > { %v2515_v38 = vrot.slane %v2514_v62, 4  ;;  %v2435_v46 = vmul.f32 0.0625, %v2335_v5  ;;  %v2339_v42 = vrot.slane %v2338_v6, 2  ;;  %v3084_v1 = vadd.f32 %v3083_v34, %v3082_v10  ;;  %v3085_v54 = vpop.f32.mrb[82].mxu0  ;;  %v3197_v43 = vpop.f32.mrb[82].mxu1 }
 0x2bd   : > { %v4742_v60 = vadd.f32 %v2191_v50, %v4258_v30  ;;  %v3196_v51 = vadd.f32 %v3195_v47, %v3194_v45  ;;  %v3086_v35 = vpop.f32.mrb[83].mxu0  ;;  %v3198_v20 = vpop.f32.mrb[83].mxu1 }
 0x2be   : > { %v2516_v49 = vadd.f32 %v2515_v38, %v2514_v62  ;;  %v4745_v63 = vsub.f32 %v4711_v11, %v2435_v46  ;;  %v4748_v41 = vsub.f32 %v4714_v29, %v2435_v46  ;;  %v2340_v14 = vadd.f32 %v2339_v42, %v2338_v6 }
 0x2bf   : > { %v2343_v57 = vadd.f32 %v4742_v60, %v4739_v8  ;;  %v2035_v58 = vadd.f32 %v3084_v1, %v4702_v0  ;;  %v3087_v18 = vadd.f32 %v3086_v35, %v3085_v54  ;;  %v3199_v26 = vadd.f32 %v3198_v20, %v3197_v43 }
 0x2c0   : > { %v2517_v30 = vrot.slane %v2516_v49, 2  ;;  %v2484_v24 = vmul.f32 %v4745_v63, %v4745_v63  ;;  %v2485_v22 = vmul.f32 %v4748_v41, %v4748_v41  ;;  %v2341_v11 = vrot.slane %v2340_v14, 1 }
 0x2c1   : > { %v2344_v33 = vrot.slane %v2343_v57, 4  ;;  %v2196_v23 = vadd.f32 %v3196_v51, %v2035_v58  ;;  %v2038_v29 = vadd.f32 %v3087_v18, %v4702_v0 }
 0x2c2   : > { %v2518_v7 = vadd.f32 %v2517_v30, %v2516_v49  ;;  %v2521_v62 = vadd.f32 %v2485_v22, %v2484_v24  ;;  %v2342_v5 = vadd.f32 %v2341_v11, %v2340_v14  ;;  %v3088_v6 = vpop.f32.mrb[84].mxu0  ;;  %v3200_v10 = vpop.f32.mrb[84].mxu1 }
 0x2c3   : > { %v2345_v45 = vadd.f32 %v2344_v33, %v2343_v57  ;;  %v2199_v50 = vadd.f32 %v3199_v26, %v2038_v29  ;;  %v3089_v34 = vpop.f32.mrb[85].mxu0  ;;  %v3201_v47 = vpop.f32.mrb[85].mxu1  ;;  %v4759_v51 = vadd.f32 %v2196_v23, %v4301_v25 }
 0x2c4   : > { %v2519_v38 = vrot.slane %v2518_v7, 1  ;;  %v2522_v46 = vrot.slane %v2521_v62, 4  ;;  %v2436_v42 = vmul.f32 0.0625, %v2342_v5  ;;  %v3090_v1 = vadd.f32 %v3089_v34, %v3088_v6  ;;  %v3091_v54 = vpop.f32.mrb[86].mxu0  ;;  %v3203_v43 = vpop.f32.mrb[86].mxu1 }
 0x2c5   : > { %v2346_v35 = vrot.slane %v2345_v45, 2  ;;  %v4762_v20 = vadd.f32 %v2199_v50, %v4315_v21  ;;  %v3202_v49 = vadd.f32 %v3201_v47, %v3200_v10  ;;  %v3092_v14 = vpop.f32.mrb[87].mxu0  ;;  %v3204_v58 = vpop.f32.mrb[87].mxu1 }
 0x2c6   : > { %v2520_v57 = vadd.f32 %v2519_v38, %v2518_v7  ;;  %v2523_v18 = vadd.f32 %v2522_v46, %v2521_v62  ;;  %v4765_v26 = vsub.f32 %v4721_v48, %v2436_v42  ;;  %v4768_v30 = vsub.f32 %v4724_v39, %v2436_v42 }
 0x2c7   : > { %v2347_v24 = vadd.f32 %v2346_v35, %v2345_v45  ;;  %v2350_v22 = vadd.f32 %v4762_v20, %v4759_v51  ;;  %v2043_v25 = vadd.f32 %v3090_v1, %v4702_v0  ;;  %v3093_v11 = vadd.f32 %v3092_v14, %v3091_v54 }
 0x2c8   : > { %v2626_v21 = vmul.f32 0.0625, %v2520_v57  ;;  %v2524_v33 = vrot.slane %v2523_v18, 2  ;;  %v2486_v23 = vmul.f32 %v4765_v26, %v4765_v26  ;;  %v2487_v29 = vmul.f32 %v4768_v30, %v4768_v30 }
 0x2c9   : > { %v2348_v48 = vrot.slane %v2347_v24, 1  ;;  %v2351_v7 = vrot.slane %v2350_v22, 4  ;;  %v2204_v62 = vadd.f32 %v3202_v49, %v2043_v25  ;;  %v2046_v39 = vadd.f32 %v3093_v11, %v4702_v0 }
 0x2ca   : > { %v2642_v5 = vadd.f32 1e-05, %v2626_v21  ;;  %v2525_v6 = vadd.f32 %v2524_v33, %v2523_v18  ;;  %v2528_v10 = vadd.f32 %v2487_v29, %v2486_v23  ;;  %v3205_v45 = vadd.f32 %v3204_v58, %v3203_v43  ;;  %v3094_v50 = vpop.f32.mrb[88].mxu0  ;;  %v3206_v34 = vpop.f32.mrb[88].mxu1 }
 0x2cb   : > { %v2349_v47 = vadd.f32 %v2348_v48, %v2347_v24  ;;  %v2352_v38 = vadd.f32 %v2351_v7, %v2350_v22  ;;  %v4779_v46 = vadd.f32 %v2204_v62, %v4321_v59  ;;  %v3095_v42 = vpop.f32.mrb[89].mxu0  ;;  %v3207_v1 = vpop.f32.mrb[89].mxu1 }
 0x2cc   : > { %3459 = vrsqrt.f32 %v2642_v5  ;;  %v2526_v54 = vrot.slane %v2525_v6, 1  ;;  %v2529_v35 = vrot.slane %v2528_v10, 4  ;;  %v2207_v14 = vadd.f32 %v3205_v45, %v2046_v39  ;;  %v3097_v49 = vpop.f32.mrb[90].mxu0  ;;  %v3209_v57 = vpop.f32.mrb[90].mxu1 }
 0x2cd   : > { %v2437_v25 = vmul.f32 0.0625, %v2349_v47  ;;  %v2353_v11 = vrot.slane %v2352_v38, 2  ;;  %v3096_v18 = vadd.f32 %v3095_v42, %v3094_v50  ;;  %v3208_v21 = vadd.f32 %v3207_v1, %v3206_v34  ;;  %v3098_v43 = vpop.f32.mrb[91].mxu0  ;;  %v3210_v58 = vpop.f32.mrb[91].mxu1 }
 0x2ce   : > { %v2527_v33 = vadd.f32 %v2526_v54, %v2525_v6  ;;  %v2530_v24 = vadd.f32 %v2529_v35, %v2528_v10  ;;  %v4782_v22 = vadd.f32 %v2207_v14, %v4352_v40  ;;  %v3099_v59 = vadd.f32 %v3098_v43, %v3097_v49 }
 0x2cf   : > { %v4785_v23 = vsub.f32 %v4739_v8, %v2437_v25  ;;  %v4788_v29 = vsub.f32 %v4742_v60, %v2437_v25  ;;  %v2354_v48 = vadd.f32 %v2353_v11, %v2352_v38  ;;  %v2051_v7 = vadd.f32 %v3096_v18, %v4702_v0 }
 0x2d0   : > { %v2627_v62 = vmul.f32 0.0625, %v2527_v33  ;;  %v2531_v39 = vrot.slane %v2530_v24, 2  ;;  %v2357_v5 = vadd.f32 %v4782_v22, %v4779_v46  ;;  %v2054_v6 = vadd.f32 %v3099_v59, %v4702_v0 }
 0x2d1   : > { %v2488_v40 = vmul.f32 %v4785_v23, %v4785_v23  ;;  %v2489_v8 = vmul.f32 %v4788_v29, %v4788_v29  ;;  %v2355_v10 = vrot.slane %v2354_v48, 1  ;;  %v2212_v45 = vadd.f32 %v3208_v21, %v2051_v7 }
 0x2d2   : > { %v2643_v60 = vadd.f32 1e-05, %v2627_v62  ;;  %v2532_v50 = vadd.f32 %v2531_v39, %v2530_v24  ;;  %v2358_v34 = vrot.slane %v2357_v5, 4  ;;  %v3211_v47 = vadd.f32 %v3210_v58, %v3209_v57  ;;  %v3100_v38 = vpop.f32.mrb[92].mxu0  ;;  %v3212_v42 = vpop.f32.mrb[92].mxu1 }
 0x2d3   : > { %v2535_v1 = vadd.f32 %v2489_v8, %v2488_v40  ;;  %v2356_v54 = vadd.f32 %v2355_v10, %v2354_v48  ;;  %v4799_v35 = vadd.f32 %v2212_v45, %v4406_v37  ;;  %v3101_v14 = vpop.f32.mrb[93].mxu0  ;;  %v3213_v49 = vpop.f32.mrb[93].mxu1  ;;  %v4804_v37 = vld [vmem:[%s5289_s5 + $0x3] ss:$0 sm:$0xff] }
 0x2d4   : > { %3461 = vrsqrt.f32 %v2643_v60  ;;  %v2533_v25 = vrot.slane %v2532_v50, 1  ;;  %v2359_v11 = vadd.f32 %v2358_v34, %v2357_v5  ;;  %v2215_v18 = vadd.f32 %v3211_v47, %v2054_v6  ;;  %v3103_v43 = vpop.f32.mrb[94].mxu0  ;;  %v3215_v33 = vpop.f32.mrb[94].mxu1  ;;  %v4817_v60 = vld [vmem:[%s5289_s5 + $0x4] ss:$0 sm:$0xff] }
 0x2d5   : > { %v2536_v21 = vrot.slane %v2535_v1, 4  ;;  %v2438_v59 = vmul.f32 0.0625, %v2356_v54  ;;  %v3102_v24 = vadd.f32 %v3101_v14, %v3100_v38  ;;  %v3214_v7 = vadd.f32 %v3213_v49, %v3212_v42  ;;  %v3104_v57 = vpop.f32.mrb[95].mxu0  ;;  %v3216_v58 = vpop.f32.mrb[95].mxu1 }
 0x2d6   : > { %v3460_v62 = vpop.eup %3459  ;;  %v2534_v48 = vadd.f32 %v2533_v25, %v2532_v50  ;;  %v2360_v39 = vrot.slane %v2359_v11, 2  ;;  %v4807_v40 = vadd.f32 %v2215_v18, %v4410_v28  ;;  %v3105_v5 = vadd.f32 %v3104_v57, %v3103_v43 }
 0x2d7   : > { %v2674_v6 = vmul.f32 %v3460_v62, %v4726_v56  ;;  %v2675_v8 = vmul.f32 %v3460_v62, %v4728_v31  ;;  %v2537_v10 = vadd.f32 %v2536_v21, %v2535_v1  ;;  %v4812_v45 = vsub.f32 %v4759_v51, %v2438_v59 }
 0x2d8   : > { %v2628_v34 = vmul.f32 0.0625, %v2534_v48  ;;  %v4820_v50 = vsub.f32 %v4762_v20, %v2438_v59  ;;  %v2361_v28 = vadd.f32 %v2360_v39, %v2359_v11  ;;  %v2364_v47 = vadd.f32 %v4807_v40, %v4799_v35 }
 0x2d9   : > { %v2711_v56 = vmul.f32 %v4804_v37, %v2674_v6  ;;  %v2712_v31 = vmul.f32 %v4804_v37, %v2675_v8  ;;  %v2538_v38 = vrot.slane %v2537_v10, 2  ;;  %v2490_v51 = vmul.f32 %v4812_v45, %v4812_v45 }
 0x2da   : > { %v2644_v42 = vadd.f32 1e-05, %v2628_v34  ;;  %v2491_v1 = vmul.f32 %v4820_v50, %v4820_v50  ;;  %v2362_v54 = vrot.slane %v2361_v28, 1  ;;  %v2365_v20 = vrot.slane %v2364_v47, 4  ;;  %v3106_v14 = vpop.f32.mrb[96].mxu0  ;;  %v3218_v49 = vpop.f32.mrb[96].mxu1 }
 0x2db   : > { %v2748_v25 = vadd.f32 %v4817_v60, %v2711_v56  ;;  %v2749_v11 = vadd.f32 %v4817_v60, %v2712_v31  ;;  %v2539_v18 = vadd.f32 %v2538_v38, %v2537_v10  ;;  %v2059_v43 = vadd.f32 %v3102_v24, %v4702_v0  ;;  %v3107_v21 = vpop.f32.mrb[97].mxu0  ;;  %v3219_v59 = vpop.f32.mrb[97].mxu1 }
 0x2dc   : > { %3463 = vrsqrt.f32 %v2644_v42  ;;  %v2542_v57 = vadd.f32 %v2491_v1, %v2490_v51  ;;  %v2363_v62 = vadd.f32 %v2362_v54, %v2361_v28  ;;  %v2366_v48 = vadd.f32 %v2365_v20, %v2364_v47  ;;  %v3109_v39 = vpop.f32.mrb[98].mxu0  ;;  %v3221_v6 = vpop.f32.mrb[98].mxu1 }
 0x2dd   : > { %2780 = vst [vmem:[%s4834_s10] sm:$0xff] %v2748_v25  ;;  %2781 = vst [vmem:[%s4834_s10 + $0x8] sm:$0xff] %v2749_v11  ;;  %v2540_v8 = vrot.slane %v2539_v18, 1  ;;  %v2220_v34 = vadd.f32 %v3214_v7, %v2059_v43  ;;  %v2062_v10 = vadd.f32 %v3105_v5, %v4702_v0  ;;  %v3217_v56 = vadd.f32 %v3216_v58, %v3215_v33  ;;  %v3110_v24 = vpop.f32.mrb[99].mxu0  ;;  %v3222_v31 = vpop.f32.mrb[99].mxu1 }
 0x2de   : > { %v3462_v38 = vpop.eup %3461  ;;  %v2543_v42 = vrot.slane %v2542_v57, 4  ;;  %v2439_v51 = vmul.f32 0.0625, %v2363_v62  ;;  %v2367_v28 = vrot.slane %v2366_v48, 2  ;;  %v3108_v47 = vadd.f32 %v3107_v21, %v3106_v14 }
 0x2df   : > { %v2676_v1 = vmul.f32 %v3462_v38, %v4745_v63  ;;  %v2677_v54 = vmul.f32 %v3462_v38, %v4748_v41  ;;  %v2541_v20 = vadd.f32 %v2540_v8, %v2539_v18  ;;  %v4842_v25 = vadd.f32 %v2220_v34, %v4419_v27 }
 0x2e0   : > { %v2544_v11 = vadd.f32 %v2543_v42, %v2542_v57  ;;  %v4845_v7 = vsub.f32 %v4779_v46, %v2439_v51  ;;  %v4848_v33 = vsub.f32 %v4782_v22, %v2439_v51  ;;  %v2368_v58 = vadd.f32 %v2367_v28, %v2366_v48 }
 0x2e1   : > { %v2713_v5 = vmul.f32 %v4804_v37, %v2676_v1  ;;  %v2714_v14 = vmul.f32 %v4804_v37, %v2677_v54  ;;  %v2629_v43 = vmul.f32 0.0625, %v2541_v20  ;;  %v2223_v63 = vadd.f32 %v3217_v56, %v2062_v10 }
 0x2e2   : > { %v2545_v21 = vrot.slane %v2544_v11, 2  ;;  %v2492_v41 = vmul.f32 %v4845_v7, %v4845_v7  ;;  %v2493_v27 = vmul.f32 %v4848_v33, %v4848_v33  ;;  %v2369_v46 = vrot.slane %v2368_v58, 1  ;;  %v3112_v18 = vpop.f32.mrb[100].mxu0  ;;  %v3224_v22 = vpop.f32.mrb[100].mxu1 }
 0x2e3   : > { %v2750_v57 = vadd.f32 %v4817_v60, %v2713_v5  ;;  %v2751_v62 = vadd.f32 %v4817_v60, %v2714_v14  ;;  %v2645_v48 = vadd.f32 1e-05, %v2629_v43  ;;  %v4859_v8 = vadd.f32 %v2223_v63, %v4428_v44  ;;  %v3113_v34 = vpop.f32.mrb[101].mxu0  ;;  %v3225_v10 = vpop.f32.mrb[101].mxu1 }
 0x2e4   : > { %v2546_v56 = vadd.f32 %v2545_v21, %v2544_v11  ;;  %v2549_v38 = vadd.f32 %v2493_v27, %v2492_v41  ;;  %v2370_v42 = vadd.f32 %v2369_v46, %v2368_v58  ;;  %v2067_v51 = vadd.f32 %v3108_v47, %v4702_v0  ;;  %v3115_v28 = vpop.f32.mrb[102].mxu0  ;;  %v3227_v1 = vpop.f32.mrb[102].mxu1 }
 0x2e5   : > { %2782 = vst [vmem:[%s4834_s10 + $0x10] sm:$0xff] %v2750_v57  ;;  %2783 = vst [vmem:[%s4834_s10 + $0x18] sm:$0xff] %v2751_v62  ;;  %3465 = vrsqrt.f32 %v2645_v48  ;;  %v2371_v54 = vadd.f32 %v4859_v8, %v4842_v25  ;;  %v3220_v20 = vadd.f32 %v3219_v59, %v3218_v49  ;;  %v3111_v5 = vadd.f32 %v3110_v24, %v3109_v39  ;;  %v3116_v14 = vpop.f32.mrb[103].mxu0  ;;  %v3228_v44 = vpop.f32.mrb[103].mxu1 }
 0x2e6   : > { %v3464_v43 = vpop.eup %3463  ;;  %v2547_v63 = vrot.slane %v2546_v56, 1  ;;  %v2550_v17 = vrot.slane %v2549_v38, 4  ;;  %v2440_v11 = vmul.f32 0.0625, %v2370_v42  ;;  %v3223_v21 = vadd.f32 %v3222_v31, %v3221_v6 }
 0x2e7   : > { %v2678_v58 = vmul.f32 %v3464_v43, %v4765_v26  ;;  %v2679_v47 = vmul.f32 %v3464_v43, %v4768_v30  ;;  %v2372_v41 = vrot.slane %v2371_v54, 4  ;;  %v2228_v27 = vadd.f32 %v3220_v20, %v2067_v51 }
 0x2e8   : > { %v2548_v46 = vadd.f32 %v2547_v63, %v2546_v56  ;;  %v2551_v57 = vadd.f32 %v2550_v17, %v2549_v38  ;;  %v4869_v62 = vsub.f32 %v4799_v35, %v2440_v11  ;;  %v4872_v49 = vsub.f32 %v4807_v40, %v2440_v11 }
 0x2e9   : > { %v2715_v59 = vmul.f32 %v4804_v37, %v2678_v58  ;;  %v2716_v39 = vmul.f32 %v4804_v37, %v2679_v47  ;;  %v2373_v24 = vadd.f32 %v2372_v41, %v2371_v54  ;;  %v4877_v6 = vadd.f32 %v2228_v27, %v4445_v53 }
 0x2ea   : > { %v2630_v26 = vmul.f32 0.0625, %v2548_v46  ;;  %v2552_v30 = vrot.slane %v2551_v57, 2  ;;  %v2494_v31 = vmul.f32 %v4869_v62, %v4869_v62  ;;  %v2495_v17 = vmul.f32 %v4872_v49, %v4872_v49  ;;  %v4883_v35 = vpop.f32.mrb[104].mxu0  ;;  %v4885_v40 = vpop.f32.mrb[104].mxu1 }
 0x2eb   : > { %v2752_v48 = vadd.f32 %v4817_v60, %v2715_v59  ;;  %v2753_v56 = vadd.f32 %v4817_v60, %v2716_v39  ;;  %v2374_v53 = vrot.slane %v2373_v24, 2  ;;  %v2070_v38 = vadd.f32 %v3111_v5, %v4702_v0  ;;  %v3119_v42 = vpop.f32.mrb[105].mxu0  ;;  %v3231_v51 = vpop.f32.mrb[105].mxu1 }
 0x2ec   : > { %v2646_v54 = vadd.f32 1e-05, %v2630_v26  ;;  %v2553_v20 = vadd.f32 %v2552_v30, %v2551_v57  ;;  %v2556_v43 = vadd.f32 %v2495_v17, %v2494_v31  ;;  %v3114_v63 = vadd.f32 %v3113_v34, %v3112_v18  ;;  %v4890_v11 = vpop.f32.mrb[106].mxu0  ;;  %v4892_v58 = vpop.f32.mrb[106].mxu1 }
 0x2ed   : > { %2784 = vst [vmem:[%s4834_s10 + $0x20] sm:$0xff] %v2752_v48  ;;  %2785 = vst [vmem:[%s4834_s10 + $0x28] sm:$0xff] %v2753_v56  ;;  %v2375_v47 = vadd.f32 %v2374_v53, %v2373_v24  ;;  %v2231_v41 = vadd.f32 %v3223_v21, %v2070_v38  ;;  %v3226_v27 = vadd.f32 %v3225_v10, %v3224_v22  ;;  %v3122_v59 = vpop.f32.mrb[107].mxu0  ;;  %v3234_v39 = vpop.f32.mrb[107].mxu1 }
 0x2ee   : > { %v3117_v46 = vadd.f32 %v3116_v14, %v3115_v28  ;;  %3467 = vrsqrt.f32 %v2646_v54  ;;  %v2554_v5 = vrot.slane %v2553_v20, 1  ;;  %v2557_v61 = vrot.slane %v2556_v43, 4 }
 0x2ef   : > { %v2075_v26 = vadd.f32 %v3114_v63, %v4702_v0  ;;  %v3466_v57 = vpop.eup %3465  ;;  %v2376_v30 = vrot.slane %v2375_v47, 1  ;;  %v4898_v18 = vadd.f32 %v2231_v41, %v4448_v16  ;;  %v3229_v31 = vadd.f32 %v3228_v44, %v3227_v1 }
 0x2f0   : > { %v2078_v34 = vadd.f32 %v3117_v46, %v4702_v0  ;;  %v2680_v24 = vmul.f32 %v3466_v57, %v4785_v23  ;;  %v2681_v22 = vmul.f32 %v3466_v57, %v4788_v29  ;;  %v2555_v10 = vadd.f32 %v2554_v5, %v2553_v20 }
 0x2f1   : > { %v2558_v28 = vadd.f32 %v2557_v61, %v2556_v43  ;;  %v2377_v14 = vadd.f32 %v2376_v30, %v2375_v47  ;;  %v2378_v21 = vadd.f32 %v4898_v18, %v4877_v6  ;;  %v2236_v17 = vadd.f32 %v3226_v27, %v2075_v26 }
 0x2f2   : > { %v2239_v48 = vadd.f32 %v3229_v31, %v2078_v34  ;;  %v2717_v56 = vmul.f32 %v4804_v37, %v2680_v24  ;;  %v2718_v16 = vmul.f32 %v4804_v37, %v2681_v22  ;;  %v2631_v53 = vmul.f32 0.0625, %v2555_v10  ;;  %v4907_v54 = vpop.f32.mrb[108].mxu0  ;;  %v4909_v1 = vpop.f32.mrb[108].mxu1 }
 0x2f3   : > { %v2559_v38 = vrot.slane %v2558_v28, 2  ;;  %v2441_v23 = vmul.f32 0.0625, %v2377_v14  ;;  %v2379_v29 = vrot.slane %v2378_v21, 4  ;;  %v4912_v61 = vadd.f32 %v2236_v17, %v4467_v52  ;;  %v3125_v20 = vpop.f32.mrb[109].mxu0  ;;  %v4917_v43 = vpop.f32.mrb[109].mxu1 }
 0x2f4   : > { %v4915_v44 = vadd.f32 %v2239_v48, %v4470_v4  ;;  %v2754_v63 = vadd.f32 %v4817_v60, %v2717_v56  ;;  %v2755_v47 = vadd.f32 %v4817_v60, %v2718_v16  ;;  %v2647_v41 = vadd.f32 1e-05, %v2631_v53  ;;  %v3127_v46 = vpop.f32.mrb[110].mxu0  ;;  %v4921_v5 = vpop.f32.mrb[110].mxu1 }
 0x2f5   : > { %v2560_v27 = vadd.f32 %v2559_v38, %v2558_v28  ;;  %v4924_v52 = vsub.f32 %v4842_v25, %v2441_v23  ;;  %v4927_v26 = vsub.f32 %v4859_v8, %v2441_v23  ;;  %v2380_v4 = vadd.f32 %v2379_v29, %v2378_v21  ;;  %v3128_v30 = vpop.f32.mrb[111].mxu0  ;;  %v3240_v34 = vpop.f32.mrb[111].mxu1 }
 0x2f6   : > { %v2385_v57 = vadd.f32 %v4915_v44, %v4912_v61  ;;  %2786 = vst [vmem:[%s4834_s10 + $0x30] sm:$0xff] %v2754_v63  ;;  %2787 = vst [vmem:[%s4834_s10 + $0x38] sm:$0xff] %v2755_v47  ;;  %3469 = vrsqrt.f32 %v2647_v41  ;;  %v3120_v24 = vadd.f32 %v3119_v42, %v4883_v35  ;;  %v3232_v22 = vadd.f32 %v3231_v51, %v4885_v40 }
 0x2f7   : > { %v2561_v31 = vrot.slane %v2560_v27, 1  ;;  %v2496_v25 = vmul.f32 %v4924_v52, %v4924_v52  ;;  %v2497_v8 = vmul.f32 %v4927_v26, %v4927_v26  ;;  %v2381_v10 = vrot.slane %v2380_v4, 2 }
 0x2f8   : > { %v2386_v28 = vrot.slane %v2385_v57, 4  ;;  %v3468_v14 = vpop.eup %3467  ;;  %v2083_v17 = vadd.f32 %v3120_v24, %v4702_v0  ;;  %v3123_v48 = vadd.f32 %v3122_v59, %v4890_v11  ;;  %v3235_v56 = vadd.f32 %v3234_v39, %v4892_v58 }
 0x2f9   : > { %v2562_v21 = vadd.f32 %v2561_v31, %v2560_v27  ;;  %v2682_v35 = vmul.f32 %v3468_v14, %v4812_v45  ;;  %v2683_v40 = vmul.f32 %v3468_v14, %v4820_v50  ;;  %v2563_v42 = vadd.f32 %v2497_v8, %v2496_v25 }
 0x2fa   : > { %v2382_v51 = vadd.f32 %v2381_v10, %v2380_v4  ;;  %v2387_v53 = vadd.f32 %v2386_v28, %v2385_v57  ;;  %v2244_v38 = vadd.f32 %v3232_v22, %v2083_v17  ;;  %v2086_v23 = vadd.f32 %v3123_v48, %v4702_v0  ;;  %v4945_v29 = vpop.f32.mrb[112].mxu0  ;;  %v4947_v63 = vpop.f32.mrb[112].mxu1 }
 0x2fb   : > { %v2632_v16 = vmul.f32 0.0625, %v2562_v21  ;;  %v2719_v47 = vmul.f32 %v4804_v37, %v2682_v35  ;;  %v2720_v11 = vmul.f32 %v4804_v37, %v2683_v40  ;;  %v2564_v58 = vrot.slane %v2563_v42, 4  ;;  %v4951_v45 = vpop.f32.mrb[113].mxu0  ;;  %v4953_v50 = vpop.f32.mrb[113].mxu1 }
 0x2fc   : > { %v2383_v59 = vrot.slane %v2382_v51, 1  ;;  %v2388_v41 = vrot.slane %v2387_v53, 2  ;;  %v4956_v27 = vadd.f32 %v2244_v38, %v4482_v15  ;;  %v2247_v4 = vadd.f32 %v3235_v56, %v2086_v23  ;;  %v4958_v57 = vpop.f32.mrb[114].mxu0  ;;  %v4960_v31 = vpop.f32.mrb[114].mxu1 }
 0x2fd   : > { %v2648_v39 = vadd.f32 1e-05, %v2632_v16  ;;  %v2756_v24 = vadd.f32 %v4817_v60, %v2719_v47  ;;  %v2757_v22 = vadd.f32 %v4817_v60, %v2720_v11  ;;  %v2565_v25 = vadd.f32 %v2564_v58, %v2563_v42  ;;  %v4964_v10 = vpop.f32.mrb[115].mxu0  ;;  %v4966_v28 = vpop.f32.mrb[115].mxu1 }
 0x2fe   : > { %v2384_v8 = vadd.f32 %v2383_v59, %v2382_v51  ;;  %v2389_v14 = vadd.f32 %v2388_v41, %v2387_v53  ;;  %v4969_v15 = vadd.f32 %v2247_v4, %v4485_v55  ;;  %v3126_v21 = vadd.f32 %v3125_v20, %v4907_v54 }
 0x2ff   : > { %3471 = vrsqrt.f32 %v2648_v39  ;;  %2788 = vst [vmem:[%s4834_s10 + $0x40] sm:$0xff] %v2756_v24  ;;  %2789 = vst [vmem:[%s4834_s10 + $0x48] sm:$0xff] %v2757_v22  ;;  %v2566_v17 = vrot.slane %v2565_v25, 2  ;;  %v3238_v56 = vadd.f32 %v4917_v43, %v4909_v1  ;;  %v3129_v35 = vadd.f32 %v3128_v30, %v3127_v46 }
 0x300   : > { %v2442_v48 = vmul.f32 0.0625, %v2384_v8  ;;  %v3470_v40 = vpop.eup %3469  ;;  %v2390_v42 = vrot.slane %v2389_v14, 1  ;;  %v2392_v51 = vadd.f32 %v4969_v15, %v4956_v27  ;;  %v2091_v16 = vadd.f32 %v3126_v21, %v4702_v0 }
 0x301   : > { %v3241_v55 = vadd.f32 %v3240_v34, %v4921_v5  ;;  %v2684_v53 = vmul.f32 %v3470_v40, %v4845_v7  ;;  %v2685_v54 = vmul.f32 %v3470_v40, %v4848_v33  ;;  %v2567_v20 = vadd.f32 %v2566_v17, %v2565_v25 }
 0x302   : > { %v4983_v38 = vsub.f32 %v4877_v6, %v2442_v48  ;;  %v4986_v1 = vsub.f32 %v4898_v18, %v2442_v48  ;;  %v2391_v43 = vadd.f32 %v2390_v42, %v2389_v14  ;;  %v2393_v46 = vrot.slane %v2392_v51, 4  ;;  %v4988_v23 = vpop.f32.mrb[116].mxu0  ;;  %v4990_v47 = vpop.f32.mrb[116].mxu1 }
 0x303   : > { %v2252_v30 = vadd.f32 %v3238_v56, %v2091_v16  ;;  %v2721_v5 = vmul.f32 %v4804_v37, %v2684_v53  ;;  %v2722_v7 = vmul.f32 %v4804_v37, %v2685_v54  ;;  %v2568_v34 = vrot.slane %v2567_v20, 1  ;;  %v4996_v6 = vpop.f32.mrb[117].mxu0  ;;  %v4998_v11 = vpop.f32.mrb[117].mxu1 }
 0x304   : > { %v2498_v33 = vmul.f32 %v4983_v38, %v4983_v38  ;;  %v2499_v18 = vmul.f32 %v4986_v1, %v4986_v1  ;;  %v2443_v58 = vmul.f32 0.0625, %v2391_v43  ;;  %v2394_v59 = vadd.f32 %v2393_v46, %v2392_v51  ;;  %v5005_v41 = vpop.f32.mrb[118].mxu0  ;;  %v5007_v4 = vpop.f32.mrb[118].mxu1 }
 0x305   : > { %v5003_v39 = vadd.f32 %v2252_v30, %v4495_v3  ;;  %v2758_v24 = vadd.f32 %v4817_v60, %v2721_v5  ;;  %v2759_v22 = vadd.f32 %v4817_v60, %v2722_v7  ;;  %v2569_v25 = vadd.f32 %v2568_v34, %v2567_v20  ;;  %v5012_v14 = vpop.f32.mrb[119].mxu0  ;;  %v5014_v21 = vpop.f32.mrb[119].mxu1 }
 0x306   : > { %v2094_v8 = vadd.f32 %v3129_v35, %v4702_v0  ;;  %v2570_v17 = vadd.f32 %v2499_v18, %v2498_v33  ;;  %v5017_v48 = vsub.f32 %v4912_v61, %v2443_v58  ;;  %v5020_v3 = vsub.f32 %v4915_v44, %v2443_v58 }
 0x307   : > { %v2395_v56 = vrot.slane %v2394_v59, 2  ;;  %2790 = vst [vmem:[%s4834_s10 + $0x50] sm:$0xff] %v2758_v24  ;;  %2791 = vst [vmem:[%s4834_s10 + $0x58] sm:$0xff] %v2759_v22  ;;  %v2633_v40 = vmul.f32 0.0625, %v2569_v25  ;;  %v3132_v51 = vadd.f32 %v4951_v45, %v4945_v29  ;;  %v3244_v35 = vadd.f32 %v4953_v50, %v4947_v63 }
 0x308   : > { %v2255_v42 = vadd.f32 %v3241_v55, %v2094_v8  ;;  %v2571_v53 = vrot.slane %v2570_v17, 4  ;;  %v2500_v61 = vmul.f32 %v5017_v48, %v5017_v48  ;;  %v2501_v44 = vmul.f32 %v5020_v3, %v5020_v3 }
 0x309   : > { %v3472_v16 = vpop.eup %3471  ;;  %v2396_v54 = vadd.f32 %v2395_v56, %v2394_v59  ;;  %v2649_v55 = vadd.f32 1e-05, %v2633_v40  ;;  %v2099_v50 = vadd.f32 %v3132_v51, %v4702_v0 }
 0x30a   : > { %v2686_v20 = vmul.f32 %v3472_v16, %v4869_v62  ;;  %v2687_v43 = vmul.f32 %v3472_v16, %v4872_v49  ;;  %v5035_v46 = vadd.f32 %v2255_v42, %v4498_v2  ;;  %v2572_v29 = vadd.f32 %v2571_v53, %v2570_v17  ;;  %v5038_v30 = vpop.f32.mrb[120].mxu0  ;;  %v5040_v5 = vpop.f32.mrb[120].mxu1 }
 0x30b   : > { %v2577_v45 = vadd.f32 %v2501_v44, %v2500_v61  ;;  %v2397_v63 = vrot.slane %v2396_v54, 1  ;;  %3473 = vrsqrt.f32 %v2649_v55  ;;  %v5046_v49 = vpop.f32.mrb[121].mxu0  ;;  %v5048_v2 = vpop.f32.mrb[121].mxu1  ;;  %v2260_v58 = vadd.f32 %v3244_v35, %v2099_v50  ;;  %v5070_v61 = vld [vmem:[%s5289_s5] ss:$0 sm:$0xff] }
 0x30c   : > { %v2723_v7 = vmul.f32 %v4804_v37, %v2686_v20  ;;  %v2724_v34 = vmul.f32 %v4804_v37, %v2687_v43  ;;  %v2399_v62 = vadd.f32 %v5035_v46, %v5003_v39  ;;  %v2573_v33 = vrot.slane %v2572_v29, 2  ;;  %v5050_v59 = vpop.f32.mrb[122].mxu0  ;;  %v5052_v24 = vpop.f32.mrb[122].mxu1 }
 0x30d   : > { %v2578_v18 = vrot.slane %v2577_v45, 4  ;;  %v2398_v0 = vadd.f32 %v2397_v63, %v2396_v54  ;;  %v3135_v17 = vadd.f32 %v4964_v10, %v4958_v57  ;;  %v5058_v56 = vpop.f32.mrb[123].mxu0  ;;  %v5060_v40 = vpop.f32.mrb[123].mxu1  ;;  %v5063_v35 = vadd.f32 %v2260_v58, %v4510_v13 }
 0x30e   : > { %v2760_v22 = vadd.f32 %v4817_v60, %v2723_v7  ;;  %v2761_v25 = vadd.f32 %v4817_v60, %v2724_v34  ;;  %v2400_v8 = vrot.slane %v2399_v62, 4  ;;  %v2574_v42 = vadd.f32 %v2573_v33, %v2572_v29 }
 0x30f   : > { %v2579_v51 = vadd.f32 %v2578_v18, %v2577_v45  ;;  %v2444_v16 = vmul.f32 0.0625, %v2398_v0  ;;  %v2102_v57 = vadd.f32 %v5070_v61, %v3135_v17  ;;  %v3247_v10 = vadd.f32 %v4966_v28, %v4960_v31 }
 0x310   : > { %2792 = vst [vmem:[%s4834_s10 + $0x60] sm:$0xff] %v2760_v22  ;;  %2793 = vst [vmem:[%s4834_s10 + $0x68] sm:$0xff] %v2761_v25  ;;  %v2401_v53 = vadd.f32 %v2400_v8, %v2399_v62  ;;  %v3138_v44 = vadd.f32 %v4996_v6, %v4988_v23  ;;  %v2575_v54 = vrot.slane %v2574_v42, 1  ;;  %v3250_v63 = vadd.f32 %v4998_v11, %v4990_v47 }
 0x311   : > { %v2580_v20 = vrot.slane %v2579_v51, 2  ;;  %v5078_v13 = vsub.f32 %v4956_v27, %v2444_v16  ;;  %v5081_v43 = vsub.f32 %v4969_v15, %v2444_v16  ;;  %v2263_v29 = vadd.f32 %v3247_v10, %v2102_v57 }
 0x312   : > { %v2402_v55 = vrot.slane %v2401_v53, 2  ;;  %v2107_v45 = vadd.f32 %v5070_v61, %v3138_v44  ;;  %v2576_v50 = vadd.f32 %v2575_v54, %v2574_v42  ;;  %v3148_v27 = vpop.f32.mrb[124].mxu0  ;;  %v5090_v6 = vpop.f32.mrb[124].mxu1  ;;  %v3141_v62 = vadd.f32 %v5012_v14, %v5005_v41 }
 0x313   : > { %v2581_v31 = vadd.f32 %v2580_v20, %v2579_v51  ;;  %v2502_v28 = vmul.f32 %v5078_v13, %v5078_v13  ;;  %v2503_v23 = vmul.f32 %v5081_v43, %v5081_v43  ;;  %v5093_v7 = vadd.f32 %v2263_v29, %v4513_v19  ;;  %v3149_v47 = vpop.f32.mrb[125].mxu0  ;;  %v3261_v11 = vpop.f32.mrb[125].mxu1 }
 0x314   : > { %v2403_v15 = vadd.f32 %v2402_v55, %v2401_v53  ;;  %v2268_v34 = vadd.f32 %v3250_v63, %v2107_v45  ;;  %v2634_v33 = vmul.f32 0.0625, %v2576_v50  ;;  %v3253_v58 = vadd.f32 %v5014_v21, %v5007_v4  ;;  %v3151_v22 = vpop.f32.mrb[126].mxu0  ;;  %v3263_v25 = vpop.f32.mrb[126].mxu1 }
 0x315   : > { %v2582_v18 = vrot.slane %v2581_v31, 1  ;;  %v2584_v0 = vadd.f32 %v2503_v23, %v2502_v28  ;;  %v3474_v8 = vpop.eup %3473  ;;  %v2406_v19 = vadd.f32 %v5093_v7, %v5063_v35  ;;  %v2110_v41 = vadd.f32 %v5070_v61, %v3141_v62  ;;  %v3152_v14 = vpop.f32.mrb[127].mxu0 }
 0x316   : > { %v2404_v17 = vrot.slane %v2403_v15, 1  ;;  %v5102_v42 = vadd.f32 %v2268_v34, %v4524_v9  ;;  %v3264_v51 = vpop.f32.mrb[127].mxu1  ;;  %v2688_v16 = vmul.f32 %v3474_v8, %v4924_v52  ;;  %v2689_v53 = vmul.f32 %v3474_v8, %v4927_v26 }
 0x317   : > { %v2650_v57 = vadd.f32 1e-05, %v2634_v33  ;;  %v2583_v4 = vadd.f32 %v2582_v18, %v2581_v31  ;;  %v2585_v21 = vrot.slane %v2584_v0, 4  ;;  %v2407_v44 = vrot.slane %v2406_v19, 4 }
 0x318   : > { %v2405_v10 = vadd.f32 %v2404_v17, %v2403_v15  ;;  %v2271_v54 = vadd.f32 %v3253_v58, %v2110_v41  ;;  %v2725_v20 = vmul.f32 %v4804_v37, %v2688_v16  ;;  %v2726_v9 = vmul.f32 %v4804_v37, %v2689_v53 }
 0x319   : > { %3475 = vrsqrt.f32 %v2650_v57  ;;  %v2635_v55 = vmul.f32 0.0625, %v2583_v4  ;;  %v2586_v29 = vadd.f32 %v2585_v21, %v2584_v0  ;;  %v2408_v63 = vadd.f32 %v2407_v44, %v2406_v19 }
 0x31a   : > { %v2445_v45 = vmul.f32 0.0625, %v2405_v10  ;;  %v5110_v52 = vadd.f32 %v2271_v54, %v4527_v36  ;;  %v2762_v26 = vadd.f32 %v4817_v60, %v2725_v20  ;;  %v2763_v50 = vadd.f32 %v4817_v60, %v2726_v9 }
 0x31b   : > { %v2651_v31 = vadd.f32 1e-05, %v2635_v55  ;;  %v3144_v28 = vadd.f32 %v5046_v49, %v5038_v30  ;;  %v2587_v23 = vrot.slane %v2586_v29, 2  ;;  %v2409_v62 = vrot.slane %v2408_v63, 2 }
 0x31c   : > { %v5117_v15 = vsub.f32 %v5003_v39, %v2445_v45  ;;  %v5120_v34 = vsub.f32 %v5035_v46, %v2445_v45  ;;  %2794 = vst [vmem:[%s4834_s10 + $0x70] sm:$0xff] %v2762_v26  ;;  %2795 = vst [vmem:[%s4834_s10 + $0x78] sm:$0xff] %v2763_v50  ;;  %v2413_v36 = vadd.f32 %v5110_v52, %v5102_v42 }
 0x31d   : > { %3477 = vrsqrt.f32 %v2651_v31  ;;  %v2115_v33 = vadd.f32 %v5070_v61, %v3144_v28  ;;  %v3256_v18 = vadd.f32 %v5048_v2, %v5040_v5  ;;  %v2588_v30 = vadd.f32 %v2587_v23, %v2586_v29 }
 0x31e   : > { %v2504_v39 = vmul.f32 %v5117_v15, %v5117_v15  ;;  %v2505_v46 = vmul.f32 %v5120_v34, %v5120_v34  ;;  %v2410_v49 = vadd.f32 %v2409_v62, %v2408_v63  ;;  %v2414_v0 = vrot.slane %v2413_v36, 4 }
 0x31f   : > { %v2276_v58 = vadd.f32 %v3256_v18, %v2115_v33  ;;  %v3147_v8 = vadd.f32 %v5058_v56, %v5050_v59  ;;  %v3259_v17 = vadd.f32 %v5060_v40, %v5052_v24  ;;  %v2589_v19 = vrot.slane %v2588_v30, 1 }
 0x320   : > { %v2591_v41 = vadd.f32 %v2505_v46, %v2504_v39  ;;  %v2411_v16 = vrot.slane %v2410_v49, 1  ;;  %v3150_v5 = vadd.f32 %v3149_v47, %v3148_v27  ;;  %v2415_v2 = vadd.f32 %v2414_v0, %v2413_v36 }
 0x321   : > { %v5138_v53 = vadd.f32 %v2276_v58, %v4537_v12  ;;  %v2118_v57 = vadd.f32 %v5070_v61, %v3147_v8  ;;  %v3262_v4 = vadd.f32 %v3261_v11, %v5090_v6  ;;  %v2590_v21 = vadd.f32 %v2589_v19, %v2588_v30 }
 0x322   : > { %v2592_v10 = vrot.slane %v2591_v41, 4  ;;  %v2412_v44 = vadd.f32 %v2411_v16, %v2410_v49  ;;  %v2123_v59 = vadd.f32 %v5070_v61, %v3150_v5  ;;  %v2416_v54 = vrot.slane %v2415_v2, 2 }
 0x323   : > { %v3476_v56 = vpop.eup %3475  ;;  %v2279_v24 = vadd.f32 %v3259_v17, %v2118_v57  ;;  %v3153_v40 = vadd.f32 %v3152_v14, %v3151_v22  ;;  %v3265_v20 = vadd.f32 %v3264_v51, %v3263_v25  ;;  %v2636_v12 = vmul.f32 0.0625, %v2590_v21 }
 0x324   : > { %v2690_v27 = vmul.f32 %v3476_v56, %v4983_v38  ;;  %v2691_v47 = vmul.f32 %v3476_v56, %v4986_v1  ;;  %v2593_v9 = vadd.f32 %v2592_v10, %v2591_v41  ;;  %v2446_v55 = vmul.f32 0.0625, %v2412_v44 }
 0x325   : > { %v2417_v29 = vadd.f32 %v2416_v54, %v2415_v2  ;;  %v5146_v6 = vadd.f32 %v2279_v24, %v4540_v32  ;;  %v2284_v11 = vadd.f32 %v3262_v4, %v2123_v59  ;;  %v2652_v26 = vadd.f32 1e-05, %v2636_v12  ;;  %v5316_v2 = vld [vmem:[#allocation16_spill] sm:$0xff]  ;;  %v5317_v4 = vld [vmem:[#allocation17_spill] sm:$0xff] }
 0x326   : > { %v2727_v45 = vmul.f32 %v4804_v37, %v2690_v27  ;;  %v2728_v63 = vmul.f32 %v4804_v37, %v2691_v47  ;;  %v2594_v22 = vrot.slane %v2593_v9, 2  ;;  %v5151_v38 = vsub.f32 %v5063_v35, %v2446_v55 }
 0x327   : > { %v3478_v25 = vpop.eup %3477  ;;  %v5154_v1 = vsub.f32 %v5093_v7, %v2446_v55  ;;  %v2418_v14 = vrot.slane %v2417_v29, 1  ;;  %v2420_v32 = vadd.f32 %v5146_v6, %v5138_v53  ;;  %3479 = vrsqrt.f32 %v2652_v26 }
 0x328   : > { %v2764_v51 = vadd.f32 %v4817_v60, %v2727_v45  ;;  %v2765_v50 = vadd.f32 %v4817_v60, %v2728_v63  ;;  %v2692_v31 = vmul.f32 %v3478_v25, %v5017_v48  ;;  %v2693_v28 = vmul.f32 %v3478_v25, %v5020_v3 }
 0x329   : > { %v2595_v23 = vadd.f32 %v2594_v22, %v2593_v9  ;;  %v2506_v35 = vmul.f32 %v5151_v38, %v5151_v38  ;;  %v2507_v7 = vmul.f32 %v5154_v1, %v5154_v1  ;;  %v2419_v33 = vadd.f32 %v2418_v14, %v2417_v29 }
 0x32a   : > { %2796 = vst [vmem:[%s4834_s10 + $0x80] sm:$0xff] %v2764_v51  ;;  %2797 = vst [vmem:[%s4834_s10 + $0x88] sm:$0xff] %v2765_v50  ;;  %v2729_v62 = vmul.f32 %v4804_v37, %v2692_v31  ;;  %v2730_v36 = vmul.f32 %v4804_v37, %v2693_v28  ;;  %v2421_v48 = vrot.slane %v2420_v32, 4  ;;  %v2126_v30 = vadd.f32 %v5070_v61, %v3153_v40 }
 0x32b   : > { %v2596_v18 = vrot.slane %v2595_v23, 1  ;;  %v2598_v3 = vadd.f32 %v2507_v7, %v2506_v35  ;;  %v2447_v49 = vmul.f32 0.0625, %v2419_v33  ;;  %v2320_v57 = vadd.f32 %v2284_v11, %v5316_v2 }
 0x32c   : > { %v2766_v39 = vadd.f32 %v4817_v60, %v2729_v62  ;;  %v2767_v46 = vadd.f32 %v4817_v60, %v2730_v36  ;;  %v2422_v0 = vadd.f32 %v2421_v48, %v2420_v32  ;;  %v2287_v17 = vadd.f32 %v3265_v20, %v2126_v30 }
 0x32d   : > { %v2597_v58 = vadd.f32 %v2596_v18, %v2595_v23  ;;  %v2599_v8 = vrot.slane %v2598_v3, 4  ;;  %v5176_v19 = vsub.f32 %v5102_v42, %v2447_v49  ;;  %v5179_v41 = vsub.f32 %v5110_v52, %v2447_v49 }
 0x32e   : > { %2798 = vst [vmem:[%s4834_s10 + $0x90] sm:$0xff] %v2766_v39  ;;  %2799 = vst [vmem:[%s4834_s10 + $0x98] sm:$0xff] %v2767_v46  ;;  %v2423_v16 = vrot.slane %v2422_v0, 2  ;;  %v2321_v21 = vadd.f32 %v2287_v17, %v5317_v4 }
 0x32f   : > { %v2637_v5 = vmul.f32 0.0625, %v2597_v58  ;;  %v2600_v61 = vadd.f32 %v2599_v8, %v2598_v3  ;;  %v2508_v10 = vmul.f32 %v5176_v19, %v5176_v19  ;;  %v2509_v44 = vmul.f32 %v5179_v41, %v5179_v41 }
 0x330   : > { %v2424_v59 = vadd.f32 %v2423_v16, %v2422_v0  ;;  %v2427_v54 = vadd.f32 %v2321_v21, %v2320_v57 }
 0x331   : > { %v2653_v56 = vadd.f32 1e-05, %v2637_v5  ;;  %v2601_v42 = vrot.slane %v2600_v61, 2  ;;  %v2605_v24 = vadd.f32 %v2509_v44, %v2508_v10  ;;  %v3480_v40 = vpop.eup %3479 }
 0x332   : > { %v2425_v52 = vrot.slane %v2424_v59, 1  ;;  %v2428_v27 = vrot.slane %v2427_v54, 4  ;;  %v2694_v47 = vmul.f32 %v3480_v40, %v5078_v13  ;;  %v2695_v12 = vmul.f32 %v3480_v40, %v5081_v43 }
 0x333   : > { %3481 = vrsqrt.f32 %v2653_v56  ;;  %v2602_v20 = vadd.f32 %v2601_v42, %v2600_v61  ;;  %v2606_v9 = vrot.slane %v2605_v24, 4 }
 0x334   : > { %v2426_v55 = vadd.f32 %v2425_v52, %v2424_v59  ;;  %v2429_v11 = vadd.f32 %v2428_v27, %v2427_v54  ;;  %v2731_v45 = vmul.f32 %v4804_v37, %v2694_v47  ;;  %v2732_v63 = vmul.f32 %v4804_v37, %v2695_v12  ;;  %v3492_v54 = vld [vmem:[%s5289_s5 + $0x3] ss:$0 sm:$0xff]  ;;  %v3493_v27 = vld [vmem:[%s5289_s5 + $0x4] ss:$0 sm:$0xff] }
 0x335   : > { %v2603_v29 = vrot.slane %v2602_v20, 1  ;;  %v2607_v26 = vadd.f32 %v2606_v9, %v2605_v24 }
 0x336   : > { %v2448_v22 = vmul.f32 0.0625, %v2426_v55  ;;  %v2430_v14 = vrot.slane %v2429_v11, 2  ;;  %v2768_v32 = vadd.f32 %v4817_v60, %v2731_v45  ;;  %v2769_v13 = vadd.f32 %v4817_v60, %v2732_v63 }
 0x337   : > { %v2604_v25 = vadd.f32 %v2603_v29, %v2602_v20  ;;  %v2608_v51 = vrot.slane %v2607_v26, 2 }
 0x338   : > { %v5194_v43 = vsub.f32 %v5138_v53, %v2448_v22  ;;  %v5197_v31 = vsub.f32 %v5146_v6, %v2448_v22  ;;  %v2431_v28 = vadd.f32 %v2430_v14, %v2429_v11  ;;  %2800 = vst [vmem:[%s4834_s10 + $0xa0] sm:$0xff] %v2768_v32  ;;  %2801 = vst [vmem:[%s4834_s10 + $0xa8] sm:$0xff] %v2769_v13 }
 0x339   : > { %v2638_v50 = vmul.f32 0.0625, %v2604_v25  ;;  %v2609_v23 = vadd.f32 %v2608_v51, %v2607_v26 }
 0x33a   : > { %v2510_v35 = vmul.f32 %v5194_v43, %v5194_v43  ;;  %v2511_v62 = vmul.f32 %v5197_v31, %v5197_v31  ;;  %v2432_v36 = vrot.slane %v2431_v28, 1 }
 0x33b   : > { %v2654_v7 = vadd.f32 1e-05, %v2638_v50  ;;  %v2610_v33 = vrot.slane %v2609_v23, 1 }
 0x33c   : > { %v2612_v53 = vadd.f32 %v2511_v62, %v2510_v35  ;;  %v2433_v18 = vadd.f32 %v2432_v36, %v2431_v28 }
 0x33d   : > { %v3482_v48 = vpop.eup %3481  ;;  %3483 = vrsqrt.f32 %v2654_v7  ;;  %v2611_v30 = vadd.f32 %v2610_v33, %v2609_v23 }
 0x33e   : > { %v2696_v6 = vmul.f32 %v3482_v48, %v5117_v15  ;;  %v2697_v3 = vmul.f32 %v3482_v48, %v5120_v34  ;;  %v2613_v39 = vrot.slane %v2612_v53, 4  ;;  %v2449_v46 = vmul.f32 0.0625, %v2433_v18 }
 0x33f   : > { %v2639_v58 = vmul.f32 0.0625, %v2611_v30 }
 0x340   : > { %v2733_v49 = vmul.f32 %v4804_v37, %v2696_v6  ;;  %v2734_v0 = vmul.f32 %v4804_v37, %v2697_v3  ;;  %v2614_v8 = vadd.f32 %v2613_v39, %v2612_v53  ;;  %v2480_v17 = vsub.f32 %v2320_v57, %v2449_v46 }
 0x341   : > { %v2481_v16 = vsub.f32 %v2321_v21, %v2449_v46  ;;  %v2655_v15 = vadd.f32 1e-05, %v2639_v58 }
 0x342   : > { %v2770_v5 = vadd.f32 %v4817_v60, %v2733_v49  ;;  %v2771_v61 = vadd.f32 %v4817_v60, %v2734_v0  ;;  %v2615_v2 = vrot.slane %v2614_v8, 2  ;;  %v2512_v34 = vmul.f32 %v2480_v17, %v2480_v17 }
 0x343   : > { %v2513_v4 = vmul.f32 %v2481_v16, %v2481_v16  ;;  %3485 = vrsqrt.f32 %v2655_v15 }
 0x344   : > { %2802 = vst [vmem:[%s4834_s10 + $0xb0] sm:$0xff] %v2770_v5  ;;  %2803 = vst [vmem:[%s4834_s10 + $0xb8] sm:$0xff] %v2771_v61  ;;  %v2616_v10 = vadd.f32 %v2615_v2, %v2614_v8 }
 0x345   : > { %v2619_v44 = vadd.f32 %v2513_v4, %v2512_v34 }
 0x346   : > { %v2617_v56 = vrot.slane %v2616_v10, 1 }
 0x347   : > { %v3484_v59 = vpop.eup %3483  ;;  %v2620_v37 = vrot.slane %v2619_v44, 4 }
 0x348   : > { %v2698_v57 = vmul.f32 %v3484_v59, %v5151_v38  ;;  %v2699_v21 = vmul.f32 %v3484_v59, %v5154_v1  ;;  %v2618_v42 = vadd.f32 %v2617_v56, %v2616_v10 }
 0x349   : > { %v2621_v60 = vadd.f32 %v2620_v37, %v2619_v44 }
 0x34a   : > { %v2735_v24 = vmul.f32 %v3492_v54, %v2698_v57  ;;  %v2736_v52 = vmul.f32 %v3492_v54, %v2699_v21  ;;  %v2640_v40 = vmul.f32 0.0625, %v2618_v42 }
 0x34b   : > { %v2622_v20 = vrot.slane %v2621_v60, 2 }
 0x34c   : > { %v2772_v47 = vadd.f32 %v3493_v27, %v2735_v24  ;;  %v2773_v12 = vadd.f32 %v3493_v27, %v2736_v52  ;;  %v2656_v38 = vadd.f32 1e-05, %v2640_v40 }
 0x34d   : > { %v2623_v1 = vadd.f32 %v2622_v20, %v2621_v60  ;;  %v3486_v9 = vpop.eup %3485 }
 0x34e   : > { %2804 = vst [vmem:[%s4834_s10 + $0xc0] sm:$0xff] %v2772_v47  ;;  %2805 = vst [vmem:[%s4834_s10 + $0xc8] sm:$0xff] %v2773_v12  ;;  %v2700_v55 = vmul.f32 %v3486_v9, %v5176_v19  ;;  %v2701_v29 = vmul.f32 %v3486_v9, %v5179_v41  ;;  %3487 = vrsqrt.f32 %v2656_v38 }
 0x34f   : > { %v2624_v11 = vrot.slane %v2623_v1, 1 }
 0x350   : > { %v2737_v45 = vmul.f32 %v3492_v54, %v2700_v55  ;;  %v2738_v63 = vmul.f32 %v3492_v54, %v2701_v29 }
 0x351   : > { %v2625_v26 = vadd.f32 %v2624_v11, %v2623_v1 }
 0x352   : > { %v2774_v22 = vadd.f32 %v3493_v27, %v2737_v45  ;;  %v2775_v25 = vadd.f32 %v3493_v27, %v2738_v63 }
 0x353   : > { %v2641_v14 = vmul.f32 0.0625, %v2625_v26 }
 0x354   : > { %2806 = vst [vmem:[%s4834_s10 + $0xd0] sm:$0xff] %v2774_v22  ;;  %2807 = vst [vmem:[%s4834_s10 + $0xd8] sm:$0xff] %v2775_v25 }
 0x355   : > { %v2657_v32 = vadd.f32 1e-05, %v2641_v14 }
 0x357   : > { %3489 = vrsqrt.f32 %v2657_v32 }
 0x358   : > { %v3488_v13 = vpop.eup %3487 }
 0x359   : > { %v2702_v19 = vmul.f32 %v3488_v13, %v5194_v43  ;;  %v2703_v41 = vmul.f32 %v3488_v13, %v5197_v31 }
 0x35b   : > { %v2739_v51 = vmul.f32 %v3492_v54, %v2702_v19  ;;  %v2740_v50 = vmul.f32 %v3492_v54, %v2703_v41 }
 0x35d   : > { %v2776_v28 = vadd.f32 %v3493_v27, %v2739_v51  ;;  %v2777_v23 = vadd.f32 %v3493_v27, %v2740_v50 }
 0x35f   : > { %2808 = vst [vmem:[%s4834_s10 + $0xe0] sm:$0xff] %v2776_v28  ;;  %2809 = vst [vmem:[%s4834_s10 + $0xe8] sm:$0xff] %v2777_v23 }
 0x361   : > { %v3490_v35 = vpop.eup %3489 }
 0x362   : > { %v2704_v7 = vmul.f32 %v3490_v35, %v2480_v17  ;;  %v2705_v62 = vmul.f32 %v3490_v35, %v2481_v16 }
 0x364   : > { %v2741_v36 = vmul.f32 %v3492_v54, %v2704_v7  ;;  %v2742_v33 = vmul.f32 %v3492_v54, %v2705_v62 }
 0x366   : > { %v2778_v43 = vadd.f32 %v3493_v27, %v2741_v36  ;;  %v2779_v31 = vadd.f32 %v3493_v27, %v2742_v33 }
 0x368   : > { %2810 = vst [vmem:[%s4834_s10 + $0xf0] sm:$0xff] %v2778_v43  ;;  %2811 = vst [vmem:[%s4834_s10 + $0xf8] sm:$0xff] %v2779_v31 }
 0x369   : > { %3623 = shalt.err (!%p3620_p5)
}
 0x36a   : > { %s3624_s18 = scalar_lea.hbm %s5236_s7, 4096  ;;  %s3628_s2 = scalar_lea.hbm %s5290_s6, 8192 }
 0x36b   : > { %p3625_p9 = scmp.ne.s32.totalorder %s5236_s7, %s3624_s18  ;;  %p3629_p11 = scmp.lt.u32.totalorder %s5236_s7, %s5290_s6 }
 0x36c   : > { %p3630_p1 = scmp.lt.u32.totalorder %s3628_s2, %s3624_s18  ;;  %p3632_p2 = scmp.lt.u32.totalorder %s3624_s18, %s5236_s7 }
 0x36d   : > { %p3626_p0 = pnand %p3625_p9, %p5318_p13 }
 0x36e   : > { %p3631_p12 = por %p3630_p1, %p3629_p11 }
 0x36f   : > { %p3627_p8 = pneg %p3626_p0 }
 0x370   : > { %p3633_p6 = por %p3632_p2, %p3631_p12 }
 0x372   : > { %p3634_p10 = pnand %p3633_p6, %p3627_p8 }
 0x374   : > { %3637 = shalt.err (!%p3634_p10)
}
 0x375   : > { %s3702_s27 = smov 128   ;;  %s3703_s14 = smov 8  }
 0x376   : > { %3278 = dma.vmem_to_hbm [thread:$0]  (%p5318_p13), %s5238_s15, 4096, %s5236_s7, %s2813_s0, %s3702_s27, %s3702_s27, %s3703_s14  }
 0x377 PF: > { %s2842_s30 = sand.u32 1, %s3676_s21   ;;  %p5319_p4 = scmp.ne.s32.totalorder %s5300_s28, 0 }
 0x378   : > { %p5320_p7 = scmp.ge.s32.totalorder %s3688_s24, 2  ;;  %s2843_s17 = scalar_lea.sflag [#allocation4], %s2842_s30 }
 0x37a   : > { %p3295_p3 = pnand %p5320_p7, %p5319_p4 }
 0x37c   : > { %3671 = dma.done.wait (!%p3295_p3), %s2843_s17, 4096  }
 0x37d   : > { %3673 = vsyncadd (!%p3295_p3), %s2843_s17, 4294963200  ;;  %p23_p5 = scmp.ge.s32.totalorder %s3849_s26, 4   ;;  %s5321_s21 = smov %s3680_s22 }
 0x37e   : > { %s5322_s22 = smov %s3684_s23  ;;  %s5323_s23 = smov %s3858_s11 }
 0x37f   : > { %s5324_s24 = smov %s3849_s26  ;;  %25 = sbr.rel (!%p23_p5) target bundleno = 12 (0xc), region = 110 }
 0x386   :  { %2848 = vsyncpa [#allocation3], 1 }
 0x387   :  { %2850 = vsyncpa [#allocation3 + $0x1], 1 }
 0x388   :  { %2851 = vsyncpa [#allocation6], 1 }
 0x389   :  { %2853 = vsyncpa [#allocation6 + $0x1], 1 }
 0x38a   :  { %2854 = vsyncpa [#allocation9], 1 }
 0x38b   :  { %2855 = vsyncpa [#allocation4], 1 }
 0x38c   :  { %2857 = vsyncpa [#allocation4 + $0x1], 1 }

</bundles_post_ra>
